<compile_context>
chip_gen: v7x
topology: tpu7x:2x2x1
jax: 0.10.0
libtpu: 0.0.40
codegen_flags: <defaults>
</compile_context>

<pallas_src>
import jax
import jax.numpy as jnp
import numpy as np
from jax.experimental import pallas as pl
from jax.experimental.pallas import tpu as pltpu

TEXT_DIM = 768
IMG_DIM = 2048
BN_EPS = 1e-5          # nn.BatchNorm1d default
OUT_DIM = 13
OUT_PAD = 128          # lane-dense padded classifier width
MAX_TILE_B = 256       # batch-tile rows (keeps VMEM residency well < 32 MiB)


def _round_up(x, m):
    return (x + m - 1) // m * m


# ----------------------------------------------------------------------------
# Kernel: one batch tile per grid step, all weights resident in VMEM.
# ----------------------------------------------------------------------------
def model_kernel(text_ref, img_ref,
                 w1_ref, b1_ref,
                 w2i_ref, w2t_ref, b2_ref,
                 wclf_ref, bclf_ref,
                 out_ref):
    # --- FuseLayer.fc1: Linear(2048 -> 768) + ReLU (Dropout = identity, eval)
    #     bf16 activations x bf16 weights on the MXU, f32 accumulation.
    img_p = jnp.dot(img_ref[...], w1_ref[...],
                    preferred_element_type=jnp.float32) + b1_ref[...]
    img_p = jnp.maximum(img_p, 0.0)

    # --- concat + eval-BatchNorm + fc2, folded & split:
    #     fuse = relu(img_p @ W2_img + text @ W2_text + b2')
    fuse = (jnp.dot(img_p.astype(jnp.bfloat16), w2i_ref[...],
                    preferred_element_type=jnp.float32)
            + jnp.dot(text_ref[...], w2t_ref[...],
                      preferred_element_type=jnp.float32)
            + b2_ref[...])
    fuse = jnp.maximum(fuse, 0.0)

    # --- clf1 collapsed: Linear(768,256)->Linear(256,64)->Linear(64,13)
    #     == single (768, 13) affine, padded to 128 lanes for a dense store.
    out = jnp.dot(fuse.astype(jnp.bfloat16), wclf_ref[...],
                  preferred_element_type=jnp.float32) + bclf_ref[...]
    out_ref[...] = out


# ----------------------------------------------------------------------------
# Host-side parameter folding (exact affine rewrites, done in f32)
# ----------------------------------------------------------------------------
def fold_params(p):
    # BatchNorm (eval) folded into fc2:  bn(x) = x*s + shift
    s = p["bn_w"] / jnp.sqrt(p["bn_v"] + BN_EPS)              # (1, 1536)
    shift = p["bn_b"] - p["bn_m"] * s                         # (1, 1536)
    w2f = s.reshape(-1, 1) * p["w2"]                          # (1536, 768)
    b2f = p["b2"] + shift @ p["w2"]                           # (1, 768)
    w2_img = w2f[:TEXT_DIM]                                   # (768, 768)
    w2_text = w2f[TEXT_DIM:]                                  # (768, 768)

    # Collapse the three activation-free classifier layers.
    wclf = p["w3"] @ p["w4"] @ p["w5"]                                    # (768, 13)
    bclf = p["b3"] @ p["w4"] @ p["w5"] + p["b4"] @ p["w5"] + p["b5"]      # (1, 13)
    wclf_pad = jnp.zeros((TEXT_DIM, OUT_PAD), jnp.float32).at[:, :OUT_DIM].set(wclf)
    bclf_pad = jnp.zeros((1, OUT_PAD), jnp.float32).at[:, :OUT_DIM].set(bclf)

    return dict(
        w1=p["w1"].astype(jnp.bfloat16), b1=p["b1"],
        w2_img=w2_img.astype(jnp.bfloat16),
        w2_text=w2_text.astype(jnp.bfloat16),
        b2=b2f,
        wclf=wclf_pad.astype(jnp.bfloat16),   # bf16 weight stream
        bclf=bclf_pad,                        # f32 bias (512 B, added post-accum)
    )


# ----------------------------------------------------------------------------
# Wrapper: 1-D batch grid, resident weights, bf16 activation streaming.
# ----------------------------------------------------------------------------
def model_forward(text, img, fp, *, max_tile_b=MAX_TILE_B):
    """text: (B, 768) pooled transformer output, img: (B, 2048). Returns (B, 13)."""
    B = text.shape[0]
    tile_b = max_tile_b if B >= max_tile_b else _round_up(max(B, 8), 8)
    b_pad = _round_up(B, tile_b)

    # Halve activation DMA bytes: stream bf16 (f32 accumulation in-kernel).
    text_bf = text.astype(jnp.bfloat16)
    img_bf = img.astype(jnp.bfloat16)
    if b_pad != B:
        text_bf = jnp.pad(text_bf, ((0, b_pad - B), (0, 0)))
        img_bf = jnp.pad(img_bf, ((0, b_pad - B), (0, 0)))

    grid = (b_pad // tile_b,)

    def resident(a):
        # Whole array in VMEM; constant block index => fetched once, stays put.
        return pl.BlockSpec(a.shape, lambda i, _nd=a.ndim: (0,) * _nd)

    operands = (
        text_bf, img_bf,
        fp["w1"], fp["b1"],
        fp["w2_img"], fp["w2_text"], fp["b2"],
        fp["wclf"], fp["bclf"],
    )
    in_specs = [
        pl.BlockSpec((tile_b, TEXT_DIM), lambda i: (i, 0)),   # text tile
        pl.BlockSpec((tile_b, IMG_DIM), lambda i: (i, 0)),    # img tile
        resident(fp["w1"]), resident(fp["b1"]),
        resident(fp["w2_img"]), resident(fp["w2_text"]), resident(fp["b2"]),
        resident(fp["wclf"]), resident(fp["bclf"]),
    ]

    out_pad = pl.pallas_call(
        model_kernel,
        out_shape=jax.ShapeDtypeStruct((b_pad, OUT_PAD), jnp.float32),
        grid=grid,
        in_specs=in_specs,
        out_specs=pl.BlockSpec((tile_b, OUT_PAD), lambda i: (i, 0)),
        compiler_params=pltpu.CompilerParams(
            dimension_semantics=("parallel",),   # megacore sharding on v7x
            vmem_limit_bytes=32 << 20),
    )(*operands)
    return out_pad[:B, :OUT_DIM]


# ----------------------------------------------------------------------------
# Deterministic parameter init mimicking PyTorch defaults
# ----------------------------------------------------------------------------
def init_params(key):
    """Linear: uniform +-1/sqrt(fan_in); weights stored (in, out)."""
    def linear(key, fan_in, fan_out):
        kw, kb = jax.random.split(key)
        bound = 1.0 / np.sqrt(fan_in)
        w = jax.random.uniform(kw, (fan_in, fan_out), jnp.float32, -bound, bound)
        b = jax.random.uniform(kb, (1, fan_out), jnp.float32, -bound, bound)
        return w, b

    keys = jax.random.split(key, 9)
    w1, b1 = linear(keys[0], IMG_DIM, TEXT_DIM)        # fuse.fc1
    w2, b2 = linear(keys[1], 2 * TEXT_DIM, TEXT_DIM)   # fuse.fc2
    w3, b3 = linear(keys[2], TEXT_DIM, 256)            # clf1[0]
    w4, b4 = linear(keys[3], 256, 64)                  # clf1[1]
    w5, b5 = linear(keys[4], 64, OUT_DIM)              # clf1[2]

    # BatchNorm1d(1536) eval-mode affine params / running stats.
    bn_w = jax.random.uniform(keys[5], (1, 2 * TEXT_DIM), jnp.float32, 0.5, 1.5)
    bn_b = jax.random.uniform(keys[6], (1, 2 * TEXT_DIM), jnp.float32, -0.1, 0.1)
    bn_m = jax.random.uniform(keys[7], (1, 2 * TEXT_DIM), jnp.float32, -0.5, 0.5)
    bn_v = jax.random.uniform(keys[8], (1, 2 * TEXT_DIM), jnp.float32, 0.5, 1.5)

    return dict(w1=w1, b1=b1, w2=w2, b2=b2, w3=w3, b3=b3,
                w4=w4, b4=b4, w5=w5, b5=b5,
                bn_w=bn_w, bn_b=bn_b, bn_m=bn_m, bn_v=bn_v)


def reference_forward(text, img, p):
    """Pure-JAX f32 reference of the ORIGINAL (un-folded) forward pass."""
    img_p = jnp.maximum(img @ p["w1"] + p["b1"], 0.0)
    concat = jnp.concatenate([img_p, text], axis=1)
    bn = (concat - p["bn_m"]) / jnp.sqrt(p["bn_v"] + BN_EPS) * p["bn_w"] + p["bn_b"]
    fuse = jnp.maximum(bn @ p["w2"] + p["b2"], 0.0)
    h = fuse @ p["w3"] + p["b3"]
    h = h @ p["w4"] + p["b4"]
    return h @ p["w5"] + p["b5"]


if __name__ == "__main__":
    key = jax.random.PRNGKey(0)
    k_text, k_img, k_params = jax.random.split(key, 3)

    B = 8
    text = jax.random.normal(k_text, (B, TEXT_DIM), jnp.float32)   # pooled transformer output
    img = jax.random.normal(k_img, (B, IMG_DIM), jnp.float32)      # image features
    params = init_params(k_params)
    folded = fold_params(params)

    out = model_forward(text, img, folded)
    out = jax.block_until_ready(out)

    ref = jax.block_until_ready(reference_forward(text, img, params))
    assert out.shape == (B, OUT_DIM), out.shape
    # bf16 weight/activation streaming (f32 accumulation) -> relaxed tolerance.
    np.testing.assert_allclose(np.asarray(out), np.asarray(ref), rtol=5e-2, atol=5e-2)

    print("KERNEL_OK")
</pallas_src>

<mosaic_0001>
module attributes {stable_mosaic.version = 11 : i64} {
  func.func @model_kernel(%arg0: i32, %arg1: memref<8x768xbf16, #tpu.memory_space<vmem>>, %arg2: memref<8x2048xbf16, #tpu.memory_space<vmem>>, %arg3: memref<2048x768xbf16, #tpu.memory_space<vmem>>, %arg4: memref<1x768xf32, #tpu.memory_space<vmem>>, %arg5: memref<768x768xbf16, #tpu.memory_space<vmem>>, %arg6: memref<768x768xbf16, #tpu.memory_space<vmem>>, %arg7: memref<1x768xf32, #tpu.memory_space<vmem>>, %arg8: memref<768x128xbf16, #tpu.memory_space<vmem>>, %arg9: memref<1x128xf32, #tpu.memory_space<vmem>>, %arg10: memref<8x128xf32, #tpu.memory_space<vmem>>) attributes {dimension_semantics = [#tpu.dimension_semantics<parallel>], iteration_bounds = array<i64: 1>, scalar_prefetch = 0 : i64, scratch_operands = 0 : i64, tpu.core_type = #tpu.core_type<tc>, window_params = [{transform_indices = @transform_0, window_bounds = array<i64: 8, 768>}, {transform_indices = @transform_1, window_bounds = array<i64: 8, 2048>}, {pipeline_mode = #tpu.pipeline_mode<synchronous>, transform_indices = @transform_2, window_bounds = array<i64: 2048, 768>}, {pipeline_mode = #tpu.pipeline_mode<synchronous>, transform_indices = @transform_3, window_bounds = array<i64: 1, 768>}, {pipeline_mode = #tpu.pipeline_mode<synchronous>, transform_indices = @transform_4, window_bounds = array<i64: 768, 768>}, {pipeline_mode = #tpu.pipeline_mode<synchronous>, transform_indices = @transform_5, window_bounds = array<i64: 768, 768>}, {pipeline_mode = #tpu.pipeline_mode<synchronous>, transform_indices = @transform_6, window_bounds = array<i64: 1, 768>}, {pipeline_mode = #tpu.pipeline_mode<synchronous>, transform_indices = @transform_7, window_bounds = array<i64: 768, 128>}, {pipeline_mode = #tpu.pipeline_mode<synchronous>, transform_indices = @transform_8, window_bounds = array<i64: 1, 128>}, {transform_indices = @transform_9, window_bounds = array<i64: 8, 128>}]} {
    %c0 = arith.constant 0 : index
    %c0_0 = arith.constant 0 : index
    %0 = vector.load %arg2[%c0, %c0_0] : memref<8x2048xbf16, #tpu.memory_space<vmem>>, vector<8x2048xbf16>
    %c0_1 = arith.constant 0 : index
    %c0_2 = arith.constant 0 : index
    %1 = vector.load %arg3[%c0_1, %c0_2] : memref<2048x768xbf16, #tpu.memory_space<vmem>>, vector<2048x768xbf16>
    %cst = arith.constant dense<0.000000e+00> : vector<8x768xf32>
    %2 = tpu.matmul %0, %1, %cst {dimension_numbers = #tpu.dot_dimension_numbers<[1], [0], [0], [1], [0, 0, 1, 1], [], []>} : vector<8x2048xbf16>, vector<2048x768xbf16>, vector<8x768xf32> -> vector<8x768xf32>
    %c0_3 = arith.constant 0 : index
    %c0_4 = arith.constant 0 : index
    %3 = vector.load %arg4[%c0_3, %c0_4] : memref<1x768xf32, #tpu.memory_space<vmem>>, vector<1x768xf32>
    %4 = vector.broadcast %3 : vector<1x768xf32> to vector<8x768xf32>
    %5 = arith.addf %2, %4 : vector<8x768xf32>
    %cst_5 = arith.constant 0.000000e+00 : f32
    %6 = vector.broadcast %cst_5 : f32 to vector<8x768xf32>
    %7 = arith.maximumf %5, %6 : vector<8x768xf32>
    %8 = arith.truncf %7 : vector<8x768xf32> to vector<8x768xbf16>
    %c0_6 = arith.constant 0 : index
    %c0_7 = arith.constant 0 : index
    %9 = vector.load %arg5[%c0_6, %c0_7] : memref<768x768xbf16, #tpu.memory_space<vmem>>, vector<768x768xbf16>
    %cst_8 = arith.constant dense<0.000000e+00> : vector<8x768xf32>
    %10 = tpu.matmul %8, %9, %cst_8 {dimension_numbers = #tpu.dot_dimension_numbers<[1], [0], [0], [1], [0, 0, 1, 1], [], []>} : vector<8x768xbf16>, vector<768x768xbf16>, vector<8x768xf32> -> vector<8x768xf32>
    %c0_9 = arith.constant 0 : index
    %c0_10 = arith.constant 0 : index
    %11 = vector.load %arg1[%c0_9, %c0_10] : memref<8x768xbf16, #tpu.memory_space<vmem>>, vector<8x768xbf16>
    %c0_11 = arith.constant 0 : index
    %c0_12 = arith.constant 0 : index
    %12 = vector.load %arg6[%c0_11, %c0_12] : memref<768x768xbf16, #tpu.memory_space<vmem>>, vector<768x768xbf16>
    %cst_13 = arith.constant dense<0.000000e+00> : vector<8x768xf32>
    %13 = tpu.matmul %11, %12, %cst_13 {dimension_numbers = #tpu.dot_dimension_numbers<[1], [0], [0], [1], [0, 0, 1, 1], [], []>} : vector<8x768xbf16>, vector<768x768xbf16>, vector<8x768xf32> -> vector<8x768xf32>
    %14 = arith.addf %10, %13 : vector<8x768xf32>
    %c0_14 = arith.constant 0 : index
    %c0_15 = arith.constant 0 : index
    %15 = vector.load %arg7[%c0_14, %c0_15] : memref<1x768xf32, #tpu.memory_space<vmem>>, vector<1x768xf32>
    %16 = vector.broadcast %15 : vector<1x768xf32> to vector<8x768xf32>
    %17 = arith.addf %14, %16 : vector<8x768xf32>
    %cst_16 = arith.constant 0.000000e+00 : f32
    %18 = vector.broadcast %cst_16 : f32 to vector<8x768xf32>
    %19 = arith.maximumf %17, %18 : vector<8x768xf32>
    %20 = arith.truncf %19 : vector<8x768xf32> to vector<8x768xbf16>
    %c0_17 = arith.constant 0 : index
    %c0_18 = arith.constant 0 : index
    %21 = vector.load %arg8[%c0_17, %c0_18] : memref<768x128xbf16, #tpu.memory_space<vmem>>, vector<768x128xbf16>
    %cst_19 = arith.constant dense<0.000000e+00> : vector<8x128xf32>
    %22 = tpu.matmul %20, %21, %cst_19 {dimension_numbers = #tpu.dot_dimension_numbers<[1], [0], [0], [1], [0, 0, 1, 1], [], []>} : vector<8x768xbf16>, vector<768x128xbf16>, vector<8x128xf32> -> vector<8x128xf32>
    %c0_20 = arith.constant 0 : index
    %c0_21 = arith.constant 0 : index
    %23 = vector.load %arg9[%c0_20, %c0_21] : memref<1x128xf32, #tpu.memory_space<vmem>>, vector<1x128xf32>
    %24 = vector.broadcast %23 : vector<1x128xf32> to vector<8x128xf32>
    %25 = arith.addf %22, %24 : vector<8x128xf32>
    %c0_22 = arith.constant 0 : index
    %c0_23 = arith.constant 0 : index
    %26 = vector.load %arg10[%c0_22, %c0_23] : memref<8x128xf32, #tpu.memory_space<vmem>>, vector<8x128xf32>
    tpu.vector_store %arg10[%c0_22, %c0_23], %25 {strides = array<i32>} : memref<8x128xf32, #tpu.memory_space<vmem>>, vector<8x128xf32>,
    return
  }
  func.func @transform_0(%arg0: i32) -> (i32, i32) {
    %c0_i32 = arith.constant 0 : i32
    %c0_i32_0 = arith.constant 0 : i32
    return %arg0, %c0_i32 : i32, i32
  }
  func.func @transform_1(%arg0: i32) -> (i32, i32) {
    %c0_i32 = arith.constant 0 : i32
    %c0_i32_0 = arith.constant 0 : i32
    return %arg0, %c0_i32 : i32, i32
  }
  func.func @transform_2(%arg0: i32) -> (i32, i32) {
    %c0_i32 = arith.constant 0 : i32
    %c0_i32_0 = arith.constant 0 : i32
    %c0_i32_1 = arith.constant 0 : i32
    return %c0_i32, %c0_i32_0 : i32, i32
  }
  func.func @transform_3(%arg0: i32) -> (i32, i32) {
    %c0_i32 = arith.constant 0 : i32
    %c0_i32_0 = arith.constant 0 : i32
    %c0_i32_1 = arith.constant 0 : i32
    return %c0_i32, %c0_i32_0 : i32, i32
  }
  func.func @transform_4(%arg0: i32) -> (i32, i32) {
    %c0_i32 = arith.constant 0 : i32
    %c0_i32_0 = arith.constant 0 : i32
    %c0_i32_1 = arith.constant 0 : i32
    return %c0_i32, %c0_i32_0 : i32, i32
  }
  func.func @transform_5(%arg0: i32) -> (i32, i32) {
    %c0_i32 = arith.constant 0 : i32
    %c0_i32_0 = arith.constant 0 : i32
    %c0_i32_1 = arith.constant 0 : i32
    return %c0_i32, %c0_i32_0 : i32, i32
  }
  func.func @transform_6(%arg0: i32) -> (i32, i32) {
    %c0_i32 = arith.constant 0 : i32
    %c0_i32_0 = arith.constant 0 : i32
    %c0_i32_1 = arith.constant 0 : i32
    return %c0_i32, %c0_i32_0 : i32, i32
  }
  func.func @transform_7(%arg0: i32) -> (i32, i32) {
    %c0_i32 = arith.constant 0 : i32
    %c0_i32_0 = arith.constant 0 : i32
    %c0_i32_1 = arith.constant 0 : i32
    return %c0_i32, %c0_i32_0 : i32, i32
  }
  func.func @transform_8(%arg0: i32) -> (i32, i32) {
    %c0_i32 = arith.constant 0 : i32
    %c0_i32_0 = arith.constant 0 : i32
    %c0_i32_1 = arith.constant 0 : i32
    return %c0_i32, %c0_i32_0 : i32, i32
  }
  func.func @transform_9(%arg0: i32) -> (i32, i32) {
    %c0_i32 = arith.constant 0 : i32
    %c0_i32_0 = arith.constant 0 : i32
    return %arg0, %c0_i32 : i32, i32
  }
}

</mosaic_0001>

<bundles_post_ra>
// kernel: tpu_custom_call.1
= control target key start
LH: loop header
LB: loop body
LE: loop exit
PB: predicated region body
PF: predicated region fallthrough
CT: control target
= control target key end

     0   :  { %14 = vsyncpa [#allocation3], 0  ;;  %s15087_s0 = inlined_call_operand.hbm [shape: bf16[8,768], index: 0, kind: input, shape index: {}]   ;;  %s15088_s1 = inlined_call_operand.hbm [shape: bf16[8,2048], index: 1, kind: input, shape index: {}]   ;;  %s15089_s2 = inlined_call_operand.hbm [shape: bf16[2048,768], index: 2, kind: input, shape index: {}]   ;;  %s15090_s3 = inlined_call_operand.hbm [shape: f32[1,768], index: 3, kind: input, shape index: {}]   ;;  %s15091_s4 = inlined_call_operand.hbm [shape: bf16[768,768], index: 4, kind: input, shape index: {}]   ;;  %s15092_s5 = inlined_call_operand.hbm [shape: bf16[768,768], index: 5, kind: input, shape index: {}]   ;;  %s15093_s6 = inlined_call_operand.hbm [shape: f32[1,768], index: 6, kind: input, shape index: {}]   ;;  %s15094_s7 = inlined_call_operand.hbm [shape: bf16[768,128], index: 7, kind: input, shape index: {}]   ;;  %s15095_s8 = inlined_call_operand.hbm [shape: f32[1,128], index: 8, kind: input, shape index: {}]   ;;  %s15096_s9 = inlined_call_operand.hbm [shape: f32[8,128], index: 9, kind: output, shape index: {}]  }
   0x1   :  { %15 = vsyncpa [#allocation6], 0 }
   0x2   :  { %16 = vsyncpa [#allocation9], 0 }
   0x3   :  { %17 = vsyncpa [#allocation12], 0 }
   0x4   :  { %18 = vsyncpa [#allocation15], 0 }
   0x5   :  { %19 = vsyncpa [#allocation4], 0  ;;  %s14548_s30 = smov [#allocation5]   ;;  %s14549_s11 = smov [#allocation8]  }
   0x6   :  { %s36_s10 = sshll.u32 %s14548_s30, 4  ;;  %s58_s12 = sshll.u32 %s14549_s11, 4  ;;  %s37_s10 = int_to_ptr.vmem [resolvable:$true] %s36_s10  ;;  %s59_s12 = int_to_ptr.vmem [resolvable:$true] %s58_s12 }
   0x7   :  { %s14316_s15 = scalar_lea.hbm %s15088_s1, 1024 }
   0x8   :  { %p14317_p0 = scmp.ne.s32.totalorder %s15088_s1, %s14316_s15  ;;  %p14320_p1 = scmp.lt.u32.totalorder %s14316_s15, %s15088_s1 }
   0xa   :  { %p14322_p2 = pnand %p14320_p1, %p14317_p0 }
   0xc   :  { %14325 = shalt.err (!%p14322_p2)
}
   0xd   :  { %s14326_s20 = scalar_lea.vmem %s37_s10, 1024  ;;  %p14331_p4 = scmp.lt.s32.totalorder %s37_s10, %s37_s10 }
   0xe   :  { %p14327_p3 = scmp.ne.s32.totalorder %s37_s10, %s14326_s20  ;;  %p14332_p5 = scmp.lt.s32.totalorder %s14326_s20, %s14326_s20 }
  0x10   :  { %p14333_p6 = por %p14332_p5, %p14331_p4 }
  0x12   :  { %p14334_p7 = pnand %p14333_p6, %p14327_p3 }
  0x14   :  { %14337 = shalt.err (!%p14334_p7)
}
  0x15   :  { %39 = dma.hbm_to_vmem [thread:$0]  %s15088_s1, 1024, %s37_s10, [#allocation6]  }
  0x16   :  { %s14338_s25 = scalar_lea.hbm %s15090_s3, 96 }
  0x17   :  { %p14339_p8 = scmp.ne.s32.totalorder %s15090_s3, %s14338_s25  ;;  %p14342_p9 = scmp.lt.u32.totalorder %s14338_s25, %s15090_s3 }
  0x19   :  { %p14344_p10 = pnand %p14342_p9, %p14339_p8 }
  0x1b   :  { %14347 = shalt.err (!%p14344_p10)
}
  0x1c   :  { %s14348_s30 = scalar_lea.vmem %s59_s12, 96  ;;  %p14353_p12 = scmp.lt.s32.totalorder %s59_s12, %s59_s12 }
  0x1d   :  { %p14349_p11 = scmp.ne.s32.totalorder %s59_s12, %s14348_s30  ;;  %p14354_p13 = scmp.lt.s32.totalorder %s14348_s30, %s14348_s30 }
  0x1f   :  { %p14355_p0 = por %p14354_p13, %p14353_p12 }
  0x21   :  { %p14356_p1 = pnand %p14355_p0, %p14349_p11 }
  0x23   :  { %14359 = shalt.err (!%p14356_p1)
}
  0x24   :  { %61 = dma.hbm_to_vmem [thread:$0]  %s15090_s3, 96, %s59_s12, [#allocation9]  }
  0x25   :  { %s14550_s11 = smov [#allocation11]   ;;  %s14551_s14 = smov [#allocation14]  }
  0x26   :  { %s79_s13 = sshll.u32 %s14550_s11, 4  ;;  %s101_s15 = sshll.u32 %s14551_s14, 4  ;;  %s80_s13 = int_to_ptr.vmem [resolvable:$true] %s79_s13  ;;  %s14636_s15 = int_to_ptr.vmem [resolvable:$true] %s101_s15 }
  0x27   :  { %s14360_s18 = scalar_lea.hbm %s15092_s5, 36864 }
  0x28   :  { %p14361_p2 = scmp.ne.s32.totalorder %s15092_s5, %s14360_s18  ;;  %p14364_p3 = scmp.lt.u32.totalorder %s14360_s18, %s15092_s5 }
  0x2a   :  { %p14366_p4 = pnand %p14364_p3, %p14361_p2 }
  0x2c   :  { %14369 = shalt.err (!%p14366_p4)
}
  0x2d   :  { %s14370_s3 = scalar_lea.vmem %s80_s13, 36864  ;;  %p14375_p6 = scmp.lt.s32.totalorder %s80_s13, %s80_s13 }
  0x2e   :  { %p14371_p5 = scmp.ne.s32.totalorder %s80_s13, %s14370_s3  ;;  %p14376_p7 = scmp.lt.s32.totalorder %s14370_s3, %s14370_s3 }
  0x30   :  { %p14377_p8 = por %p14376_p7, %p14375_p6 }
  0x32   :  { %p14378_p9 = pnand %p14377_p8, %p14371_p5 }
  0x34   :  { %14381 = shalt.err (!%p14378_p9)
}
  0x35   :  { %s14552_s12 = smov 384   ;;  %s14553_s23 = smov 24  }
  0x36   :  { %85 = dma.hbm_to_vmem [thread:$0]  %s15092_s5, 36864, %s80_s13, [#allocation12], %s14552_s12, %s14552_s12, %s14553_s23  }
  0x37   :  { %s14382_s28 = scalar_lea.hbm %s15094_s7, 6144 }
  0x38   :  { %p14383_p10 = scmp.ne.s32.totalorder %s15094_s7, %s14382_s28  ;;  %p14386_p11 = scmp.lt.u32.totalorder %s14382_s28, %s15094_s7 }
  0x3a   :  { %p14388_p12 = pnand %p14386_p11, %p14383_p10 }
  0x3c   :  { %14391 = shalt.err (!%p14388_p12)
}
  0x3d   :  { %s14392_s11 = scalar_lea.vmem %s14636_s15, 6144  ;;  %p14397_p0 = scmp.lt.s32.totalorder %s14636_s15, %s14636_s15 }
  0x3e   :  { %p14393_p13 = scmp.ne.s32.totalorder %s14636_s15, %s14392_s11  ;;  %p14398_p1 = scmp.lt.s32.totalorder %s14392_s11, %s14392_s11 }
  0x40   :  { %p14399_p2 = por %p14398_p1, %p14397_p0 }
  0x42   :  { %p14400_p3 = pnand %p14399_p2, %p14393_p13 }
  0x44   :  { %14403 = shalt.err (!%p14400_p3)
}
  0x45   :  { %s14554_s5 = smov 64   ;;  %s14555_s13 = smov 4  }
  0x46   :  { %107 = dma.hbm_to_vmem [thread:$0]  %s15094_s7, 6144, %s14636_s15, [#allocation15], %s14554_s5, %s14554_s5, %s14555_s13  }
  0x47   :  { %s14556_s17 = smov [#allocation2]   ;;  %s14557_s19 = smov [#allocation7]  }
  0x48   :  { %s26_s18 = sshll.u32 %s14556_s17, 4  ;;  %s45_s20 = sshll.u32 %s14557_s19, 4  ;;  %s27_s18 = int_to_ptr.vmem [resolvable:$true] %s26_s18  ;;  %s14670_s20 = int_to_ptr.vmem [resolvable:$true] %s45_s20 }
  0x49   :  { %s14404_s3 = scalar_lea.hbm %s15087_s0, 384 }
  0x4a   :  { %p14405_p4 = scmp.ne.s32.totalorder %s15087_s0, %s14404_s3  ;;  %p14408_p5 = scmp.lt.u32.totalorder %s14404_s3, %s15087_s0 }
  0x4c   :  { %p14410_p6 = pnand %p14408_p5, %p14405_p4 }
  0x4e   :  { %14413 = shalt.err (!%p14410_p6)
}
  0x4f   :  { %s14414_s7 = scalar_lea.vmem %s27_s18, 384  ;;  %p14419_p8 = scmp.lt.s32.totalorder %s27_s18, %s27_s18 }
  0x50   :  { %p14415_p7 = scmp.ne.s32.totalorder %s27_s18, %s14414_s7  ;;  %p14420_p9 = scmp.lt.s32.totalorder %s14414_s7, %s14414_s7 }
  0x52   :  { %p14421_p10 = por %p14420_p9, %p14419_p8 }
  0x54   :  { %p14422_p11 = pnand %p14421_p10, %p14415_p7 }
  0x56   :  { %14425 = shalt.err (!%p14422_p11)
}
  0x57   :  { %29 = dma.hbm_to_vmem [thread:$0]  %s15087_s0, 384, %s27_s18, [#allocation3]  }
  0x58   :  { %s14426_s1 = scalar_lea.hbm %s15089_s2, 98304 }
  0x59   :  { %p14427_p12 = scmp.ne.s32.totalorder %s15089_s2, %s14426_s1  ;;  %p14430_p13 = scmp.lt.u32.totalorder %s14426_s1, %s15089_s2 }
  0x5b   :  { %p14432_p0 = pnand %p14430_p13, %p14427_p12 }
  0x5d   :  { %14435 = shalt.err (!%p14432_p0)
}
  0x5e   :  { %s14436_s14 = scalar_lea.vmem %s14670_s20, 98304  ;;  %p14441_p2 = scmp.lt.s32.totalorder %s14670_s20, %s14670_s20 }
  0x5f   :  { %p14437_p1 = scmp.ne.s32.totalorder %s14670_s20, %s14436_s14  ;;  %p14442_p3 = scmp.lt.s32.totalorder %s14436_s14, %s14436_s14 }
  0x61   :  { %p14443_p4 = por %p14442_p3, %p14441_p2 }
  0x63   :  { %p14444_p5 = pnand %p14443_p4, %p14437_p1 }
  0x65   :  { %14447 = shalt.err (!%p14444_p5)
}
  0x66   :  { %51 = dma.hbm_to_vmem [thread:$0]  %s15089_s2, 98304, %s14670_s20, [#allocation6], %s14552_s12, %s14552_s12, %s14553_s23  }
  0x67   :  { %s14558_s17 = smov [#allocation10]   ;;  %s14559_s19 = smov [#allocation13]  }
  0x68   :  { %s67_s18 = sshll.u32 %s14558_s17, 4  ;;  %s92_s21 = sshll.u32 %s14559_s19, 4  ;;  %s68_s18 = int_to_ptr.vmem [resolvable:$true] %s67_s18  ;;  %s93_s21 = int_to_ptr.vmem [resolvable:$true] %s92_s21 }
  0x69   :  { %s14448_s24 = scalar_lea.hbm %s15091_s4, 36864 }
  0x6a   :  { %p14449_p6 = scmp.ne.s32.totalorder %s15091_s4, %s14448_s24  ;;  %p14452_p7 = scmp.lt.u32.totalorder %s14448_s24, %s15091_s4 }
  0x6c   :  { %p14454_p8 = pnand %p14452_p7, %p14449_p6 }
  0x6e   :  { %14457 = shalt.err (!%p14454_p8)
}
  0x6f   :  { %s14458_s2 = scalar_lea.vmem %s68_s18, 36864  ;;  %p14463_p10 = scmp.lt.s32.totalorder %s68_s18, %s68_s18 }
  0x70   :  { %p14459_p9 = scmp.ne.s32.totalorder %s68_s18, %s14458_s2  ;;  %p14464_p11 = scmp.lt.s32.totalorder %s14458_s2, %s14458_s2 }
  0x72   :  { %p14465_p12 = por %p14464_p11, %p14463_p10 }
  0x74   :  { %p14466_p13 = pnand %p14465_p12, %p14459_p9 }
  0x76   :  { %14469 = shalt.err (!%p14466_p13)
}
  0x77   :  { %73 = dma.hbm_to_vmem [thread:$0]  %s15091_s4, 36864, %s68_s18, [#allocation9], %s14552_s12, %s14552_s12, %s14553_s23  }
  0x78   :  { %s14470_s30 = scalar_lea.hbm %s15093_s6, 96 }
  0x79   :  { %p14471_p0 = scmp.ne.s32.totalorder %s15093_s6, %s14470_s30  ;;  %p14474_p1 = scmp.lt.u32.totalorder %s14470_s30, %s15093_s6 }
  0x7b   :  { %p14476_p2 = pnand %p14474_p1, %p14471_p0 }
  0x7d   :  { %14479 = shalt.err (!%p14476_p2)
}
  0x7e   :  { %s14480_s13 = scalar_lea.vmem %s93_s21, 96  ;;  %p14485_p4 = scmp.lt.s32.totalorder %s93_s21, %s93_s21 }
  0x7f   :  { %p14481_p3 = scmp.ne.s32.totalorder %s93_s21, %s14480_s13  ;;  %p14486_p5 = scmp.lt.s32.totalorder %s14480_s13, %s14480_s13 }
  0x81   :  { %p14487_p6 = por %p14486_p5, %p14485_p4 }
  0x83   :  { %p14488_p7 = pnand %p14487_p6, %p14481_p3 }
  0x85   :  { %14491 = shalt.err (!%p14488_p7)
}
  0x86   :  { %95 = dma.hbm_to_vmem [thread:$0]  %s15093_s6, 96, %s93_s21, [#allocation12]  }
  0x87   :  { %s14560_s23 = smov [#allocation16]   ;;  %s14492_s17 = scalar_lea.hbm %s15095_s8, 16 }
  0x88   :  { %s114_s14 = sshll.u32 %s14560_s23, 4  ;;  %p14493_p8 = scmp.ne.s32.totalorder %s15095_s8, %s14492_s17  ;;  %s115_s14 = int_to_ptr.vmem [resolvable:$true] %s114_s14 }
  0x89   :  { %p14496_p9 = scmp.lt.u32.totalorder %s14492_s17, %s15095_s8 }
  0x8b   :  { %p14498_p10 = pnand %p14496_p9, %p14493_p8 }
  0x8d   :  { %14501 = shalt.err (!%p14498_p10)
}
  0x8e   :  { %s14502_s24 = scalar_lea.vmem %s115_s14, 16  ;;  %s14506_s6 = scalar_lea.vmem %s115_s14, 32 }
  0x8f   :  { %p14503_p11 = scmp.ne.s32.totalorder %s115_s14, %s14502_s24  ;;  %p14507_p12 = scmp.lt.s32.totalorder %s115_s14, %s115_s14 }
  0x90   :  { %p14508_p13 = scmp.lt.s32.totalorder %s14506_s6, %s14502_s24 }
  0x92   :  { %p14509_p0 = por %p14508_p13, %p14507_p12 }
  0x94   :  { %p14510_p1 = pnand %p14509_p0, %p14503_p11 }
  0x96   :  { %14513 = shalt.err (!%p14510_p1)
}
  0x97   :  { %117 = dma.hbm_to_vmem [thread:$0]  %s15095_s8, 16, %s115_s14, [#allocation15]  }
  0x98   :  { %14536 = dma.done.wait [#allocation3], 384  }
  0x99   :  { %14537 = vsyncadd [#allocation3], 4294966912 }
  0x9a   :  { %14538 = dma.done.wait [#allocation6], 99328  }
  0x9b   :  { %14539 = vsyncadd [#allocation6], 4294867968 }
  0x9c   :  { %14540 = dma.done.wait [#allocation9], 36960  }
  0x9d   :  { %14541 = vsyncadd [#allocation9], 4294930336 }
  0x9e   :  { %14542 = dma.done.wait [#allocation12], 36960  }
  0x9f   :  { %14543 = vsyncadd [#allocation12], 4294930336 }
  0xa0   :  { %14544 = dma.done.wait [#allocation15], 6160  }
  0xa1   :  { %14545 = vsyncadd [#allocation15], 4294961136  ;;  %v12230_v0 = vld [vmem:[#allocation7 + $0x4] ss:$24 sps:$4 sm:$0xff]   ;;  %v12234_v2 = vld [vmem:[#allocation7] ss:$24 sps:$4 sm:$0xff]  }
  0xa2   :  { %v12232_v1 = vld [vmem:[#allocation7 + $0xc] ss:$24 sps:$4 sm:$0xff]   ;;  %4850 = vmatprep.subr.bf16.mxu0 %v12230_v0  ;;  %v12235_v3 = vld [vmem:[#allocation7 + $0x8] ss:$24 sps:$4 sm:$0xff]   ;;  %v12238_v5 = vld [vmem:[#allocation7 + $0x3c] ss:$24 sps:$4 sm:$0xff]  }
  0xa3   :  { %5178 = vmatprep.subr.bf16.mxu1 %v12232_v1  ;;  %v12236_v4 = vld [vmem:[#allocation7 + $0x34] ss:$24 sps:$4 sm:$0xff]   ;;  %4851 = vmatpush1.bf16.msra.mxu0 %v12234_v2  ;;  %v12240_v6 = vld [vmem:[#allocation7 + $0x30] ss:$24 sps:$4 sm:$0xff]   ;;  %v12242_v8 = vld [vmem:[#allocation7 + $0x64] ss:$24 sps:$4 sm:$0xff]  }
  0xa4   :  { %5179 = vmatpush1.bf16.msra.mxu1 %v12235_v3  ;;  %4852 = vmatprep.subr.bf16.mxu0 %v12236_v4  ;;  %v12241_v7 = vld [vmem:[#allocation7 + $0x38] ss:$24 sps:$4 sm:$0xff]   ;;  %v12244_v9 = vld [vmem:[#allocation7 + $0x6c] ss:$24 sps:$4 sm:$0xff]   ;;  %v12247_v11 = vld [vmem:[#allocation7 + $0x68] ss:$24 sps:$4 sm:$0xff]  }
  0xa5   :  { %5180 = vmatprep.subr.bf16.mxu1 %v12238_v5  ;;  %v12246_v10 = vld [vmem:[#allocation7 + $0x60] ss:$24 sps:$4 sm:$0xff]   ;;  %v12248_v12 = vld [vmem:[#allocation7 + $0x94] ss:$24 sps:$4 sm:$0xff]   ;;  %v12252_v14 = vld [vmem:[#allocation7 + $0x90] ss:$24 sps:$4 sm:$0xff]  }
  0xa6   :  { %v12250_v13 = vld [vmem:[#allocation7 + $0x9c] ss:$24 sps:$4 sm:$0xff]   ;;  %v12253_v15 = vld [vmem:[#allocation7 + $0x98] ss:$24 sps:$4 sm:$0xff]   ;;  %v12256_v17 = vld [vmem:[#allocation7 + $0xcc] ss:$24 sps:$4 sm:$0xff]  }
  0xa7   :  { %4853 = vmatpush1.bf16.msra.mxu0 %v12240_v6  ;;  %v12254_v16 = vld [vmem:[#allocation7 + $0xc4] ss:$24 sps:$4 sm:$0xff]   ;;  %v12258_v18 = vld [vmem:[#allocation7 + $0xc0] ss:$24 sps:$4 sm:$0xff]   ;;  %v12260_v20 = vld [vmem:[#allocation7 + $0xf4] ss:$24 sps:$4 sm:$0xff]  }
  0xa8   :  { %5181 = vmatpush1.bf16.msra.mxu1 %v12241_v7  ;;  %4854 = vmatprep.subr.bf16.mxu0 %v12242_v8  ;;  %v12259_v19 = vld [vmem:[#allocation7 + $0xc8] ss:$24 sps:$4 sm:$0xff]   ;;  %v12262_v21 = vld [vmem:[#allocation7 + $0xfc] ss:$24 sps:$4 sm:$0xff]   ;;  %v12265_v23 = vld [vmem:[#allocation7 + $0xf8] ss:$24 sps:$4 sm:$0xff]  }
  0xa9   :  { %5182 = vmatprep.subr.bf16.mxu1 %v12244_v9  ;;  %v12264_v22 = vld [vmem:[#allocation7 + $0xf0] ss:$24 sps:$4 sm:$0xff]   ;;  %v12266_v24 = vld [vmem:[#allocation7 + $0x124] ss:$24 sps:$4 sm:$0xff]   ;;  %v12270_v26 = vld [vmem:[#allocation7 + $0x120] ss:$24 sps:$4 sm:$0xff]  }
  0xaa   :  { %v12268_v25 = vld [vmem:[#allocation7 + $0x12c] ss:$24 sps:$4 sm:$0xff]   ;;  %v12271_v27 = vld [vmem:[#allocation7 + $0x128] ss:$24 sps:$4 sm:$0xff]   ;;  %v12274_v29 = vld [vmem:[#allocation7 + $0x15c] ss:$24 sps:$4 sm:$0xff]  }
  0xab   :  { %4855 = vmatpush1.bf16.msra.mxu0 %v12246_v10  ;;  %v12272_v28 = vld [vmem:[#allocation7 + $0x154] ss:$24 sps:$4 sm:$0xff]   ;;  %v12276_v30 = vld [vmem:[#allocation7 + $0x150] ss:$24 sps:$4 sm:$0xff]   ;;  %v12278_v32 = vld [vmem:[#allocation7 + $0x184] ss:$24 sps:$4 sm:$0xff]  }
  0xac   :  { %5183 = vmatpush1.bf16.msra.mxu1 %v12247_v11  ;;  %4856 = vmatprep.subr.bf16.mxu0 %v12248_v12  ;;  %v12277_v31 = vld [vmem:[#allocation7 + $0x158] ss:$24 sps:$4 sm:$0xff]   ;;  %v12280_v33 = vld [vmem:[#allocation7 + $0x18c] ss:$24 sps:$4 sm:$0xff]   ;;  %v12283_v35 = vld [vmem:[#allocation7 + $0x188] ss:$24 sps:$4 sm:$0xff]  }
  0xad   :  { %5184 = vmatprep.subr.bf16.mxu1 %v12250_v13  ;;  %v12282_v34 = vld [vmem:[#allocation7 + $0x180] ss:$24 sps:$4 sm:$0xff]   ;;  %v12284_v36 = vld [vmem:[#allocation7 + $0x1b4] ss:$24 sps:$4 sm:$0xff]   ;;  %v12288_v38 = vld [vmem:[#allocation7 + $0x1b0] ss:$24 sps:$4 sm:$0xff]  }
  0xae   :  { %v12286_v37 = vld [vmem:[#allocation7 + $0x1bc] ss:$24 sps:$4 sm:$0xff]   ;;  %v12289_v39 = vld [vmem:[#allocation7 + $0x1b8] ss:$24 sps:$4 sm:$0xff]   ;;  %v12292_v41 = vld [vmem:[#allocation7 + $0x1ec] ss:$24 sps:$4 sm:$0xff]  }
  0xaf   :  { %4857 = vmatpush1.bf16.msra.mxu0 %v12252_v14  ;;  %v12290_v40 = vld [vmem:[#allocation7 + $0x1e4] ss:$24 sps:$4 sm:$0xff]   ;;  %v12294_v42 = vld [vmem:[#allocation7 + $0x1e0] ss:$24 sps:$4 sm:$0xff]   ;;  %v12296_v44 = vld [vmem:[#allocation7 + $0x214] ss:$24 sps:$4 sm:$0xff]  }
  0xb0   :  { %5185 = vmatpush1.bf16.msra.mxu1 %v12253_v15  ;;  %4858 = vmatprep.subr.bf16.mxu0 %v12254_v16  ;;  %v12295_v43 = vld [vmem:[#allocation7 + $0x1e8] ss:$24 sps:$4 sm:$0xff]   ;;  %v12298_v45 = vld [vmem:[#allocation7 + $0x21c] ss:$24 sps:$4 sm:$0xff]   ;;  %v12301_v49 = vld [vmem:[#allocation7 + $0x218] ss:$24 sps:$4 sm:$0xff]  }
  0xb1   :  { %5186 = vmatprep.subr.bf16.mxu1 %v12256_v17  ;;  %v146_v46 = vld [vmem:[#allocation5] sm:$0xff]  ;;  %v12300_v47 = vld [vmem:[#allocation7 + $0x210] ss:$24 sps:$4 sm:$0xff]   ;;  %v12308_v54 = vld [vmem:[#allocation7 + $0x274] ss:$24 sps:$4 sm:$0xff]   ;;  %s14561_s8 = smov [#allocation17]  }
  0xb2   :  { %v14743_v48 = vcombine.high %v146_v46, %v146_v46  ;;  %v12302_v50 = vld [vmem:[#allocation7 + $0x244] ss:$24 sps:$4 sm:$0xff]   ;;  %v12306_v52 = vld [vmem:[#allocation7 + $0x240] ss:$24 sps:$4 sm:$0xff]   ;;  %v12312_v56 = vld [vmem:[#allocation7 + $0x270] ss:$24 sps:$4 sm:$0xff]   ;;  %v14747_v5 = vcombine.low %v146_v46, %v146_v46 }
  0xb3   :  { %4859 = vmatpush1.bf16.msra.mxu0 %v12258_v18  ;;  %v12304_v51 = vld [vmem:[#allocation7 + $0x24c] ss:$24 sps:$4 sm:$0xff]   ;;  %v12307_v53 = vld [vmem:[#allocation7 + $0x248] ss:$24 sps:$4 sm:$0xff]   ;;  %v12310_v55 = vld [vmem:[#allocation7 + $0x27c] ss:$24 sps:$4 sm:$0xff]  }
  0xb4   :  { %5187 = vmatpush1.bf16.msra.mxu1 %v12259_v19  ;;  %4860 = vmatprep.subr.bf16.mxu0 %v12260_v20  ;;  %v12313_v57 = vld [vmem:[#allocation7 + $0x278] ss:$24 sps:$4 sm:$0xff]   ;;  %v12314_v58 = vld [vmem:[#allocation7 + $0x2a4] ss:$24 sps:$4 sm:$0xff]   ;;  %v12319_v61 = vld [vmem:[#allocation7 + $0x2a8] ss:$24 sps:$4 sm:$0xff]  }
  0xb5   :  { %5188 = vmatprep.subr.bf16.mxu1 %v12262_v21  ;;  %4882 = vmatprep.mubr.bf16.mxu0 %v14743_v48  ;;  %v12316_v59 = vld [vmem:[#allocation7 + $0x2ac] ss:$24 sps:$4 sm:$0xff]   ;;  %v12318_v60 = vld [vmem:[#allocation7 + $0x2a0] ss:$24 sps:$4 sm:$0xff]   ;;  %v12322_v63 = vld [vmem:[#allocation7 + $0x2dc] ss:$24 sps:$4 sm:$0xff]  }
  0xb6   :  { %5210 = vmatprep.mubr.bf16.mxu1 %v14743_v48  ;;  %v12320_v62 = vld [vmem:[#allocation7 + $0x2d4] ss:$24 sps:$4 sm:$0xff]   ;;  %v12324_v0 = vld [vmem:[#allocation7 + $0x2d0] ss:$24 sps:$4 sm:$0xff]   ;;  %v12329_v2 = vld [vmem:[#allocation7 + $0x304] ss:$24 sps:$4 sm:$0xff]  }
  0xb7   :  { %4861 = vmatpush1.bf16.msra.mxu0 %v12264_v22  ;;  %v12325_v1 = vld [vmem:[#allocation7 + $0x2d8] ss:$24 sps:$4 sm:$0xff]   ;;  %v12332_v3 = vld [vmem:[#allocation7 + $0x30c] ss:$24 sps:$4 sm:$0xff]   ;;  %v12330_v6 = vld [vmem:[#allocation7 + $0x308] ss:$24 sps:$4 sm:$0xff]  }
  0xb8   :  { %5189 = vmatpush1.bf16.msra.mxu1 %v12265_v23  ;;  %4862 = vmatprep.subr.bf16.mxu0 %v12266_v24  ;;  %v12327_v4 = vld [vmem:[#allocation7 + $0x300] ss:$24 sps:$4 sm:$0xff]   ;;  %v12336_v7 = vld [vmem:[#allocation7 + $0x334] ss:$24 sps:$4 sm:$0xff]   ;;  %v12334_v9 = vld [vmem:[#allocation7 + $0x330] ss:$24 sps:$4 sm:$0xff]  }
  0xb9   :  { %5190 = vmatprep.subr.bf16.mxu1 %v12268_v25  ;;  %v12339_v8 = vld [vmem:[#allocation7 + $0x33c] ss:$24 sps:$4 sm:$0xff]   ;;  %v12337_v10 = vld [vmem:[#allocation7 + $0x338] ss:$24 sps:$4 sm:$0xff]   ;;  %v12345_v12 = vld [vmem:[#allocation7 + $0x36c] ss:$24 sps:$4 sm:$0xff]  }
  0xba   :  { %v12342_v11 = vld [vmem:[#allocation7 + $0x364] ss:$24 sps:$4 sm:$0xff]   ;;  %v12340_v13 = vld [vmem:[#allocation7 + $0x360] ss:$24 sps:$4 sm:$0xff]   ;;  %v12348_v15 = vld [vmem:[#allocation7 + $0x394] ss:$24 sps:$4 sm:$0xff]  }
  0xbb   :  { %4863 = vmatpush1.bf16.msra.mxu0 %v12270_v26  ;;  %v12343_v14 = vld [vmem:[#allocation7 + $0x368] ss:$24 sps:$4 sm:$0xff]   ;;  %v12351_v16 = vld [vmem:[#allocation7 + $0x39c] ss:$24 sps:$4 sm:$0xff]   ;;  %v12349_v18 = vld [vmem:[#allocation7 + $0x398] ss:$24 sps:$4 sm:$0xff]  }
  0xbc   :  { %5191 = vmatpush1.bf16.msra.mxu1 %v12271_v27  ;;  %4864 = vmatprep.subr.bf16.mxu0 %v12272_v28  ;;  %v12346_v17 = vld [vmem:[#allocation7 + $0x390] ss:$24 sps:$4 sm:$0xff]   ;;  %v12354_v19 = vld [vmem:[#allocation7 + $0x3c4] ss:$24 sps:$4 sm:$0xff]   ;;  %v12352_v21 = vld [vmem:[#allocation7 + $0x3c0] ss:$24 sps:$4 sm:$0xff]  }
  0xbd   :  { %5192 = vmatprep.subr.bf16.mxu1 %v12274_v29  ;;  %v12357_v20 = vld [vmem:[#allocation7 + $0x3cc] ss:$24 sps:$4 sm:$0xff]   ;;  %v12355_v22 = vld [vmem:[#allocation7 + $0x3c8] ss:$24 sps:$4 sm:$0xff]   ;;  %v12363_v24 = vld [vmem:[#allocation7 + $0x3fc] ss:$24 sps:$4 sm:$0xff]  }
  0xbe   :  { %v12360_v23 = vld [vmem:[#allocation7 + $0x3f4] ss:$24 sps:$4 sm:$0xff]   ;;  %v12358_v25 = vld [vmem:[#allocation7 + $0x3f0] ss:$24 sps:$4 sm:$0xff]   ;;  %v12366_v27 = vld [vmem:[#allocation7 + $0x424] ss:$24 sps:$4 sm:$0xff]  }
  0xbf   :  { %4865 = vmatpush1.bf16.msra.mxu0 %v12276_v30  ;;  %v12361_v26 = vld [vmem:[#allocation7 + $0x3f8] ss:$24 sps:$4 sm:$0xff]   ;;  %v12369_v28 = vld [vmem:[#allocation7 + $0x42c] ss:$24 sps:$4 sm:$0xff]   ;;  %s10632_s26 = sshll.u32 %s14561_s8, 4  ;;  %s10633_s26 = int_to_ptr.vmem [resolvable:$true] %s10632_s26 }
  0xc0   :  { %5193 = vmatpush1.bf16.msra.mxu1 %v12277_v31  ;;  %4866 = vmatprep.subr.bf16.mxu0 %v12278_v32  ;;  %v14751_v29 = vld [vmem:[#allocation5 + $0x8] sm:$0xff]  ;;  %v12364_v31 = vld [vmem:[#allocation7 + $0x420] ss:$24 sps:$4 sm:$0xff]   ;;  %s14514_s27 = scalar_lea.vmem %s10633_s26, 128  ;;  %p14519_p3 = scmp.lt.s32.totalorder %s10633_s26, %s10633_s26 }
  0xc1   :  { %5194 = vmatprep.subr.bf16.mxu1 %v12280_v33  ;;  %v14755_v30 = vcombine.high %v14751_v29, %v14751_v29  ;;  %v12367_v32 = vld [vmem:[#allocation7 + $0x428] ss:$24 sps:$4 sm:$0xff]   ;;  %v12372_v33 = vld [vmem:[#allocation7 + $0x454] ss:$24 sps:$4 sm:$0xff]   ;;  %p14515_p2 = scmp.ne.s32.totalorder %s10633_s26, %s14514_s27  ;;  %p14520_p4 = scmp.lt.s32.totalorder %s14514_s27, %s14514_s27 }
  0xc2   :  { %v12393_v46 = vld [vmem:[#allocation7 + $0x4ec] ss:$24 sps:$4 sm:$0xff]  }
  0xc3   :  { %4867 = vmatpush1.bf16.msra.mxu0 %v12282_v34  ;;  %v12375_v34 = vld [vmem:[#allocation7 + $0x45c] ss:$24 sps:$4 sm:$0xff]   ;;  %p14521_p5 = por %p14520_p4, %p14519_p3 }
  0xc4   :  { %5195 = vmatpush1.bf16.msra.mxu1 %v12283_v35  ;;  %4868 = vmatprep.subr.bf16.mxu0 %v12284_v36  ;;  %v12370_v35 = vld [vmem:[#allocation7 + $0x450] ss:$24 sps:$4 sm:$0xff]  }
  0xc5   :  { %5196 = vmatprep.subr.bf16.mxu1 %v12286_v37  ;;  %v12373_v36 = vld [vmem:[#allocation7 + $0x458] ss:$24 sps:$4 sm:$0xff]   ;;  %v12378_v37 = vld [vmem:[#allocation7 + $0x484] ss:$24 sps:$4 sm:$0xff]   ;;  %p14522_p6 = pnand %p14521_p5, %p14515_p2 }
  0xc7   :  { %4869 = vmatpush1.bf16.msra.mxu0 %v12288_v38  ;;  %v12381_v38 = vld [vmem:[#allocation7 + $0x48c] ss:$24 sps:$4 sm:$0xff]  }
  0xc8   :  { %5197 = vmatpush1.bf16.msra.mxu1 %v12289_v39  ;;  %4870 = vmatprep.subr.bf16.mxu0 %v12290_v40  ;;  %v12376_v39 = vld [vmem:[#allocation7 + $0x480] ss:$24 sps:$4 sm:$0xff]  }
  0xc9   :  { %5198 = vmatprep.subr.bf16.mxu1 %v12292_v41  ;;  %v12379_v40 = vld [vmem:[#allocation7 + $0x488] ss:$24 sps:$4 sm:$0xff]   ;;  %v12384_v41 = vld [vmem:[#allocation7 + $0x4b4] ss:$24 sps:$4 sm:$0xff]  }
  0xcb   :  { %4871 = vmatpush1.bf16.msra.mxu0 %v12294_v42  ;;  %v12387_v42 = vld [vmem:[#allocation7 + $0x4bc] ss:$24 sps:$4 sm:$0xff]  }
  0xcc   :  { %5199 = vmatpush1.bf16.msra.mxu1 %v12295_v43  ;;  %4872 = vmatprep.subr.bf16.mxu0 %v12296_v44  ;;  %v12382_v43 = vld [vmem:[#allocation7 + $0x4b0] ss:$24 sps:$4 sm:$0xff]  }
  0xcd   :  { %5200 = vmatprep.subr.bf16.mxu1 %v12298_v45  ;;  %v12385_v44 = vld [vmem:[#allocation7 + $0x4b8] ss:$24 sps:$4 sm:$0xff]   ;;  %v12390_v45 = vld [vmem:[#allocation7 + $0x4e4] ss:$24 sps:$4 sm:$0xff]  }
  0xcf   :  { %4873 = vmatpush1.bf16.msra.mxu0 %v12300_v47  ;;  %v12388_v47 = vld [vmem:[#allocation7 + $0x4e0] ss:$24 sps:$4 sm:$0xff]  }
  0xd0   :  { %5201 = vmatpush1.bf16.msra.mxu1 %v12301_v49  ;;  %4874 = vmatprep.subr.bf16.mxu0 %v12302_v50  ;;  %v12391_v49 = vld [vmem:[#allocation7 + $0x4e8] ss:$24 sps:$4 sm:$0xff]   ;;  %v12396_v50 = vld [vmem:[#allocation7 + $0x514] ss:$24 sps:$4 sm:$0xff]  }
  0xd1   :  { %5202 = vmatprep.subr.bf16.mxu1 %v12304_v51  ;;  %v12399_v51 = vld [vmem:[#allocation7 + $0x51c] ss:$24 sps:$4 sm:$0xff]  }
  0xd3   :  { %4875 = vmatpush1.bf16.msra.mxu0 %v12306_v52  ;;  %v12394_v52 = vld [vmem:[#allocation7 + $0x510] ss:$24 sps:$4 sm:$0xff]  }
  0xd4   :  { %5203 = vmatpush1.bf16.msra.mxu1 %v12307_v53  ;;  %4876 = vmatprep.subr.bf16.mxu0 %v12308_v54  ;;  %v12397_v53 = vld [vmem:[#allocation7 + $0x518] ss:$24 sps:$4 sm:$0xff]   ;;  %v12402_v54 = vld [vmem:[#allocation7 + $0x544] ss:$24 sps:$4 sm:$0xff]  }
  0xd5   :  { %5204 = vmatprep.subr.bf16.mxu1 %v12310_v55  ;;  %v12405_v55 = vld [vmem:[#allocation7 + $0x54c] ss:$24 sps:$4 sm:$0xff]  }
  0xd7   :  { %4877 = vmatpush1.bf16.msra.mxu0 %v12312_v56  ;;  %v12400_v56 = vld [vmem:[#allocation7 + $0x540] ss:$24 sps:$4 sm:$0xff]  }
  0xd8   :  { %5205 = vmatpush1.bf16.msra.mxu1 %v12313_v57  ;;  %4878 = vmatprep.subr.bf16.mxu0 %v12314_v58  ;;  %v12403_v57 = vld [vmem:[#allocation7 + $0x548] ss:$24 sps:$4 sm:$0xff]   ;;  %v12408_v58 = vld [vmem:[#allocation7 + $0x574] ss:$24 sps:$4 sm:$0xff]  }
  0xd9   :  { %5206 = vmatprep.subr.bf16.mxu1 %v12316_v59  ;;  %v12411_v59 = vld [vmem:[#allocation7 + $0x57c] ss:$24 sps:$4 sm:$0xff]  }
  0xdb   :  { %4879 = vmatpush1.bf16.msra.mxu0 %v12318_v60  ;;  %v12406_v60 = vld [vmem:[#allocation7 + $0x570] ss:$24 sps:$4 sm:$0xff]  }
  0xdc   :  { %5207 = vmatpush1.bf16.msra.mxu1 %v12319_v61  ;;  %4880 = vmatprep.subr.bf16.mxu0 %v12320_v62  ;;  %v12409_v61 = vld [vmem:[#allocation7 + $0x578] ss:$24 sps:$4 sm:$0xff]   ;;  %v12414_v62 = vld [vmem:[#allocation7 + $0x5a4] ss:$24 sps:$4 sm:$0xff]  }
  0xdd   :  { %5208 = vmatprep.subr.bf16.mxu1 %v12322_v63  ;;  %v12417_v63 = vld [vmem:[#allocation7 + $0x5ac] ss:$24 sps:$4 sm:$0xff]  }
  0xdf   :  { %4881 = vmatpush1.bf16.msra.mxu0 %v12324_v0  ;;  %v12412_v0 = vld [vmem:[#allocation7 + $0x5a0] ss:$24 sps:$4 sm:$0xff]  }
  0xe0   :  { %5209 = vmatpush1.bf16.msra.mxu1 %v12325_v1  ;;  %4891 = vmatprep.subr.bf16.mxu0 %v12329_v2  ;;  %v12415_v1 = vld [vmem:[#allocation7 + $0x5a8] ss:$24 sps:$4 sm:$0xff]   ;;  %v12420_v2 = vld [vmem:[#allocation7 + $0x5d4] ss:$24 sps:$4 sm:$0xff]  }
  0xe1   :  { %5219 = vmatprep.subr.bf16.mxu1 %v12332_v3  ;;  %v12423_v3 = vld [vmem:[#allocation7 + $0x5dc] ss:$24 sps:$4 sm:$0xff]  }
  0xe2   :  { %4883 = vmatmul.mubr.bf16.vlgmr.msra.gmra.mrb[0].mxu0 %v14747_v5 }
  0xe3   :  { %5211 = vmatmul.mubr.bf16.vlgmr.msra.gmra.mrb[0].mxu1 %v14747_v5  ;;  %4892 = vmatpush1.bf16.msra.mxu0 %v12327_v4  ;;  %v12418_v4 = vld [vmem:[#allocation7 + $0x5d0] ss:$24 sps:$4 sm:$0xff]  }
  0xe4   :  { %5220 = vmatpush1.bf16.msra.mxu1 %v12330_v6  ;;  %4893 = vmatprep.subr.bf16.mxu0 %v12336_v7  ;;  %v12421_v6 = vld [vmem:[#allocation7 + $0x5d8] ss:$24 sps:$4 sm:$0xff]   ;;  %v12428_v7 = vld [vmem:[#allocation7 + $0x604] ss:$24 sps:$4 sm:$0xff]  }
  0xe5   :  { %5221 = vmatprep.subr.bf16.mxu1 %v12339_v8  ;;  %4923 = vmatprep.mubr.bf16.mxu0 %v14755_v30  ;;  %v12431_v8 = vld [vmem:[#allocation7 + $0x60c] ss:$24 sps:$4 sm:$0xff]  }
  0xe6   :  { %5251 = vmatprep.mubr.bf16.mxu1 %v14755_v30 }
  0xe7   :  { %4894 = vmatpush1.bf16.msra.mxu0 %v12334_v9  ;;  %v14761_v9 = vcombine.low %v14751_v29, %v14751_v29  ;;  %v12453_v29 = vld [vmem:[#allocation7 + $0x6c8] ss:$24 sps:$4 sm:$0xff]  }
  0xe8   :  { %5222 = vmatpush1.bf16.msra.mxu1 %v12337_v10  ;;  %4895 = vmatprep.subr.bf16.mxu0 %v12342_v11  ;;  %v12426_v10 = vld [vmem:[#allocation7 + $0x600] ss:$24 sps:$4 sm:$0xff]  }
  0xe9   :  { %5223 = vmatprep.subr.bf16.mxu1 %v12345_v12  ;;  %v12429_v11 = vld [vmem:[#allocation7 + $0x608] ss:$24 sps:$4 sm:$0xff]   ;;  %v12434_v12 = vld [vmem:[#allocation7 + $0x634] ss:$24 sps:$4 sm:$0xff]  }
  0xeb   :  { %4896 = vmatpush1.bf16.msra.mxu0 %v12340_v13  ;;  %v14763_v13 = vld [vmem:[#allocation5 + $0x10] sm:$0xff] }
  0xec   :  { %5224 = vmatpush1.bf16.msra.mxu1 %v12343_v14  ;;  %4897 = vmatprep.subr.bf16.mxu0 %v12348_v15  ;;  %v12437_v14 = vld [vmem:[#allocation7 + $0x63c] ss:$24 sps:$4 sm:$0xff]   ;;  %v14767_v15 = vcombine.high %v14763_v13, %v14763_v13 }
  0xed   :  { %5225 = vmatprep.subr.bf16.mxu1 %v12351_v16  ;;  %v12432_v16 = vld [vmem:[#allocation7 + $0x630] ss:$24 sps:$4 sm:$0xff]  }
  0xef   :  { %4898 = vmatpush1.bf16.msra.mxu0 %v12346_v17  ;;  %v12435_v17 = vld [vmem:[#allocation7 + $0x638] ss:$24 sps:$4 sm:$0xff]  }
  0xf0   :  { %5226 = vmatpush1.bf16.msra.mxu1 %v12349_v18  ;;  %4899 = vmatprep.subr.bf16.mxu0 %v12354_v19  ;;  %v12440_v18 = vld [vmem:[#allocation7 + $0x664] ss:$24 sps:$4 sm:$0xff]  }
  0xf1   :  { %5227 = vmatprep.subr.bf16.mxu1 %v12357_v20  ;;  %v12443_v19 = vld [vmem:[#allocation7 + $0x66c] ss:$24 sps:$4 sm:$0xff]   ;;  %v12438_v20 = vld [vmem:[#allocation7 + $0x660] ss:$24 sps:$4 sm:$0xff]  }
  0xf3   :  { %4900 = vmatpush1.bf16.msra.mxu0 %v12352_v21  ;;  %v12441_v21 = vld [vmem:[#allocation7 + $0x668] ss:$24 sps:$4 sm:$0xff]  }
  0xf4   :  { %5228 = vmatpush1.bf16.msra.mxu1 %v12355_v22  ;;  %4901 = vmatprep.subr.bf16.mxu0 %v12360_v23  ;;  %v12446_v22 = vld [vmem:[#allocation7 + $0x694] ss:$24 sps:$4 sm:$0xff]  }
  0xf5   :  { %5229 = vmatprep.subr.bf16.mxu1 %v12363_v24  ;;  %v12449_v23 = vld [vmem:[#allocation7 + $0x69c] ss:$24 sps:$4 sm:$0xff]   ;;  %v12444_v24 = vld [vmem:[#allocation7 + $0x690] ss:$24 sps:$4 sm:$0xff]  }
  0xf7   :  { %4902 = vmatpush1.bf16.msra.mxu0 %v12358_v25  ;;  %v12447_v25 = vld [vmem:[#allocation7 + $0x698] ss:$24 sps:$4 sm:$0xff]  }
  0xf8   :  { %5230 = vmatpush1.bf16.msra.mxu1 %v12361_v26  ;;  %4903 = vmatprep.subr.bf16.mxu0 %v12366_v27  ;;  %v12452_v26 = vld [vmem:[#allocation7 + $0x6c4] ss:$24 sps:$4 sm:$0xff]  }
  0xf9   :  { %5231 = vmatprep.subr.bf16.mxu1 %v12369_v28  ;;  %v12455_v27 = vld [vmem:[#allocation7 + $0x6cc] ss:$24 sps:$4 sm:$0xff]   ;;  %v12450_v28 = vld [vmem:[#allocation7 + $0x6c0] ss:$24 sps:$4 sm:$0xff]  }
  0xfb   :  { %4904 = vmatpush1.bf16.msra.mxu0 %v12364_v31  ;;  %v12458_v31 = vld [vmem:[#allocation7 + $0x6f4] ss:$24 sps:$4 sm:$0xff]  }
  0xfc   :  { %5232 = vmatpush1.bf16.msra.mxu1 %v12367_v32  ;;  %4905 = vmatprep.subr.bf16.mxu0 %v12372_v33  ;;  %v12461_v32 = vld [vmem:[#allocation7 + $0x6fc] ss:$24 sps:$4 sm:$0xff]   ;;  %v12456_v33 = vld [vmem:[#allocation7 + $0x6f0] ss:$24 sps:$4 sm:$0xff]  }
  0xfd   :  { %5233 = vmatprep.subr.bf16.mxu1 %v12375_v34  ;;  %v12459_v34 = vld [vmem:[#allocation7 + $0x6f8] ss:$24 sps:$4 sm:$0xff]  }
  0xff   :  { %4906 = vmatpush1.bf16.msra.mxu0 %v12370_v35  ;;  %v12464_v35 = vld [vmem:[#allocation7 + $0x724] ss:$24 sps:$4 sm:$0xff]  }
 0x100   :  { %5234 = vmatpush1.bf16.msra.mxu1 %v12373_v36  ;;  %4907 = vmatprep.subr.bf16.mxu0 %v12378_v37  ;;  %v12467_v36 = vld [vmem:[#allocation7 + $0x72c] ss:$24 sps:$4 sm:$0xff]   ;;  %v12462_v37 = vld [vmem:[#allocation7 + $0x720] ss:$24 sps:$4 sm:$0xff]  }
 0x101   :  { %5235 = vmatprep.subr.bf16.mxu1 %v12381_v38  ;;  %v12465_v38 = vld [vmem:[#allocation7 + $0x728] ss:$24 sps:$4 sm:$0xff]  }
 0x103   :  { %4908 = vmatpush1.bf16.msra.mxu0 %v12376_v39  ;;  %v12470_v39 = vld [vmem:[#allocation7 + $0x754] ss:$24 sps:$4 sm:$0xff]  }
 0x104   :  { %5236 = vmatpush1.bf16.msra.mxu1 %v12379_v40  ;;  %4909 = vmatprep.subr.bf16.mxu0 %v12384_v41  ;;  %v12473_v40 = vld [vmem:[#allocation7 + $0x75c] ss:$24 sps:$4 sm:$0xff]   ;;  %v12468_v41 = vld [vmem:[#allocation7 + $0x750] ss:$24 sps:$4 sm:$0xff]  }
 0x105   :  { %5237 = vmatprep.subr.bf16.mxu1 %v12387_v42  ;;  %v12471_v42 = vld [vmem:[#allocation7 + $0x758] ss:$24 sps:$4 sm:$0xff]  }
 0x107   :  { %4910 = vmatpush1.bf16.msra.mxu0 %v12382_v43  ;;  %v12476_v43 = vld [vmem:[#allocation7 + $0x784] ss:$24 sps:$4 sm:$0xff]  }
 0x108   :  { %5238 = vmatpush1.bf16.msra.mxu1 %v12385_v44  ;;  %4911 = vmatprep.subr.bf16.mxu0 %v12390_v45  ;;  %v12479_v44 = vld [vmem:[#allocation7 + $0x78c] ss:$24 sps:$4 sm:$0xff]   ;;  %v12474_v45 = vld [vmem:[#allocation7 + $0x780] ss:$24 sps:$4 sm:$0xff]  }
 0x109   :  { %5239 = vmatprep.subr.bf16.mxu1 %v12393_v46  ;;  %v12477_v46 = vld [vmem:[#allocation7 + $0x788] ss:$24 sps:$4 sm:$0xff]  }
 0x10b   :  { %4912 = vmatpush1.bf16.msra.mxu0 %v12388_v47  ;;  %v12482_v47 = vld [vmem:[#allocation7 + $0x7b4] ss:$24 sps:$4 sm:$0xff]  }
 0x10c   :  { %5240 = vmatpush1.bf16.msra.mxu1 %v12391_v49  ;;  %4913 = vmatprep.subr.bf16.mxu0 %v12396_v50  ;;  %v12485_v49 = vld [vmem:[#allocation7 + $0x7bc] ss:$24 sps:$4 sm:$0xff]   ;;  %v12480_v50 = vld [vmem:[#allocation7 + $0x7b0] ss:$24 sps:$4 sm:$0xff]  }
 0x10d   :  { %5241 = vmatprep.subr.bf16.mxu1 %v12399_v51  ;;  %v12483_v51 = vld [vmem:[#allocation7 + $0x7b8] ss:$24 sps:$4 sm:$0xff]  }
 0x10f   :  { %4914 = vmatpush1.bf16.msra.mxu0 %v12394_v52  ;;  %v12488_v52 = vld [vmem:[#allocation7 + $0x7e4] ss:$24 sps:$4 sm:$0xff]  }
 0x110   :  { %5242 = vmatpush1.bf16.msra.mxu1 %v12397_v53  ;;  %4915 = vmatprep.subr.bf16.mxu0 %v12402_v54  ;;  %v12491_v53 = vld [vmem:[#allocation7 + $0x7ec] ss:$24 sps:$4 sm:$0xff]   ;;  %v12486_v54 = vld [vmem:[#allocation7 + $0x7e0] ss:$24 sps:$4 sm:$0xff]  }
 0x111   :  { %5243 = vmatprep.subr.bf16.mxu1 %v12405_v55  ;;  %v12489_v55 = vld [vmem:[#allocation7 + $0x7e8] ss:$24 sps:$4 sm:$0xff]  }
 0x113   :  { %4916 = vmatpush1.bf16.msra.mxu0 %v12400_v56  ;;  %v12494_v56 = vld [vmem:[#allocation7 + $0x814] ss:$24 sps:$4 sm:$0xff]  }
 0x114   :  { %5244 = vmatpush1.bf16.msra.mxu1 %v12403_v57  ;;  %4917 = vmatprep.subr.bf16.mxu0 %v12408_v58  ;;  %v12497_v57 = vld [vmem:[#allocation7 + $0x81c] ss:$24 sps:$4 sm:$0xff]   ;;  %v12492_v58 = vld [vmem:[#allocation7 + $0x810] ss:$24 sps:$4 sm:$0xff]  }
 0x115   :  { %5245 = vmatprep.subr.bf16.mxu1 %v12411_v59  ;;  %v12495_v59 = vld [vmem:[#allocation7 + $0x818] ss:$24 sps:$4 sm:$0xff]  }
 0x117   :  { %4918 = vmatpush1.bf16.msra.mxu0 %v12406_v60  ;;  %v12500_v60 = vld [vmem:[#allocation7 + $0x844] ss:$24 sps:$4 sm:$0xff]  }
 0x118   :  { %5246 = vmatpush1.bf16.msra.mxu1 %v12409_v61  ;;  %4919 = vmatprep.subr.bf16.mxu0 %v12414_v62  ;;  %v12503_v61 = vld [vmem:[#allocation7 + $0x84c] ss:$24 sps:$4 sm:$0xff]   ;;  %v12498_v62 = vld [vmem:[#allocation7 + $0x840] ss:$24 sps:$4 sm:$0xff]  }
 0x119   :  { %5247 = vmatprep.subr.bf16.mxu1 %v12417_v63  ;;  %v12501_v63 = vld [vmem:[#allocation7 + $0x848] ss:$24 sps:$4 sm:$0xff]  }
 0x11b   :  { %4920 = vmatpush1.bf16.msra.mxu0 %v12412_v0  ;;  %v12506_v0 = vld [vmem:[#allocation7 + $0x874] ss:$24 sps:$4 sm:$0xff]  }
 0x11c   :  { %5248 = vmatpush1.bf16.msra.mxu1 %v12415_v1  ;;  %4921 = vmatprep.subr.bf16.mxu0 %v12420_v2  ;;  %v12509_v1 = vld [vmem:[#allocation7 + $0x87c] ss:$24 sps:$4 sm:$0xff]   ;;  %v12504_v2 = vld [vmem:[#allocation7 + $0x870] ss:$24 sps:$4 sm:$0xff]  }
 0x11d   :  { %5249 = vmatprep.subr.bf16.mxu1 %v12423_v3  ;;  %v12507_v3 = vld [vmem:[#allocation7 + $0x878] ss:$24 sps:$4 sm:$0xff]  }
 0x11f   :  { %4922 = vmatpush1.bf16.msra.mxu0 %v12418_v4  ;;  %v12512_v4 = vld [vmem:[#allocation7 + $0x8a4] ss:$24 sps:$4 sm:$0xff]  }
 0x120   :  { %5250 = vmatpush1.bf16.msra.mxu1 %v12421_v6  ;;  %4932 = vmatprep.subr.bf16.mxu0 %v12428_v7  ;;  %v12515_v6 = vld [vmem:[#allocation7 + $0x8ac] ss:$24 sps:$4 sm:$0xff]   ;;  %v12510_v7 = vld [vmem:[#allocation7 + $0x8a0] ss:$24 sps:$4 sm:$0xff]  }
 0x121   :  { %5260 = vmatprep.subr.bf16.mxu1 %v12431_v8  ;;  %v12513_v8 = vld [vmem:[#allocation7 + $0x8a8] ss:$24 sps:$4 sm:$0xff]  }
 0x122   :  { %4924 = vmatmul.mubr.bf16.vlgmr.msra.gmra.mrb[0].mxu0 %v14761_v9 }
 0x123   :  { %5252 = vmatmul.mubr.bf16.vlgmr.msra.gmra.mrb[0].mxu1 %v14761_v9  ;;  %4933 = vmatpush1.bf16.msra.mxu0 %v12426_v10  ;;  %v12518_v10 = vld [vmem:[#allocation7 + $0x8d4] ss:$24 sps:$4 sm:$0xff]  }
 0x124   :  { %5261 = vmatpush1.bf16.msra.mxu1 %v12429_v11  ;;  %4934 = vmatprep.subr.bf16.mxu0 %v12434_v12  ;;  %v12521_v11 = vld [vmem:[#allocation7 + $0x8dc] ss:$24 sps:$4 sm:$0xff]   ;;  %v12516_v12 = vld [vmem:[#allocation7 + $0x8d0] ss:$24 sps:$4 sm:$0xff]  }
 0x125   :  { %5262 = vmatprep.subr.bf16.mxu1 %v12437_v14  ;;  %4964 = vmatprep.mubr.bf16.mxu0 %v14767_v15  ;;  %v12519_v14 = vld [vmem:[#allocation7 + $0x8d8] ss:$24 sps:$4 sm:$0xff]  }
 0x126   :  { %5292 = vmatprep.mubr.bf16.mxu1 %v14767_v15 }
 0x127   :  { %4935 = vmatpush1.bf16.msra.mxu0 %v12432_v16  ;;  %v12526_v16 = vld [vmem:[#allocation7 + $0x904] ss:$24 sps:$4 sm:$0xff]  }
 0x128   :  { %5263 = vmatpush1.bf16.msra.mxu1 %v12435_v17  ;;  %4936 = vmatprep.subr.bf16.mxu0 %v12440_v18  ;;  %v12529_v17 = vld [vmem:[#allocation7 + $0x90c] ss:$24 sps:$4 sm:$0xff]   ;;  %v12524_v18 = vld [vmem:[#allocation7 + $0x900] ss:$24 sps:$4 sm:$0xff]  }
 0x129   :  { %5264 = vmatprep.subr.bf16.mxu1 %v12443_v19  ;;  %v14775_v19 = vcombine.low %v14763_v13, %v14763_v13  ;;  %v12533_v13 = vld [vmem:[#allocation7 + $0x938] ss:$24 sps:$4 sm:$0xff]  }
 0x12b   :  { %4937 = vmatpush1.bf16.msra.mxu0 %v12438_v20  ;;  %v12527_v20 = vld [vmem:[#allocation7 + $0x908] ss:$24 sps:$4 sm:$0xff]  }
 0x12c   :  { %5265 = vmatpush1.bf16.msra.mxu1 %v12441_v21  ;;  %4938 = vmatprep.subr.bf16.mxu0 %v12446_v22  ;;  %v14777_v21 = vld [vmem:[#allocation5 + $0x18] sm:$0xff]  ;;  %v12532_v22 = vld [vmem:[#allocation7 + $0x934] ss:$24 sps:$4 sm:$0xff]  }
 0x12d   :  { %5266 = vmatprep.subr.bf16.mxu1 %v12449_v23  ;;  %v12535_v23 = vld [vmem:[#allocation7 + $0x93c] ss:$24 sps:$4 sm:$0xff]  }
 0x12f   :  { %4939 = vmatpush1.bf16.msra.mxu0 %v12444_v24  ;;  %v14781_v24 = vcombine.high %v14777_v21, %v14777_v21 }
 0x130   :  { %5267 = vmatpush1.bf16.msra.mxu1 %v12447_v25  ;;  %4940 = vmatprep.subr.bf16.mxu0 %v12452_v26  ;;  %v12530_v25 = vld [vmem:[#allocation7 + $0x930] ss:$24 sps:$4 sm:$0xff]   ;;  %v12538_v26 = vld [vmem:[#allocation7 + $0x964] ss:$24 sps:$4 sm:$0xff]  }
 0x131   :  { %5268 = vmatprep.subr.bf16.mxu1 %v12455_v27  ;;  %v12541_v27 = vld [vmem:[#allocation7 + $0x96c] ss:$24 sps:$4 sm:$0xff]  }
 0x133   :  { %4941 = vmatpush1.bf16.msra.mxu0 %v12450_v28  ;;  %v12536_v28 = vld [vmem:[#allocation7 + $0x960] ss:$24 sps:$4 sm:$0xff]  }
 0x134   :  { %5269 = vmatpush1.bf16.msra.mxu1 %v12453_v29  ;;  %4942 = vmatprep.subr.bf16.mxu0 %v12458_v31  ;;  %v12539_v29 = vld [vmem:[#allocation7 + $0x968] ss:$24 sps:$4 sm:$0xff]   ;;  %v12544_v31 = vld [vmem:[#allocation7 + $0x994] ss:$24 sps:$4 sm:$0xff]  }
 0x135   :  { %5270 = vmatprep.subr.bf16.mxu1 %v12461_v32  ;;  %v12547_v32 = vld [vmem:[#allocation7 + $0x99c] ss:$24 sps:$4 sm:$0xff]  }
 0x137   :  { %4943 = vmatpush1.bf16.msra.mxu0 %v12456_v33  ;;  %v12542_v33 = vld [vmem:[#allocation7 + $0x990] ss:$24 sps:$4 sm:$0xff]  }
 0x138   :  { %5271 = vmatpush1.bf16.msra.mxu1 %v12459_v34  ;;  %4944 = vmatprep.subr.bf16.mxu0 %v12464_v35  ;;  %v12545_v34 = vld [vmem:[#allocation7 + $0x998] ss:$24 sps:$4 sm:$0xff]   ;;  %v12550_v35 = vld [vmem:[#allocation7 + $0x9c4] ss:$24 sps:$4 sm:$0xff]  }
 0x139   :  { %5272 = vmatprep.subr.bf16.mxu1 %v12467_v36  ;;  %v12553_v36 = vld [vmem:[#allocation7 + $0x9cc] ss:$24 sps:$4 sm:$0xff]  }
 0x13b   :  { %4945 = vmatpush1.bf16.msra.mxu0 %v12462_v37  ;;  %v12548_v37 = vld [vmem:[#allocation7 + $0x9c0] ss:$24 sps:$4 sm:$0xff]  }
 0x13c   :  { %5273 = vmatpush1.bf16.msra.mxu1 %v12465_v38  ;;  %4946 = vmatprep.subr.bf16.mxu0 %v12470_v39  ;;  %v12551_v38 = vld [vmem:[#allocation7 + $0x9c8] ss:$24 sps:$4 sm:$0xff]   ;;  %v12556_v39 = vld [vmem:[#allocation7 + $0x9f4] ss:$24 sps:$4 sm:$0xff]  }
 0x13d   :  { %5274 = vmatprep.subr.bf16.mxu1 %v12473_v40  ;;  %v12559_v40 = vld [vmem:[#allocation7 + $0x9fc] ss:$24 sps:$4 sm:$0xff]  }
 0x13f   :  { %4947 = vmatpush1.bf16.msra.mxu0 %v12468_v41  ;;  %v12554_v41 = vld [vmem:[#allocation7 + $0x9f0] ss:$24 sps:$4 sm:$0xff]  }
 0x140   :  { %5275 = vmatpush1.bf16.msra.mxu1 %v12471_v42  ;;  %4948 = vmatprep.subr.bf16.mxu0 %v12476_v43  ;;  %v12557_v42 = vld [vmem:[#allocation7 + $0x9f8] ss:$24 sps:$4 sm:$0xff]   ;;  %v12562_v43 = vld [vmem:[#allocation7 + $0xa24] ss:$24 sps:$4 sm:$0xff]  }
 0x141   :  { %5276 = vmatprep.subr.bf16.mxu1 %v12479_v44  ;;  %v12565_v44 = vld [vmem:[#allocation7 + $0xa2c] ss:$24 sps:$4 sm:$0xff]  }
 0x143   :  { %4949 = vmatpush1.bf16.msra.mxu0 %v12474_v45  ;;  %v12560_v45 = vld [vmem:[#allocation7 + $0xa20] ss:$24 sps:$4 sm:$0xff]  }
 0x144   :  { %5277 = vmatpush1.bf16.msra.mxu1 %v12477_v46  ;;  %4950 = vmatprep.subr.bf16.mxu0 %v12482_v47  ;;  %v12563_v46 = vld [vmem:[#allocation7 + $0xa28] ss:$24 sps:$4 sm:$0xff]   ;;  %v12568_v47 = vld [vmem:[#allocation7 + $0xa54] ss:$24 sps:$4 sm:$0xff]  }
 0x145   :  { %5278 = vmatprep.subr.bf16.mxu1 %v12485_v49  ;;  %v12571_v49 = vld [vmem:[#allocation7 + $0xa5c] ss:$24 sps:$4 sm:$0xff]  }
 0x147   :  { %4951 = vmatpush1.bf16.msra.mxu0 %v12480_v50  ;;  %v12566_v50 = vld [vmem:[#allocation7 + $0xa50] ss:$24 sps:$4 sm:$0xff]  }
 0x148   :  { %5279 = vmatpush1.bf16.msra.mxu1 %v12483_v51  ;;  %4952 = vmatprep.subr.bf16.mxu0 %v12488_v52  ;;  %v12569_v51 = vld [vmem:[#allocation7 + $0xa58] ss:$24 sps:$4 sm:$0xff]   ;;  %v12574_v52 = vld [vmem:[#allocation7 + $0xa84] ss:$24 sps:$4 sm:$0xff]  }
 0x149   :  { %5280 = vmatprep.subr.bf16.mxu1 %v12491_v53  ;;  %v12577_v53 = vld [vmem:[#allocation7 + $0xa8c] ss:$24 sps:$4 sm:$0xff]  }
 0x14b   :  { %4953 = vmatpush1.bf16.msra.mxu0 %v12486_v54  ;;  %v12572_v54 = vld [vmem:[#allocation7 + $0xa80] ss:$24 sps:$4 sm:$0xff]  }
 0x14c   :  { %5281 = vmatpush1.bf16.msra.mxu1 %v12489_v55  ;;  %4954 = vmatprep.subr.bf16.mxu0 %v12494_v56  ;;  %v12575_v55 = vld [vmem:[#allocation7 + $0xa88] ss:$24 sps:$4 sm:$0xff]   ;;  %v12580_v56 = vld [vmem:[#allocation7 + $0xab4] ss:$24 sps:$4 sm:$0xff]  }
 0x14d   :  { %5282 = vmatprep.subr.bf16.mxu1 %v12497_v57  ;;  %v12583_v57 = vld [vmem:[#allocation7 + $0xabc] ss:$24 sps:$4 sm:$0xff]  }
 0x14f   :  { %4955 = vmatpush1.bf16.msra.mxu0 %v12492_v58  ;;  %v12578_v58 = vld [vmem:[#allocation7 + $0xab0] ss:$24 sps:$4 sm:$0xff]  }
 0x150   :  { %5283 = vmatpush1.bf16.msra.mxu1 %v12495_v59  ;;  %4956 = vmatprep.subr.bf16.mxu0 %v12500_v60  ;;  %v12581_v59 = vld [vmem:[#allocation7 + $0xab8] ss:$24 sps:$4 sm:$0xff]   ;;  %v12586_v60 = vld [vmem:[#allocation7 + $0xae4] ss:$24 sps:$4 sm:$0xff]  }
 0x151   :  { %5284 = vmatprep.subr.bf16.mxu1 %v12503_v61  ;;  %v12589_v61 = vld [vmem:[#allocation7 + $0xaec] ss:$24 sps:$4 sm:$0xff]  }
 0x153   :  { %4957 = vmatpush1.bf16.msra.mxu0 %v12498_v62  ;;  %v12584_v62 = vld [vmem:[#allocation7 + $0xae0] ss:$24 sps:$4 sm:$0xff]  }
 0x154   :  { %5285 = vmatpush1.bf16.msra.mxu1 %v12501_v63  ;;  %4958 = vmatprep.subr.bf16.mxu0 %v12506_v0  ;;  %v12587_v63 = vld [vmem:[#allocation7 + $0xae8] ss:$24 sps:$4 sm:$0xff]   ;;  %v12592_v0 = vld [vmem:[#allocation7 + $0xb14] ss:$24 sps:$4 sm:$0xff]  }
 0x155   :  { %5286 = vmatprep.subr.bf16.mxu1 %v12509_v1  ;;  %v12595_v1 = vld [vmem:[#allocation7 + $0xb1c] ss:$24 sps:$4 sm:$0xff]  }
 0x157   :  { %4959 = vmatpush1.bf16.msra.mxu0 %v12504_v2  ;;  %v12590_v2 = vld [vmem:[#allocation7 + $0xb10] ss:$24 sps:$4 sm:$0xff]  }
 0x158   :  { %5287 = vmatpush1.bf16.msra.mxu1 %v12507_v3  ;;  %4960 = vmatprep.subr.bf16.mxu0 %v12512_v4  ;;  %v12593_v3 = vld [vmem:[#allocation7 + $0xb18] ss:$24 sps:$4 sm:$0xff]   ;;  %v12598_v4 = vld [vmem:[#allocation7 + $0xb44] ss:$24 sps:$4 sm:$0xff]  }
 0x159   :  { %5288 = vmatprep.subr.bf16.mxu1 %v12515_v6  ;;  %v12601_v6 = vld [vmem:[#allocation7 + $0xb4c] ss:$24 sps:$4 sm:$0xff]  }
 0x15b   :  { %4961 = vmatpush1.bf16.msra.mxu0 %v12510_v7  ;;  %v12596_v7 = vld [vmem:[#allocation7 + $0xb40] ss:$24 sps:$4 sm:$0xff]  }
 0x15c   :  { %5289 = vmatpush1.bf16.msra.mxu1 %v12513_v8  ;;  %4962 = vmatprep.subr.bf16.mxu0 %v12518_v10  ;;  %v12599_v8 = vld [vmem:[#allocation7 + $0xb48] ss:$24 sps:$4 sm:$0xff]   ;;  %v12604_v10 = vld [vmem:[#allocation7 + $0xb74] ss:$24 sps:$4 sm:$0xff]  }
 0x15d   :  { %5290 = vmatprep.subr.bf16.mxu1 %v12521_v11  ;;  %v12607_v11 = vld [vmem:[#allocation7 + $0xb7c] ss:$24 sps:$4 sm:$0xff]  }
 0x15f   :  { %4963 = vmatpush1.bf16.msra.mxu0 %v12516_v12  ;;  %v12602_v12 = vld [vmem:[#allocation7 + $0xb70] ss:$24 sps:$4 sm:$0xff]  }
 0x160   :  { %5291 = vmatpush1.bf16.msra.mxu1 %v12519_v14  ;;  %4973 = vmatprep.subr.bf16.mxu0 %v12526_v16  ;;  %v12605_v14 = vld [vmem:[#allocation7 + $0xb78] ss:$24 sps:$4 sm:$0xff]   ;;  %v12610_v16 = vld [vmem:[#allocation7 + $0xba4] ss:$24 sps:$4 sm:$0xff]  }
 0x161   :  { %5301 = vmatprep.subr.bf16.mxu1 %v12529_v17  ;;  %v12613_v17 = vld [vmem:[#allocation7 + $0xbac] ss:$24 sps:$4 sm:$0xff]  }
 0x162   :  { %4965 = vmatmul.mubr.bf16.vlgmr.msra.gmra.mrb[0].mxu0 %v14775_v19 }
 0x163   :  { %5293 = vmatmul.mubr.bf16.vlgmr.msra.gmra.mrb[0].mxu1 %v14775_v19  ;;  %4974 = vmatpush1.bf16.msra.mxu0 %v12524_v18  ;;  %v12608_v18 = vld [vmem:[#allocation7 + $0xba0] ss:$24 sps:$4 sm:$0xff]  }
 0x164   :  { %5302 = vmatpush1.bf16.msra.mxu1 %v12527_v20  ;;  %4975 = vmatprep.subr.bf16.mxu0 %v12532_v22  ;;  %v12611_v20 = vld [vmem:[#allocation7 + $0xba8] ss:$24 sps:$4 sm:$0xff]   ;;  %v12616_v22 = vld [vmem:[#allocation7 + $0xbd4] ss:$24 sps:$4 sm:$0xff]  }
 0x165   :  { %5303 = vmatprep.subr.bf16.mxu1 %v12535_v23  ;;  %5005 = vmatprep.mubr.bf16.mxu0 %v14781_v24  ;;  %v12619_v23 = vld [vmem:[#allocation7 + $0xbdc] ss:$24 sps:$4 sm:$0xff]  }
 0x166   :  { %5333 = vmatprep.mubr.bf16.mxu1 %v14781_v24 }
 0x167   :  { %4976 = vmatpush1.bf16.msra.mxu0 %v12530_v25  ;;  %v12614_v25 = vld [vmem:[#allocation7 + $0xbd0] ss:$24 sps:$4 sm:$0xff]  }
 0x168   :  { %5304 = vmatpush1.bf16.msra.mxu1 %v12533_v13  ;;  %4977 = vmatprep.subr.bf16.mxu0 %v12538_v26  ;;  %v12617_v13 = vld [vmem:[#allocation7 + $0xbd8] ss:$24 sps:$4 sm:$0xff]   ;;  %v12624_v26 = vld [vmem:[#allocation7 + $0xc04] ss:$24 sps:$4 sm:$0xff]  }
 0x169   :  { %5305 = vmatprep.subr.bf16.mxu1 %v12541_v27  ;;  %v12627_v27 = vld [vmem:[#allocation7 + $0xc0c] ss:$24 sps:$4 sm:$0xff]  }
 0x16b   :  { %4978 = vmatpush1.bf16.msra.mxu0 %v12536_v28  ;;  %v12622_v28 = vld [vmem:[#allocation7 + $0xc00] ss:$24 sps:$4 sm:$0xff]  }
 0x16c   :  { %5306 = vmatpush1.bf16.msra.mxu1 %v12539_v29  ;;  %4979 = vmatprep.subr.bf16.mxu0 %v12544_v31  ;;  %v14789_v29 = vcombine.low %v14777_v21, %v14777_v21  ;;  %v14791_v31 = vld [vmem:[#allocation5 + $0x20] sm:$0xff]  ;;  %v12628_v21 = vld [vmem:[#allocation7 + $0xc30] ss:$24 sps:$4 sm:$0xff]  }
 0x16d   :  { %5307 = vmatprep.subr.bf16.mxu1 %v12547_v32  ;;  %v12625_v32 = vld [vmem:[#allocation7 + $0xc08] ss:$24 sps:$4 sm:$0xff]  }
 0x16f   :  { %4980 = vmatpush1.bf16.msra.mxu0 %v12542_v33  ;;  %v12630_v33 = vld [vmem:[#allocation7 + $0xc34] ss:$24 sps:$4 sm:$0xff]  }
 0x170   :  { %5308 = vmatpush1.bf16.msra.mxu1 %v12545_v34  ;;  %4981 = vmatprep.subr.bf16.mxu0 %v12550_v35  ;;  %v12633_v34 = vld [vmem:[#allocation7 + $0xc3c] ss:$24 sps:$4 sm:$0xff]   ;;  %v14795_v35 = vcombine.high %v14791_v31, %v14791_v31 }
 0x171   :  { %5309 = vmatprep.subr.bf16.mxu1 %v12553_v36  ;;  %v12631_v36 = vld [vmem:[#allocation7 + $0xc38] ss:$24 sps:$4 sm:$0xff]  }
 0x173   :  { %4982 = vmatpush1.bf16.msra.mxu0 %v12548_v37  ;;  %v12636_v37 = vld [vmem:[#allocation7 + $0xc64] ss:$24 sps:$4 sm:$0xff]  }
 0x174   :  { %5310 = vmatpush1.bf16.msra.mxu1 %v12551_v38  ;;  %4983 = vmatprep.subr.bf16.mxu0 %v12556_v39  ;;  %v12639_v38 = vld [vmem:[#allocation7 + $0xc6c] ss:$24 sps:$4 sm:$0xff]   ;;  %v12634_v39 = vld [vmem:[#allocation7 + $0xc60] ss:$24 sps:$4 sm:$0xff]  }
 0x175   :  { %5311 = vmatprep.subr.bf16.mxu1 %v12559_v40  ;;  %v12637_v40 = vld [vmem:[#allocation7 + $0xc68] ss:$24 sps:$4 sm:$0xff]  }
 0x177   :  { %4984 = vmatpush1.bf16.msra.mxu0 %v12554_v41  ;;  %v12642_v41 = vld [vmem:[#allocation7 + $0xc94] ss:$24 sps:$4 sm:$0xff]  }
 0x178   :  { %5312 = vmatpush1.bf16.msra.mxu1 %v12557_v42  ;;  %4985 = vmatprep.subr.bf16.mxu0 %v12562_v43  ;;  %v12645_v42 = vld [vmem:[#allocation7 + $0xc9c] ss:$24 sps:$4 sm:$0xff]   ;;  %v12640_v43 = vld [vmem:[#allocation7 + $0xc90] ss:$24 sps:$4 sm:$0xff]  }
 0x179   :  { %5313 = vmatprep.subr.bf16.mxu1 %v12565_v44  ;;  %v12643_v44 = vld [vmem:[#allocation7 + $0xc98] ss:$24 sps:$4 sm:$0xff]  }
 0x17b   :  { %4986 = vmatpush1.bf16.msra.mxu0 %v12560_v45  ;;  %v12648_v45 = vld [vmem:[#allocation7 + $0xcc4] ss:$24 sps:$4 sm:$0xff]  }
 0x17c   :  { %5314 = vmatpush1.bf16.msra.mxu1 %v12563_v46  ;;  %4987 = vmatprep.subr.bf16.mxu0 %v12568_v47  ;;  %v12651_v46 = vld [vmem:[#allocation7 + $0xccc] ss:$24 sps:$4 sm:$0xff]   ;;  %v12646_v47 = vld [vmem:[#allocation7 + $0xcc0] ss:$24 sps:$4 sm:$0xff]  }
 0x17d   :  { %5315 = vmatprep.subr.bf16.mxu1 %v12571_v49  ;;  %v12649_v49 = vld [vmem:[#allocation7 + $0xcc8] ss:$24 sps:$4 sm:$0xff]  }
 0x17f   :  { %4988 = vmatpush1.bf16.msra.mxu0 %v12566_v50  ;;  %v12654_v50 = vld [vmem:[#allocation7 + $0xcf4] ss:$24 sps:$4 sm:$0xff]  }
 0x180   :  { %5316 = vmatpush1.bf16.msra.mxu1 %v12569_v51  ;;  %4989 = vmatprep.subr.bf16.mxu0 %v12574_v52  ;;  %v12657_v51 = vld [vmem:[#allocation7 + $0xcfc] ss:$24 sps:$4 sm:$0xff]   ;;  %v12652_v52 = vld [vmem:[#allocation7 + $0xcf0] ss:$24 sps:$4 sm:$0xff]  }
 0x181   :  { %5317 = vmatprep.subr.bf16.mxu1 %v12577_v53  ;;  %v12655_v53 = vld [vmem:[#allocation7 + $0xcf8] ss:$24 sps:$4 sm:$0xff]  }
 0x183   :  { %4990 = vmatpush1.bf16.msra.mxu0 %v12572_v54  ;;  %v12660_v54 = vld [vmem:[#allocation7 + $0xd24] ss:$24 sps:$4 sm:$0xff]  }
 0x184   :  { %5318 = vmatpush1.bf16.msra.mxu1 %v12575_v55  ;;  %4991 = vmatprep.subr.bf16.mxu0 %v12580_v56  ;;  %v12663_v55 = vld [vmem:[#allocation7 + $0xd2c] ss:$24 sps:$4 sm:$0xff]   ;;  %v12658_v56 = vld [vmem:[#allocation7 + $0xd20] ss:$24 sps:$4 sm:$0xff]  }
 0x185   :  { %5319 = vmatprep.subr.bf16.mxu1 %v12583_v57  ;;  %v12661_v57 = vld [vmem:[#allocation7 + $0xd28] ss:$24 sps:$4 sm:$0xff]  }
 0x187   :  { %4992 = vmatpush1.bf16.msra.mxu0 %v12578_v58  ;;  %v12666_v58 = vld [vmem:[#allocation7 + $0xd54] ss:$24 sps:$4 sm:$0xff]  }
 0x188   :  { %5320 = vmatpush1.bf16.msra.mxu1 %v12581_v59  ;;  %4993 = vmatprep.subr.bf16.mxu0 %v12586_v60  ;;  %v12669_v59 = vld [vmem:[#allocation7 + $0xd5c] ss:$24 sps:$4 sm:$0xff]   ;;  %v12664_v60 = vld [vmem:[#allocation7 + $0xd50] ss:$24 sps:$4 sm:$0xff]  }
 0x189   :  { %5321 = vmatprep.subr.bf16.mxu1 %v12589_v61  ;;  %v12667_v61 = vld [vmem:[#allocation7 + $0xd58] ss:$24 sps:$4 sm:$0xff]  }
 0x18b   :  { %4994 = vmatpush1.bf16.msra.mxu0 %v12584_v62  ;;  %v12672_v62 = vld [vmem:[#allocation7 + $0xd84] ss:$24 sps:$4 sm:$0xff]  }
 0x18c   :  { %5322 = vmatpush1.bf16.msra.mxu1 %v12587_v63  ;;  %4995 = vmatprep.subr.bf16.mxu0 %v12592_v0  ;;  %v12675_v63 = vld [vmem:[#allocation7 + $0xd8c] ss:$24 sps:$4 sm:$0xff]   ;;  %v12670_v0 = vld [vmem:[#allocation7 + $0xd80] ss:$24 sps:$4 sm:$0xff]  }
 0x18d   :  { %5323 = vmatprep.subr.bf16.mxu1 %v12595_v1  ;;  %v12673_v1 = vld [vmem:[#allocation7 + $0xd88] ss:$24 sps:$4 sm:$0xff]  }
 0x18f   :  { %4996 = vmatpush1.bf16.msra.mxu0 %v12590_v2  ;;  %v12678_v2 = vld [vmem:[#allocation7 + $0xdb4] ss:$24 sps:$4 sm:$0xff]  }
 0x190   :  { %5324 = vmatpush1.bf16.msra.mxu1 %v12593_v3  ;;  %4997 = vmatprep.subr.bf16.mxu0 %v12598_v4  ;;  %v12681_v3 = vld [vmem:[#allocation7 + $0xdbc] ss:$24 sps:$4 sm:$0xff]   ;;  %v12676_v4 = vld [vmem:[#allocation7 + $0xdb0] ss:$24 sps:$4 sm:$0xff]  }
 0x191   :  { %5325 = vmatprep.subr.bf16.mxu1 %v12601_v6  ;;  %v12679_v6 = vld [vmem:[#allocation7 + $0xdb8] ss:$24 sps:$4 sm:$0xff]  }
 0x193   :  { %4998 = vmatpush1.bf16.msra.mxu0 %v12596_v7  ;;  %v12684_v7 = vld [vmem:[#allocation7 + $0xde4] ss:$24 sps:$4 sm:$0xff]  }
 0x194   :  { %5326 = vmatpush1.bf16.msra.mxu1 %v12599_v8  ;;  %4999 = vmatprep.subr.bf16.mxu0 %v12604_v10  ;;  %v12687_v8 = vld [vmem:[#allocation7 + $0xdec] ss:$24 sps:$4 sm:$0xff]   ;;  %v12682_v10 = vld [vmem:[#allocation7 + $0xde0] ss:$24 sps:$4 sm:$0xff]  }
 0x195   :  { %5327 = vmatprep.subr.bf16.mxu1 %v12607_v11  ;;  %v12685_v11 = vld [vmem:[#allocation7 + $0xde8] ss:$24 sps:$4 sm:$0xff]  }
 0x197   :  { %5000 = vmatpush1.bf16.msra.mxu0 %v12602_v12  ;;  %v12690_v12 = vld [vmem:[#allocation7 + $0xe14] ss:$24 sps:$4 sm:$0xff]  }
 0x198   :  { %5328 = vmatpush1.bf16.msra.mxu1 %v12605_v14  ;;  %5001 = vmatprep.subr.bf16.mxu0 %v12610_v16  ;;  %v12693_v14 = vld [vmem:[#allocation7 + $0xe1c] ss:$24 sps:$4 sm:$0xff]   ;;  %v12688_v16 = vld [vmem:[#allocation7 + $0xe10] ss:$24 sps:$4 sm:$0xff]  }
 0x199   :  { %5329 = vmatprep.subr.bf16.mxu1 %v12613_v17  ;;  %v12691_v17 = vld [vmem:[#allocation7 + $0xe18] ss:$24 sps:$4 sm:$0xff]  }
 0x19b   :  { %5002 = vmatpush1.bf16.msra.mxu0 %v12608_v18  ;;  %v12696_v18 = vld [vmem:[#allocation7 + $0xe44] ss:$24 sps:$4 sm:$0xff]  }
 0x19c   :  { %5330 = vmatpush1.bf16.msra.mxu1 %v12611_v20  ;;  %5003 = vmatprep.subr.bf16.mxu0 %v12616_v22  ;;  %v12699_v20 = vld [vmem:[#allocation7 + $0xe4c] ss:$24 sps:$4 sm:$0xff]   ;;  %v12694_v22 = vld [vmem:[#allocation7 + $0xe40] ss:$24 sps:$4 sm:$0xff]  }
 0x19d   :  { %5331 = vmatprep.subr.bf16.mxu1 %v12619_v23  ;;  %v12697_v23 = vld [vmem:[#allocation7 + $0xe48] ss:$24 sps:$4 sm:$0xff]  }
 0x19f   :  { %5004 = vmatpush1.bf16.msra.mxu0 %v12614_v25  ;;  %v12702_v25 = vld [vmem:[#allocation7 + $0xe74] ss:$24 sps:$4 sm:$0xff]  }
 0x1a0   :  { %5332 = vmatpush1.bf16.msra.mxu1 %v12617_v13  ;;  %5014 = vmatprep.subr.bf16.mxu0 %v12624_v26  ;;  %v12705_v13 = vld [vmem:[#allocation7 + $0xe7c] ss:$24 sps:$4 sm:$0xff]   ;;  %v12700_v26 = vld [vmem:[#allocation7 + $0xe70] ss:$24 sps:$4 sm:$0xff]  }
 0x1a1   :  { %5342 = vmatprep.subr.bf16.mxu1 %v12627_v27  ;;  %v12703_v27 = vld [vmem:[#allocation7 + $0xe78] ss:$24 sps:$4 sm:$0xff]  }
 0x1a2   :  { %5006 = vmatmul.mubr.bf16.vlgmr.msra.gmra.mrb[0].mxu0 %v14789_v29 }
 0x1a3   :  { %5334 = vmatmul.mubr.bf16.vlgmr.msra.gmra.mrb[0].mxu1 %v14789_v29  ;;  %5015 = vmatpush1.bf16.msra.mxu0 %v12622_v28  ;;  %v12708_v28 = vld [vmem:[#allocation7 + $0xea4] ss:$24 sps:$4 sm:$0xff]  }
 0x1a4   :  { %5343 = vmatpush1.bf16.msra.mxu1 %v12625_v32  ;;  %5016 = vmatprep.subr.bf16.mxu0 %v12630_v33  ;;  %v12711_v32 = vld [vmem:[#allocation7 + $0xeac] ss:$24 sps:$4 sm:$0xff]   ;;  %v12706_v33 = vld [vmem:[#allocation7 + $0xea0] ss:$24 sps:$4 sm:$0xff]  }
 0x1a5   :  { %5344 = vmatprep.subr.bf16.mxu1 %v12633_v34  ;;  %5046 = vmatprep.mubr.bf16.mxu0 %v14795_v35  ;;  %v12709_v34 = vld [vmem:[#allocation7 + $0xea8] ss:$24 sps:$4 sm:$0xff]  }
 0x1a6   :  { %5374 = vmatprep.mubr.bf16.mxu1 %v14795_v35 }
 0x1a7   :  { %5017 = vmatpush1.bf16.msra.mxu0 %v12628_v21  ;;  %v12714_v21 = vld [vmem:[#allocation7 + $0xed4] ss:$24 sps:$4 sm:$0xff]  }
 0x1a8   :  { %5345 = vmatpush1.bf16.msra.mxu1 %v12631_v36  ;;  %5018 = vmatprep.subr.bf16.mxu0 %v12636_v37  ;;  %v12717_v36 = vld [vmem:[#allocation7 + $0xedc] ss:$24 sps:$4 sm:$0xff]   ;;  %v12712_v37 = vld [vmem:[#allocation7 + $0xed0] ss:$24 sps:$4 sm:$0xff]  }
 0x1a9   :  { %5346 = vmatprep.subr.bf16.mxu1 %v12639_v38  ;;  %v12715_v38 = vld [vmem:[#allocation7 + $0xed8] ss:$24 sps:$4 sm:$0xff]  }
 0x1ab   :  { %5019 = vmatpush1.bf16.msra.mxu0 %v12634_v39  ;;  %v12722_v39 = vld [vmem:[#allocation7 + $0xf04] ss:$24 sps:$4 sm:$0xff]  }
 0x1ac   :  { %5347 = vmatpush1.bf16.msra.mxu1 %v12637_v40  ;;  %5020 = vmatprep.subr.bf16.mxu0 %v12642_v41  ;;  %v12725_v40 = vld [vmem:[#allocation7 + $0xf0c] ss:$24 sps:$4 sm:$0xff]  }
 0x1ad   :  { %5348 = vmatprep.subr.bf16.mxu1 %v12645_v42  ;;  %v14801_v41 = vld [vmem:[#allocation5 + $0x28] sm:$0xff]  ;;  %v14805_v42 = vcombine.low %v14791_v31, %v14791_v31 }
 0x1ae   :  { %v12726_v31 = vld [vmem:[#allocation7 + $0xf30] ss:$24 sps:$4 sm:$0xff]  }
 0x1af   :  { %5021 = vmatpush1.bf16.msra.mxu0 %v12640_v43  ;;  %v12720_v43 = vld [vmem:[#allocation7 + $0xf00] ss:$24 sps:$4 sm:$0xff]  }
 0x1b0   :  { %5349 = vmatpush1.bf16.msra.mxu1 %v12643_v44  ;;  %5022 = vmatprep.subr.bf16.mxu0 %v12648_v45  ;;  %v12723_v44 = vld [vmem:[#allocation7 + $0xf08] ss:$24 sps:$4 sm:$0xff]   ;;  %v12728_v45 = vld [vmem:[#allocation7 + $0xf34] ss:$24 sps:$4 sm:$0xff]  }
 0x1b1   :  { %5350 = vmatprep.subr.bf16.mxu1 %v12651_v46  ;;  %v12731_v46 = vld [vmem:[#allocation7 + $0xf3c] ss:$24 sps:$4 sm:$0xff]  }
 0x1b3   :  { %5023 = vmatpush1.bf16.msra.mxu0 %v12646_v47  ;;  %v14809_v47 = vcombine.high %v14801_v41, %v14801_v41 }
 0x1b4   :  { %5351 = vmatpush1.bf16.msra.mxu1 %v12649_v49  ;;  %5024 = vmatprep.subr.bf16.mxu0 %v12654_v50  ;;  %v12729_v49 = vld [vmem:[#allocation7 + $0xf38] ss:$24 sps:$4 sm:$0xff]   ;;  %v12734_v50 = vld [vmem:[#allocation7 + $0xf64] ss:$24 sps:$4 sm:$0xff]  }
 0x1b5   :  { %5352 = vmatprep.subr.bf16.mxu1 %v12657_v51  ;;  %v12737_v51 = vld [vmem:[#allocation7 + $0xf6c] ss:$24 sps:$4 sm:$0xff]  }
 0x1b7   :  { %5025 = vmatpush1.bf16.msra.mxu0 %v12652_v52  ;;  %v12732_v52 = vld [vmem:[#allocation7 + $0xf60] ss:$24 sps:$4 sm:$0xff]  }
 0x1b8   :  { %5353 = vmatpush1.bf16.msra.mxu1 %v12655_v53  ;;  %5026 = vmatprep.subr.bf16.mxu0 %v12660_v54  ;;  %v12735_v53 = vld [vmem:[#allocation7 + $0xf68] ss:$24 sps:$4 sm:$0xff]   ;;  %v12740_v54 = vld [vmem:[#allocation7 + $0xf94] ss:$24 sps:$4 sm:$0xff]  }
 0x1b9   :  { %5354 = vmatprep.subr.bf16.mxu1 %v12663_v55  ;;  %v12743_v55 = vld [vmem:[#allocation7 + $0xf9c] ss:$24 sps:$4 sm:$0xff]  }
 0x1bb   :  { %5027 = vmatpush1.bf16.msra.mxu0 %v12658_v56  ;;  %v12738_v56 = vld [vmem:[#allocation7 + $0xf90] ss:$24 sps:$4 sm:$0xff]  }
 0x1bc   :  { %5355 = vmatpush1.bf16.msra.mxu1 %v12661_v57  ;;  %5028 = vmatprep.subr.bf16.mxu0 %v12666_v58  ;;  %v12741_v57 = vld [vmem:[#allocation7 + $0xf98] ss:$24 sps:$4 sm:$0xff]   ;;  %v12746_v58 = vld [vmem:[#allocation7 + $0xfc4] ss:$24 sps:$4 sm:$0xff]  }
 0x1bd   :  { %5356 = vmatprep.subr.bf16.mxu1 %v12669_v59  ;;  %v12749_v59 = vld [vmem:[#allocation7 + $0xfcc] ss:$24 sps:$4 sm:$0xff]  }
 0x1bf   :  { %5029 = vmatpush1.bf16.msra.mxu0 %v12664_v60  ;;  %v12744_v60 = vld [vmem:[#allocation7 + $0xfc0] ss:$24 sps:$4 sm:$0xff]  }
 0x1c0   :  { %5357 = vmatpush1.bf16.msra.mxu1 %v12667_v61  ;;  %5030 = vmatprep.subr.bf16.mxu0 %v12672_v62  ;;  %v12747_v61 = vld [vmem:[#allocation7 + $0xfc8] ss:$24 sps:$4 sm:$0xff]   ;;  %v12752_v62 = vld [vmem:[#allocation7 + $0xff4] ss:$24 sps:$4 sm:$0xff]  }
 0x1c1   :  { %5358 = vmatprep.subr.bf16.mxu1 %v12675_v63  ;;  %v12755_v63 = vld [vmem:[#allocation7 + $0xffc] ss:$24 sps:$4 sm:$0xff]  }
 0x1c3   :  { %5031 = vmatpush1.bf16.msra.mxu0 %v12670_v0  ;;  %v12750_v0 = vld [vmem:[#allocation7 + $0xff0] ss:$24 sps:$4 sm:$0xff]  }
 0x1c4   :  { %5359 = vmatpush1.bf16.msra.mxu1 %v12673_v1  ;;  %5032 = vmatprep.subr.bf16.mxu0 %v12678_v2  ;;  %v12753_v1 = vld [vmem:[#allocation7 + $0xff8] ss:$24 sps:$4 sm:$0xff]   ;;  %v12758_v2 = vld [vmem:[#allocation7 + $0x1024] ss:$24 sps:$4 sm:$0xff]  }
 0x1c5   :  { %5360 = vmatprep.subr.bf16.mxu1 %v12681_v3  ;;  %v12761_v3 = vld [vmem:[#allocation7 + $0x102c] ss:$24 sps:$4 sm:$0xff]  }
 0x1c7   :  { %5033 = vmatpush1.bf16.msra.mxu0 %v12676_v4  ;;  %v12756_v4 = vld [vmem:[#allocation7 + $0x1020] ss:$24 sps:$4 sm:$0xff]  }
 0x1c8   :  { %5361 = vmatpush1.bf16.msra.mxu1 %v12679_v6  ;;  %5034 = vmatprep.subr.bf16.mxu0 %v12684_v7  ;;  %v12759_v6 = vld [vmem:[#allocation7 + $0x1028] ss:$24 sps:$4 sm:$0xff]   ;;  %v12764_v7 = vld [vmem:[#allocation7 + $0x1054] ss:$24 sps:$4 sm:$0xff]  }
 0x1c9   :  { %5362 = vmatprep.subr.bf16.mxu1 %v12687_v8  ;;  %v12767_v8 = vld [vmem:[#allocation7 + $0x105c] ss:$24 sps:$4 sm:$0xff]  }
 0x1cb   :  { %5035 = vmatpush1.bf16.msra.mxu0 %v12682_v10  ;;  %v12762_v10 = vld [vmem:[#allocation7 + $0x1050] ss:$24 sps:$4 sm:$0xff]  }
 0x1cc   :  { %5363 = vmatpush1.bf16.msra.mxu1 %v12685_v11  ;;  %5036 = vmatprep.subr.bf16.mxu0 %v12690_v12  ;;  %v12765_v11 = vld [vmem:[#allocation7 + $0x1058] ss:$24 sps:$4 sm:$0xff]   ;;  %v12770_v12 = vld [vmem:[#allocation7 + $0x1084] ss:$24 sps:$4 sm:$0xff]  }
 0x1cd   :  { %5364 = vmatprep.subr.bf16.mxu1 %v12693_v14  ;;  %v12773_v14 = vld [vmem:[#allocation7 + $0x108c] ss:$24 sps:$4 sm:$0xff]  }
 0x1cf   :  { %5037 = vmatpush1.bf16.msra.mxu0 %v12688_v16  ;;  %v12768_v16 = vld [vmem:[#allocation7 + $0x1080] ss:$24 sps:$4 sm:$0xff]  }
 0x1d0   :  { %5365 = vmatpush1.bf16.msra.mxu1 %v12691_v17  ;;  %5038 = vmatprep.subr.bf16.mxu0 %v12696_v18  ;;  %v12771_v17 = vld [vmem:[#allocation7 + $0x1088] ss:$24 sps:$4 sm:$0xff]   ;;  %v12776_v18 = vld [vmem:[#allocation7 + $0x10b4] ss:$24 sps:$4 sm:$0xff]  }
 0x1d1   :  { %5366 = vmatprep.subr.bf16.mxu1 %v12699_v20  ;;  %v12779_v20 = vld [vmem:[#allocation7 + $0x10bc] ss:$24 sps:$4 sm:$0xff]  }
 0x1d3   :  { %5039 = vmatpush1.bf16.msra.mxu0 %v12694_v22  ;;  %v12774_v22 = vld [vmem:[#allocation7 + $0x10b0] ss:$24 sps:$4 sm:$0xff]  }
 0x1d4   :  { %5367 = vmatpush1.bf16.msra.mxu1 %v12697_v23  ;;  %5040 = vmatprep.subr.bf16.mxu0 %v12702_v25  ;;  %v12777_v23 = vld [vmem:[#allocation7 + $0x10b8] ss:$24 sps:$4 sm:$0xff]   ;;  %v12782_v25 = vld [vmem:[#allocation7 + $0x10e4] ss:$24 sps:$4 sm:$0xff]  }
 0x1d5   :  { %5368 = vmatprep.subr.bf16.mxu1 %v12705_v13  ;;  %v12785_v13 = vld [vmem:[#allocation7 + $0x10ec] ss:$24 sps:$4 sm:$0xff]  }
 0x1d7   :  { %5041 = vmatpush1.bf16.msra.mxu0 %v12700_v26  ;;  %v12780_v26 = vld [vmem:[#allocation7 + $0x10e0] ss:$24 sps:$4 sm:$0xff]  }
 0x1d8   :  { %5369 = vmatpush1.bf16.msra.mxu1 %v12703_v27  ;;  %5042 = vmatprep.subr.bf16.mxu0 %v12708_v28  ;;  %v12783_v27 = vld [vmem:[#allocation7 + $0x10e8] ss:$24 sps:$4 sm:$0xff]   ;;  %v12788_v28 = vld [vmem:[#allocation7 + $0x1114] ss:$24 sps:$4 sm:$0xff]  }
 0x1d9   :  { %5370 = vmatprep.subr.bf16.mxu1 %v12711_v32  ;;  %v12791_v32 = vld [vmem:[#allocation7 + $0x111c] ss:$24 sps:$4 sm:$0xff]  }
 0x1db   :  { %5043 = vmatpush1.bf16.msra.mxu0 %v12706_v33  ;;  %v12786_v33 = vld [vmem:[#allocation7 + $0x1110] ss:$24 sps:$4 sm:$0xff]  }
 0x1dc   :  { %5371 = vmatpush1.bf16.msra.mxu1 %v12709_v34  ;;  %5044 = vmatprep.subr.bf16.mxu0 %v12714_v21  ;;  %v12789_v34 = vld [vmem:[#allocation7 + $0x1118] ss:$24 sps:$4 sm:$0xff]   ;;  %v12794_v21 = vld [vmem:[#allocation7 + $0x1144] ss:$24 sps:$4 sm:$0xff]  }
 0x1dd   :  { %5372 = vmatprep.subr.bf16.mxu1 %v12717_v36  ;;  %v12797_v36 = vld [vmem:[#allocation7 + $0x114c] ss:$24 sps:$4 sm:$0xff]  }
 0x1df   :  { %5045 = vmatpush1.bf16.msra.mxu0 %v12712_v37  ;;  %v12792_v37 = vld [vmem:[#allocation7 + $0x1140] ss:$24 sps:$4 sm:$0xff]  }
 0x1e0   :  { %5373 = vmatpush1.bf16.msra.mxu1 %v12715_v38  ;;  %5055 = vmatprep.subr.bf16.mxu0 %v12722_v39  ;;  %v12795_v38 = vld [vmem:[#allocation7 + $0x1148] ss:$24 sps:$4 sm:$0xff]   ;;  %v12800_v39 = vld [vmem:[#allocation7 + $0x1174] ss:$24 sps:$4 sm:$0xff]  }
 0x1e1   :  { %5383 = vmatprep.subr.bf16.mxu1 %v12725_v40  ;;  %v12803_v40 = vld [vmem:[#allocation7 + $0x117c] ss:$24 sps:$4 sm:$0xff]  }
 0x1e2   :  { %5047 = vmatmul.mubr.bf16.vlgmr.msra.gmra.mrb[0].mxu0 %v14805_v42 }
 0x1e3   :  { %5375 = vmatmul.mubr.bf16.vlgmr.msra.gmra.mrb[0].mxu1 %v14805_v42  ;;  %5056 = vmatpush1.bf16.msra.mxu0 %v12720_v43  ;;  %v12798_v43 = vld [vmem:[#allocation7 + $0x1170] ss:$24 sps:$4 sm:$0xff]  }
 0x1e4   :  { %5384 = vmatpush1.bf16.msra.mxu1 %v12723_v44  ;;  %5057 = vmatprep.subr.bf16.mxu0 %v12728_v45  ;;  %v12801_v44 = vld [vmem:[#allocation7 + $0x1178] ss:$24 sps:$4 sm:$0xff]   ;;  %v12806_v45 = vld [vmem:[#allocation7 + $0x11a4] ss:$24 sps:$4 sm:$0xff]  }
 0x1e5   :  { %5385 = vmatprep.subr.bf16.mxu1 %v12731_v46  ;;  %5087 = vmatprep.mubr.bf16.mxu0 %v14809_v47  ;;  %v12809_v46 = vld [vmem:[#allocation7 + $0x11ac] ss:$24 sps:$4 sm:$0xff]  }
 0x1e6   :  { %5415 = vmatprep.mubr.bf16.mxu1 %v14809_v47 }
 0x1e7   :  { %5058 = vmatpush1.bf16.msra.mxu0 %v12726_v31  ;;  %v12804_v31 = vld [vmem:[#allocation7 + $0x11a0] ss:$24 sps:$4 sm:$0xff]  }
 0x1e8   :  { %5386 = vmatpush1.bf16.msra.mxu1 %v12729_v49  ;;  %5059 = vmatprep.subr.bf16.mxu0 %v12734_v50  ;;  %v12807_v49 = vld [vmem:[#allocation7 + $0x11a8] ss:$24 sps:$4 sm:$0xff]   ;;  %v12812_v50 = vld [vmem:[#allocation7 + $0x11d4] ss:$24 sps:$4 sm:$0xff]  }
 0x1e9   :  { %5387 = vmatprep.subr.bf16.mxu1 %v12737_v51  ;;  %v12815_v51 = vld [vmem:[#allocation7 + $0x11dc] ss:$24 sps:$4 sm:$0xff]  }
 0x1eb   :  { %5060 = vmatpush1.bf16.msra.mxu0 %v12732_v52  ;;  %v12810_v52 = vld [vmem:[#allocation7 + $0x11d0] ss:$24 sps:$4 sm:$0xff]  }
 0x1ec   :  { %5388 = vmatpush1.bf16.msra.mxu1 %v12735_v53  ;;  %5061 = vmatprep.subr.bf16.mxu0 %v12740_v54  ;;  %v12813_v53 = vld [vmem:[#allocation7 + $0x11d8] ss:$24 sps:$4 sm:$0xff]   ;;  %v12820_v54 = vld [vmem:[#allocation7 + $0x1204] ss:$24 sps:$4 sm:$0xff]  }
 0x1ed   :  { %5389 = vmatprep.subr.bf16.mxu1 %v12743_v55  ;;  %v12823_v55 = vld [vmem:[#allocation7 + $0x120c] ss:$24 sps:$4 sm:$0xff]  }
 0x1ef   :  { %5062 = vmatpush1.bf16.msra.mxu0 %v12738_v56  ;;  %v12818_v56 = vld [vmem:[#allocation7 + $0x1200] ss:$24 sps:$4 sm:$0xff]  }
 0x1f0   :  { %5390 = vmatpush1.bf16.msra.mxu1 %v12741_v57  ;;  %5063 = vmatprep.subr.bf16.mxu0 %v12746_v58  ;;  %v12821_v57 = vld [vmem:[#allocation7 + $0x1208] ss:$24 sps:$4 sm:$0xff]   ;;  %v14817_v58 = vcombine.low %v14801_v41, %v14801_v41 }
 0x1f1   :  { %5391 = vmatprep.subr.bf16.mxu1 %v12749_v59  ;;  %v14819_v59 = vld [vmem:[#allocation5 + $0x30] sm:$0xff] }
 0x1f2   :  { %v12824_v41 = vld [vmem:[#allocation7 + $0x1230] ss:$24 sps:$4 sm:$0xff]  }
 0x1f3   :  { %5064 = vmatpush1.bf16.msra.mxu0 %v12744_v60  ;;  %v12826_v60 = vld [vmem:[#allocation7 + $0x1234] ss:$24 sps:$4 sm:$0xff]  }
 0x1f4   :  { %5392 = vmatpush1.bf16.msra.mxu1 %v12747_v61  ;;  %5065 = vmatprep.subr.bf16.mxu0 %v12752_v62  ;;  %v12829_v61 = vld [vmem:[#allocation7 + $0x123c] ss:$24 sps:$4 sm:$0xff]   ;;  %v14823_v62 = vcombine.high %v14819_v59, %v14819_v59 }
 0x1f5   :  { %5393 = vmatprep.subr.bf16.mxu1 %v12755_v63  ;;  %v12827_v63 = vld [vmem:[#allocation7 + $0x1238] ss:$24 sps:$4 sm:$0xff]  }
 0x1f7   :  { %5066 = vmatpush1.bf16.msra.mxu0 %v12750_v0  ;;  %v12832_v0 = vld [vmem:[#allocation7 + $0x1264] ss:$24 sps:$4 sm:$0xff]  }
 0x1f8   :  { %5394 = vmatpush1.bf16.msra.mxu1 %v12753_v1  ;;  %5067 = vmatprep.subr.bf16.mxu0 %v12758_v2  ;;  %v12835_v1 = vld [vmem:[#allocation7 + $0x126c] ss:$24 sps:$4 sm:$0xff]   ;;  %v12830_v2 = vld [vmem:[#allocation7 + $0x1260] ss:$24 sps:$4 sm:$0xff]  }
 0x1f9   :  { %5395 = vmatprep.subr.bf16.mxu1 %v12761_v3  ;;  %v12833_v3 = vld [vmem:[#allocation7 + $0x1268] ss:$24 sps:$4 sm:$0xff]  }
 0x1fb   :  { %5068 = vmatpush1.bf16.msra.mxu0 %v12756_v4  ;;  %v12838_v4 = vld [vmem:[#allocation7 + $0x1294] ss:$24 sps:$4 sm:$0xff]  }
 0x1fc   :  { %5396 = vmatpush1.bf16.msra.mxu1 %v12759_v6  ;;  %5069 = vmatprep.subr.bf16.mxu0 %v12764_v7  ;;  %v12841_v6 = vld [vmem:[#allocation7 + $0x129c] ss:$24 sps:$4 sm:$0xff]   ;;  %v12836_v7 = vld [vmem:[#allocation7 + $0x1290] ss:$24 sps:$4 sm:$0xff]  }
 0x1fd   :  { %5397 = vmatprep.subr.bf16.mxu1 %v12767_v8  ;;  %v12839_v8 = vld [vmem:[#allocation7 + $0x1298] ss:$24 sps:$4 sm:$0xff]  }
 0x1ff   :  { %5070 = vmatpush1.bf16.msra.mxu0 %v12762_v10  ;;  %v12844_v10 = vld [vmem:[#allocation7 + $0x12c4] ss:$24 sps:$4 sm:$0xff]  }
 0x200   :  { %5398 = vmatpush1.bf16.msra.mxu1 %v12765_v11  ;;  %5071 = vmatprep.subr.bf16.mxu0 %v12770_v12  ;;  %v12847_v11 = vld [vmem:[#allocation7 + $0x12cc] ss:$24 sps:$4 sm:$0xff]   ;;  %v12842_v12 = vld [vmem:[#allocation7 + $0x12c0] ss:$24 sps:$4 sm:$0xff]  }
 0x201   :  { %5399 = vmatprep.subr.bf16.mxu1 %v12773_v14  ;;  %v12845_v14 = vld [vmem:[#allocation7 + $0x12c8] ss:$24 sps:$4 sm:$0xff]  }
 0x203   :  { %5072 = vmatpush1.bf16.msra.mxu0 %v12768_v16  ;;  %v12850_v16 = vld [vmem:[#allocation7 + $0x12f4] ss:$24 sps:$4 sm:$0xff]  }
 0x204   :  { %5400 = vmatpush1.bf16.msra.mxu1 %v12771_v17  ;;  %5073 = vmatprep.subr.bf16.mxu0 %v12776_v18  ;;  %v12853_v17 = vld [vmem:[#allocation7 + $0x12fc] ss:$24 sps:$4 sm:$0xff]   ;;  %v12848_v18 = vld [vmem:[#allocation7 + $0x12f0] ss:$24 sps:$4 sm:$0xff]  }
 0x205   :  { %5401 = vmatprep.subr.bf16.mxu1 %v12779_v20  ;;  %v12851_v20 = vld [vmem:[#allocation7 + $0x12f8] ss:$24 sps:$4 sm:$0xff]  }
 0x207   :  { %5074 = vmatpush1.bf16.msra.mxu0 %v12774_v22  ;;  %v12856_v22 = vld [vmem:[#allocation7 + $0x1324] ss:$24 sps:$4 sm:$0xff]  }
 0x208   :  { %5402 = vmatpush1.bf16.msra.mxu1 %v12777_v23  ;;  %5075 = vmatprep.subr.bf16.mxu0 %v12782_v25  ;;  %v12859_v23 = vld [vmem:[#allocation7 + $0x132c] ss:$24 sps:$4 sm:$0xff]   ;;  %v12854_v25 = vld [vmem:[#allocation7 + $0x1320] ss:$24 sps:$4 sm:$0xff]  }
 0x209   :  { %5403 = vmatprep.subr.bf16.mxu1 %v12785_v13  ;;  %v12857_v13 = vld [vmem:[#allocation7 + $0x1328] ss:$24 sps:$4 sm:$0xff]  }
 0x20b   :  { %5076 = vmatpush1.bf16.msra.mxu0 %v12780_v26  ;;  %v12862_v26 = vld [vmem:[#allocation7 + $0x1354] ss:$24 sps:$4 sm:$0xff]  }
 0x20c   :  { %5404 = vmatpush1.bf16.msra.mxu1 %v12783_v27  ;;  %5077 = vmatprep.subr.bf16.mxu0 %v12788_v28  ;;  %v12865_v27 = vld [vmem:[#allocation7 + $0x135c] ss:$24 sps:$4 sm:$0xff]   ;;  %v12860_v28 = vld [vmem:[#allocation7 + $0x1350] ss:$24 sps:$4 sm:$0xff]  }
 0x20d   :  { %5405 = vmatprep.subr.bf16.mxu1 %v12791_v32  ;;  %v12863_v32 = vld [vmem:[#allocation7 + $0x1358] ss:$24 sps:$4 sm:$0xff]  }
 0x20f   :  { %5078 = vmatpush1.bf16.msra.mxu0 %v12786_v33  ;;  %v12868_v33 = vld [vmem:[#allocation7 + $0x1384] ss:$24 sps:$4 sm:$0xff]  }
 0x210   :  { %5406 = vmatpush1.bf16.msra.mxu1 %v12789_v34  ;;  %5079 = vmatprep.subr.bf16.mxu0 %v12794_v21  ;;  %v12871_v34 = vld [vmem:[#allocation7 + $0x138c] ss:$24 sps:$4 sm:$0xff]   ;;  %v12866_v21 = vld [vmem:[#allocation7 + $0x1380] ss:$24 sps:$4 sm:$0xff]  }
 0x211   :  { %5407 = vmatprep.subr.bf16.mxu1 %v12797_v36  ;;  %v12869_v36 = vld [vmem:[#allocation7 + $0x1388] ss:$24 sps:$4 sm:$0xff]  }
 0x213   :  { %5080 = vmatpush1.bf16.msra.mxu0 %v12792_v37  ;;  %v12874_v37 = vld [vmem:[#allocation7 + $0x13b4] ss:$24 sps:$4 sm:$0xff]  }
 0x214   :  { %5408 = vmatpush1.bf16.msra.mxu1 %v12795_v38  ;;  %5081 = vmatprep.subr.bf16.mxu0 %v12800_v39  ;;  %v12877_v38 = vld [vmem:[#allocation7 + $0x13bc] ss:$24 sps:$4 sm:$0xff]   ;;  %v12872_v39 = vld [vmem:[#allocation7 + $0x13b0] ss:$24 sps:$4 sm:$0xff]  }
 0x215   :  { %5409 = vmatprep.subr.bf16.mxu1 %v12803_v40  ;;  %v12875_v40 = vld [vmem:[#allocation7 + $0x13b8] ss:$24 sps:$4 sm:$0xff]  }
 0x217   :  { %5082 = vmatpush1.bf16.msra.mxu0 %v12798_v43  ;;  %v12880_v43 = vld [vmem:[#allocation7 + $0x13e4] ss:$24 sps:$4 sm:$0xff]  }
 0x218   :  { %5410 = vmatpush1.bf16.msra.mxu1 %v12801_v44  ;;  %5083 = vmatprep.subr.bf16.mxu0 %v12806_v45  ;;  %v12883_v44 = vld [vmem:[#allocation7 + $0x13ec] ss:$24 sps:$4 sm:$0xff]   ;;  %v12878_v45 = vld [vmem:[#allocation7 + $0x13e0] ss:$24 sps:$4 sm:$0xff]  }
 0x219   :  { %5411 = vmatprep.subr.bf16.mxu1 %v12809_v46  ;;  %v12881_v46 = vld [vmem:[#allocation7 + $0x13e8] ss:$24 sps:$4 sm:$0xff]  }
 0x21b   :  { %5084 = vmatpush1.bf16.msra.mxu0 %v12804_v31  ;;  %v12886_v31 = vld [vmem:[#allocation7 + $0x1414] ss:$24 sps:$4 sm:$0xff]  }
 0x21c   :  { %5412 = vmatpush1.bf16.msra.mxu1 %v12807_v49  ;;  %5085 = vmatprep.subr.bf16.mxu0 %v12812_v50  ;;  %v12889_v49 = vld [vmem:[#allocation7 + $0x141c] ss:$24 sps:$4 sm:$0xff]   ;;  %v12884_v50 = vld [vmem:[#allocation7 + $0x1410] ss:$24 sps:$4 sm:$0xff]  }
 0x21d   :  { %5413 = vmatprep.subr.bf16.mxu1 %v12815_v51  ;;  %v12887_v51 = vld [vmem:[#allocation7 + $0x1418] ss:$24 sps:$4 sm:$0xff]  }
 0x21f   :  { %5086 = vmatpush1.bf16.msra.mxu0 %v12810_v52  ;;  %v12892_v52 = vld [vmem:[#allocation7 + $0x1444] ss:$24 sps:$4 sm:$0xff]  }
 0x220   :  { %5414 = vmatpush1.bf16.msra.mxu1 %v12813_v53  ;;  %5096 = vmatprep.subr.bf16.mxu0 %v12820_v54  ;;  %v12895_v53 = vld [vmem:[#allocation7 + $0x144c] ss:$24 sps:$4 sm:$0xff]   ;;  %v12890_v54 = vld [vmem:[#allocation7 + $0x1440] ss:$24 sps:$4 sm:$0xff]  }
 0x221   :  { %5424 = vmatprep.subr.bf16.mxu1 %v12823_v55  ;;  %v12893_v55 = vld [vmem:[#allocation7 + $0x1448] ss:$24 sps:$4 sm:$0xff]  }
 0x222   :  { %5088 = vmatmul.mubr.bf16.vlgmr.msra.gmra.mrb[0].mxu0 %v14817_v58 }
 0x223   :  { %5416 = vmatmul.mubr.bf16.vlgmr.msra.gmra.mrb[0].mxu1 %v14817_v58  ;;  %5097 = vmatpush1.bf16.msra.mxu0 %v12818_v56  ;;  %v12898_v56 = vld [vmem:[#allocation7 + $0x1474] ss:$24 sps:$4 sm:$0xff]  }
 0x224   :  { %5425 = vmatpush1.bf16.msra.mxu1 %v12821_v57  ;;  %5098 = vmatprep.subr.bf16.mxu0 %v12826_v60  ;;  %v12901_v57 = vld [vmem:[#allocation7 + $0x147c] ss:$24 sps:$4 sm:$0xff]   ;;  %v12896_v60 = vld [vmem:[#allocation7 + $0x1470] ss:$24 sps:$4 sm:$0xff]  }
 0x225   :  { %5426 = vmatprep.subr.bf16.mxu1 %v12829_v61  ;;  %5128 = vmatprep.mubr.bf16.mxu0 %v14823_v62  ;;  %v12899_v61 = vld [vmem:[#allocation7 + $0x1478] ss:$24 sps:$4 sm:$0xff]  }
 0x226   :  { %5456 = vmatprep.mubr.bf16.mxu1 %v14823_v62 }
 0x227   :  { %5099 = vmatpush1.bf16.msra.mxu0 %v12824_v41  ;;  %v12904_v41 = vld [vmem:[#allocation7 + $0x14a4] ss:$24 sps:$4 sm:$0xff]  }
 0x228   :  { %5427 = vmatpush1.bf16.msra.mxu1 %v12827_v63  ;;  %5100 = vmatprep.subr.bf16.mxu0 %v12832_v0  ;;  %v12907_v63 = vld [vmem:[#allocation7 + $0x14ac] ss:$24 sps:$4 sm:$0xff]   ;;  %v12902_v0 = vld [vmem:[#allocation7 + $0x14a0] ss:$24 sps:$4 sm:$0xff]  }
 0x229   :  { %5428 = vmatprep.subr.bf16.mxu1 %v12835_v1  ;;  %v12905_v1 = vld [vmem:[#allocation7 + $0x14a8] ss:$24 sps:$4 sm:$0xff]  }
 0x22b   :  { %5101 = vmatpush1.bf16.msra.mxu0 %v12830_v2  ;;  %v12910_v2 = vld [vmem:[#allocation7 + $0x14d4] ss:$24 sps:$4 sm:$0xff]  }
 0x22c   :  { %5429 = vmatpush1.bf16.msra.mxu1 %v12833_v3  ;;  %5102 = vmatprep.subr.bf16.mxu0 %v12838_v4  ;;  %v12913_v3 = vld [vmem:[#allocation7 + $0x14dc] ss:$24 sps:$4 sm:$0xff]   ;;  %v12908_v4 = vld [vmem:[#allocation7 + $0x14d0] ss:$24 sps:$4 sm:$0xff]  }
 0x22d   :  { %5430 = vmatprep.subr.bf16.mxu1 %v12841_v6  ;;  %v12911_v6 = vld [vmem:[#allocation7 + $0x14d8] ss:$24 sps:$4 sm:$0xff]  }
 0x22f   :  { %5103 = vmatpush1.bf16.msra.mxu0 %v12836_v7  ;;  %v12918_v7 = vld [vmem:[#allocation7 + $0x1504] ss:$24 sps:$4 sm:$0xff]  }
 0x230   :  { %5431 = vmatpush1.bf16.msra.mxu1 %v12839_v8  ;;  %5104 = vmatprep.subr.bf16.mxu0 %v12844_v10  ;;  %v12921_v8 = vld [vmem:[#allocation7 + $0x150c] ss:$24 sps:$4 sm:$0xff]   ;;  %v14829_v10 = vld [vmem:[#allocation5 + $0x38] sm:$0xff] }
 0x231   :  { %5432 = vmatprep.subr.bf16.mxu1 %v12847_v11  ;;  %v14833_v11 = vcombine.low %v14819_v59, %v14819_v59  ;;  %v12922_v59 = vld [vmem:[#allocation7 + $0x1530] ss:$24 sps:$4 sm:$0xff]  }
 0x233   :  { %5105 = vmatpush1.bf16.msra.mxu0 %v12842_v12  ;;  %v12916_v12 = vld [vmem:[#allocation7 + $0x1500] ss:$24 sps:$4 sm:$0xff]  }
 0x234   :  { %5433 = vmatpush1.bf16.msra.mxu1 %v12845_v14  ;;  %5106 = vmatprep.subr.bf16.mxu0 %v12850_v16  ;;  %v12919_v14 = vld [vmem:[#allocation7 + $0x1508] ss:$24 sps:$4 sm:$0xff]   ;;  %v12924_v16 = vld [vmem:[#allocation7 + $0x1534] ss:$24 sps:$4 sm:$0xff]  }
 0x235   :  { %5434 = vmatprep.subr.bf16.mxu1 %v12853_v17  ;;  %v12927_v17 = vld [vmem:[#allocation7 + $0x153c] ss:$24 sps:$4 sm:$0xff]  }
 0x237   :  { %5107 = vmatpush1.bf16.msra.mxu0 %v12848_v18  ;;  %v14837_v18 = vcombine.high %v14829_v10, %v14829_v10 }
 0x238   :  { %5435 = vmatpush1.bf16.msra.mxu1 %v12851_v20  ;;  %5108 = vmatprep.subr.bf16.mxu0 %v12856_v22  ;;  %v12925_v20 = vld [vmem:[#allocation7 + $0x1538] ss:$24 sps:$4 sm:$0xff]   ;;  %v12930_v22 = vld [vmem:[#allocation7 + $0x1564] ss:$24 sps:$4 sm:$0xff]  }
 0x239   :  { %5436 = vmatprep.subr.bf16.mxu1 %v12859_v23  ;;  %v12933_v23 = vld [vmem:[#allocation7 + $0x156c] ss:$24 sps:$4 sm:$0xff]  }
 0x23b   :  { %5109 = vmatpush1.bf16.msra.mxu0 %v12854_v25  ;;  %v12928_v25 = vld [vmem:[#allocation7 + $0x1560] ss:$24 sps:$4 sm:$0xff]  }
 0x23c   :  { %5437 = vmatpush1.bf16.msra.mxu1 %v12857_v13  ;;  %5110 = vmatprep.subr.bf16.mxu0 %v12862_v26  ;;  %v12931_v13 = vld [vmem:[#allocation7 + $0x1568] ss:$24 sps:$4 sm:$0xff]   ;;  %v12936_v26 = vld [vmem:[#allocation7 + $0x1594] ss:$24 sps:$4 sm:$0xff]  }
 0x23d   :  { %5438 = vmatprep.subr.bf16.mxu1 %v12865_v27  ;;  %v12939_v27 = vld [vmem:[#allocation7 + $0x159c] ss:$24 sps:$4 sm:$0xff]  }
 0x23f   :  { %5111 = vmatpush1.bf16.msra.mxu0 %v12860_v28  ;;  %v12934_v28 = vld [vmem:[#allocation7 + $0x1590] ss:$24 sps:$4 sm:$0xff]  }
 0x240   :  { %5439 = vmatpush1.bf16.msra.mxu1 %v12863_v32  ;;  %5112 = vmatprep.subr.bf16.mxu0 %v12868_v33  ;;  %v12937_v32 = vld [vmem:[#allocation7 + $0x1598] ss:$24 sps:$4 sm:$0xff]   ;;  %v12942_v33 = vld [vmem:[#allocation7 + $0x15c4] ss:$24 sps:$4 sm:$0xff]  }
 0x241   :  { %5440 = vmatprep.subr.bf16.mxu1 %v12871_v34  ;;  %v12945_v34 = vld [vmem:[#allocation7 + $0x15cc] ss:$24 sps:$4 sm:$0xff]  }
 0x243   :  { %5113 = vmatpush1.bf16.msra.mxu0 %v12866_v21  ;;  %v12940_v21 = vld [vmem:[#allocation7 + $0x15c0] ss:$24 sps:$4 sm:$0xff]  }
 0x244   :  { %5441 = vmatpush1.bf16.msra.mxu1 %v12869_v36  ;;  %5114 = vmatprep.subr.bf16.mxu0 %v12874_v37  ;;  %v12943_v36 = vld [vmem:[#allocation7 + $0x15c8] ss:$24 sps:$4 sm:$0xff]   ;;  %v12948_v37 = vld [vmem:[#allocation7 + $0x15f4] ss:$24 sps:$4 sm:$0xff]  }
 0x245   :  { %5442 = vmatprep.subr.bf16.mxu1 %v12877_v38  ;;  %v12951_v38 = vld [vmem:[#allocation7 + $0x15fc] ss:$24 sps:$4 sm:$0xff]  }
 0x247   :  { %5115 = vmatpush1.bf16.msra.mxu0 %v12872_v39  ;;  %v12946_v39 = vld [vmem:[#allocation7 + $0x15f0] ss:$24 sps:$4 sm:$0xff]  }
 0x248   :  { %5443 = vmatpush1.bf16.msra.mxu1 %v12875_v40  ;;  %5116 = vmatprep.subr.bf16.mxu0 %v12880_v43  ;;  %v12949_v40 = vld [vmem:[#allocation7 + $0x15f8] ss:$24 sps:$4 sm:$0xff]   ;;  %v12954_v43 = vld [vmem:[#allocation7 + $0x1624] ss:$24 sps:$4 sm:$0xff]  }
 0x249   :  { %5444 = vmatprep.subr.bf16.mxu1 %v12883_v44  ;;  %v12957_v44 = vld [vmem:[#allocation7 + $0x162c] ss:$24 sps:$4 sm:$0xff]  }
 0x24b   :  { %5117 = vmatpush1.bf16.msra.mxu0 %v12878_v45  ;;  %v12952_v45 = vld [vmem:[#allocation7 + $0x1620] ss:$24 sps:$4 sm:$0xff]  }
 0x24c   :  { %5445 = vmatpush1.bf16.msra.mxu1 %v12881_v46  ;;  %5118 = vmatprep.subr.bf16.mxu0 %v12886_v31  ;;  %v12955_v46 = vld [vmem:[#allocation7 + $0x1628] ss:$24 sps:$4 sm:$0xff]   ;;  %v12960_v31 = vld [vmem:[#allocation7 + $0x1654] ss:$24 sps:$4 sm:$0xff]  }
 0x24d   :  { %5446 = vmatprep.subr.bf16.mxu1 %v12889_v49  ;;  %v12963_v49 = vld [vmem:[#allocation7 + $0x165c] ss:$24 sps:$4 sm:$0xff]  }
 0x24f   :  { %5119 = vmatpush1.bf16.msra.mxu0 %v12884_v50  ;;  %v12958_v50 = vld [vmem:[#allocation7 + $0x1650] ss:$24 sps:$4 sm:$0xff]  }
 0x250   :  { %5447 = vmatpush1.bf16.msra.mxu1 %v12887_v51  ;;  %5120 = vmatprep.subr.bf16.mxu0 %v12892_v52  ;;  %v12961_v51 = vld [vmem:[#allocation7 + $0x1658] ss:$24 sps:$4 sm:$0xff]   ;;  %v12966_v52 = vld [vmem:[#allocation7 + $0x1684] ss:$24 sps:$4 sm:$0xff]  }
 0x251   :  { %5448 = vmatprep.subr.bf16.mxu1 %v12895_v53  ;;  %v12969_v53 = vld [vmem:[#allocation7 + $0x168c] ss:$24 sps:$4 sm:$0xff]  }
 0x253   :  { %5121 = vmatpush1.bf16.msra.mxu0 %v12890_v54  ;;  %v12964_v54 = vld [vmem:[#allocation7 + $0x1680] ss:$24 sps:$4 sm:$0xff]  }
 0x254   :  { %5449 = vmatpush1.bf16.msra.mxu1 %v12893_v55  ;;  %5122 = vmatprep.subr.bf16.mxu0 %v12898_v56  ;;  %v12967_v55 = vld [vmem:[#allocation7 + $0x1688] ss:$24 sps:$4 sm:$0xff]   ;;  %v12972_v56 = vld [vmem:[#allocation7 + $0x16b4] ss:$24 sps:$4 sm:$0xff]  }
 0x255   :  { %5450 = vmatprep.subr.bf16.mxu1 %v12901_v57  ;;  %v12975_v57 = vld [vmem:[#allocation7 + $0x16bc] ss:$24 sps:$4 sm:$0xff]  }
 0x257   :  { %5123 = vmatpush1.bf16.msra.mxu0 %v12896_v60  ;;  %v12970_v60 = vld [vmem:[#allocation7 + $0x16b0] ss:$24 sps:$4 sm:$0xff]  }
 0x258   :  { %5451 = vmatpush1.bf16.msra.mxu1 %v12899_v61  ;;  %5124 = vmatprep.subr.bf16.mxu0 %v12904_v41  ;;  %v12973_v61 = vld [vmem:[#allocation7 + $0x16b8] ss:$24 sps:$4 sm:$0xff]   ;;  %v12978_v41 = vld [vmem:[#allocation7 + $0x16e4] ss:$24 sps:$4 sm:$0xff]  }
 0x259   :  { %5452 = vmatprep.subr.bf16.mxu1 %v12907_v63  ;;  %v12981_v63 = vld [vmem:[#allocation7 + $0x16ec] ss:$24 sps:$4 sm:$0xff]  }
 0x25b   :  { %5125 = vmatpush1.bf16.msra.mxu0 %v12902_v0  ;;  %v12976_v0 = vld [vmem:[#allocation7 + $0x16e0] ss:$24 sps:$4 sm:$0xff]  }
 0x25c   :  { %5453 = vmatpush1.bf16.msra.mxu1 %v12905_v1  ;;  %5126 = vmatprep.subr.bf16.mxu0 %v12910_v2  ;;  %v12979_v1 = vld [vmem:[#allocation7 + $0x16e8] ss:$24 sps:$4 sm:$0xff]   ;;  %v12984_v2 = vld [vmem:[#allocation7 + $0x1714] ss:$24 sps:$4 sm:$0xff]  }
 0x25d   :  { %5454 = vmatprep.subr.bf16.mxu1 %v12913_v3  ;;  %v12987_v3 = vld [vmem:[#allocation7 + $0x171c] ss:$24 sps:$4 sm:$0xff]  }
 0x25f   :  { %5127 = vmatpush1.bf16.msra.mxu0 %v12908_v4  ;;  %v12982_v4 = vld [vmem:[#allocation7 + $0x1710] ss:$24 sps:$4 sm:$0xff]  }
 0x260   :  { %5455 = vmatpush1.bf16.msra.mxu1 %v12911_v6  ;;  %5137 = vmatprep.subr.bf16.mxu0 %v12918_v7  ;;  %v12985_v6 = vld [vmem:[#allocation7 + $0x1718] ss:$24 sps:$4 sm:$0xff]   ;;  %v12990_v7 = vld [vmem:[#allocation7 + $0x1744] ss:$24 sps:$4 sm:$0xff]  }
 0x261   :  { %5465 = vmatprep.subr.bf16.mxu1 %v12921_v8  ;;  %v12993_v8 = vld [vmem:[#allocation7 + $0x174c] ss:$24 sps:$4 sm:$0xff]  }
 0x262   :  { %5129 = vmatmul.mubr.bf16.vlgmr.msra.gmra.mrb[0].mxu0 %v14833_v11 }
 0x263   :  { %5457 = vmatmul.mubr.bf16.vlgmr.msra.gmra.mrb[0].mxu1 %v14833_v11  ;;  %5138 = vmatpush1.bf16.msra.mxu0 %v12916_v12  ;;  %v12988_v12 = vld [vmem:[#allocation7 + $0x1740] ss:$24 sps:$4 sm:$0xff]  }
 0x264   :  { %5466 = vmatpush1.bf16.msra.mxu1 %v12919_v14  ;;  %5139 = vmatprep.subr.bf16.mxu0 %v12924_v16  ;;  %v12991_v14 = vld [vmem:[#allocation7 + $0x1748] ss:$24 sps:$4 sm:$0xff]   ;;  %v12996_v16 = vld [vmem:[#allocation7 + $0x1774] ss:$24 sps:$4 sm:$0xff]  }
 0x265   :  { %5467 = vmatprep.subr.bf16.mxu1 %v12927_v17  ;;  %5169 = vmatprep.mubr.bf16.mxu0 %v14837_v18  ;;  %v12999_v17 = vld [vmem:[#allocation7 + $0x177c] ss:$24 sps:$4 sm:$0xff]  }
 0x266   :  { %5497 = vmatprep.mubr.bf16.mxu1 %v14837_v18 }
 0x267   :  { %5140 = vmatpush1.bf16.msra.mxu0 %v12922_v59  ;;  %v12994_v59 = vld [vmem:[#allocation7 + $0x1770] ss:$24 sps:$4 sm:$0xff]  }
 0x268   :  { %5468 = vmatpush1.bf16.msra.mxu1 %v12925_v20  ;;  %5141 = vmatprep.subr.bf16.mxu0 %v12930_v22  ;;  %v12997_v20 = vld [vmem:[#allocation7 + $0x1778] ss:$24 sps:$4 sm:$0xff]   ;;  %v13002_v22 = vld [vmem:[#allocation7 + $0x17a4] ss:$24 sps:$4 sm:$0xff]  }
 0x269   :  { %5469 = vmatprep.subr.bf16.mxu1 %v12933_v23  ;;  %v13005_v23 = vld [vmem:[#allocation7 + $0x17ac] ss:$24 sps:$4 sm:$0xff]  }
 0x26b   :  { %5142 = vmatpush1.bf16.msra.mxu0 %v12928_v25  ;;  %v13000_v25 = vld [vmem:[#allocation7 + $0x17a0] ss:$24 sps:$4 sm:$0xff]  }
 0x26c   :  { %5470 = vmatpush1.bf16.msra.mxu1 %v12931_v13  ;;  %5143 = vmatprep.subr.bf16.mxu0 %v12936_v26  ;;  %v13003_v13 = vld [vmem:[#allocation7 + $0x17a8] ss:$24 sps:$4 sm:$0xff]   ;;  %v13008_v26 = vld [vmem:[#allocation7 + $0x17d4] ss:$24 sps:$4 sm:$0xff]  }
 0x26d   :  { %5471 = vmatprep.subr.bf16.mxu1 %v12939_v27  ;;  %v13011_v27 = vld [vmem:[#allocation7 + $0x17dc] ss:$24 sps:$4 sm:$0xff]  }
 0x26f   :  { %5144 = vmatpush1.bf16.msra.mxu0 %v12934_v28  ;;  %v13006_v28 = vld [vmem:[#allocation7 + $0x17d0] ss:$24 sps:$4 sm:$0xff]  }
 0x270   :  { %5472 = vmatpush1.bf16.msra.mxu1 %v12937_v32  ;;  %5145 = vmatprep.subr.bf16.mxu0 %v12942_v33  ;;  %v13009_v32 = vld [vmem:[#allocation7 + $0x17d8] ss:$24 sps:$4 sm:$0xff]   ;;  %v13016_v33 = vld [vmem:[#allocation7 + $0x14] ss:$24 sps:$4 sm:$0xff]  }
 0x271   :  { %5473 = vmatprep.subr.bf16.mxu1 %v12945_v34  ;;  %v13019_v34 = vld [vmem:[#allocation11 + $0x4] ss:$24 sps:$4 sm:$0xff]  }
 0x273   :  { %5146 = vmatpush1.bf16.msra.mxu0 %v12940_v21  ;;  %v14843_v21 = vld [vmem:[#allocation2] sm:$0xff] }
 0x274   :  { %5474 = vmatpush1.bf16.msra.mxu1 %v12943_v36  ;;  %5147 = vmatprep.subr.bf16.mxu0 %v12948_v37  ;;  %v14847_v36 = vcombine.low %v14829_v10, %v14829_v10  ;;  %v13014_v37 = vld [vmem:[#allocation7 + $0x10] ss:$24 sps:$4 sm:$0xff]   ;;  %v13020_v10 = vld [vmem:[#allocation7 + $0x40] ss:$24 sps:$4 sm:$0xff]  }
 0x275   :  { %5475 = vmatprep.subr.bf16.mxu1 %v12951_v38  ;;  %v13017_v38 = vld [vmem:[#allocation11] ss:$24 sps:$4 sm:$0xff]  }
 0x277   :  { %5148 = vmatpush1.bf16.msra.mxu0 %v12946_v39  ;;  %v13022_v39 = vld [vmem:[#allocation7 + $0x44] ss:$24 sps:$4 sm:$0xff]  }
 0x278   :  { %5476 = vmatpush1.bf16.msra.mxu1 %v12949_v40  ;;  %5149 = vmatprep.subr.bf16.mxu0 %v12954_v43  ;;  %v13025_v40 = vld [vmem:[#allocation11 + $0x34] ss:$24 sps:$4 sm:$0xff]   ;;  %v14851_v43 = vcombine.high %v14843_v21, %v14843_v21 }
 0x279   :  { %5477 = vmatprep.subr.bf16.mxu1 %v12957_v44  ;;  %v13023_v44 = vld [vmem:[#allocation11 + $0x30] ss:$24 sps:$4 sm:$0xff]  }
 0x27b   :  { %5150 = vmatpush1.bf16.msra.mxu0 %v12952_v45  ;;  %v13028_v45 = vld [vmem:[#allocation7 + $0x74] ss:$24 sps:$4 sm:$0xff]  }
 0x27c   :  { %5478 = vmatpush1.bf16.msra.mxu1 %v12955_v46  ;;  %5151 = vmatprep.subr.bf16.mxu0 %v12960_v31  ;;  %v13031_v46 = vld [vmem:[#allocation11 + $0x64] ss:$24 sps:$4 sm:$0xff]  }
 0x27d   :  { %5479 = vmatprep.subr.bf16.mxu1 %v12963_v49  ;;  %v13026_v31 = vld [vmem:[#allocation7 + $0x70] ss:$24 sps:$4 sm:$0xff]  }
 0x27e   :  { %v13029_v49 = vld [vmem:[#allocation11 + $0x60] ss:$24 sps:$4 sm:$0xff]  }
 0x27f   :  { %5152 = vmatpush1.bf16.msra.mxu0 %v12958_v50  ;;  %v13034_v50 = vld [vmem:[#allocation7 + $0xa4] ss:$24 sps:$4 sm:$0xff]  }
 0x280   :  { %5480 = vmatpush1.bf16.msra.mxu1 %v12961_v51  ;;  %5153 = vmatprep.subr.bf16.mxu0 %v12966_v52  ;;  %v13037_v51 = vld [vmem:[#allocation11 + $0x94] ss:$24 sps:$4 sm:$0xff]  }
 0x281   :  { %5481 = vmatprep.subr.bf16.mxu1 %v12969_v53  ;;  %v13032_v52 = vld [vmem:[#allocation7 + $0xa0] ss:$24 sps:$4 sm:$0xff]  }
 0x282   :  { %v13035_v53 = vld [vmem:[#allocation11 + $0x90] ss:$24 sps:$4 sm:$0xff]  }
 0x283   :  { %5154 = vmatpush1.bf16.msra.mxu0 %v12964_v54  ;;  %v13040_v54 = vld [vmem:[#allocation7 + $0xd4] ss:$24 sps:$4 sm:$0xff]  }
 0x284   :  { %5482 = vmatpush1.bf16.msra.mxu1 %v12967_v55  ;;  %5155 = vmatprep.subr.bf16.mxu0 %v12972_v56  ;;  %v13043_v55 = vld [vmem:[#allocation11 + $0xc4] ss:$24 sps:$4 sm:$0xff]   ;;  %v13041_v56 = vld [vmem:[#allocation11 + $0xc0] ss:$24 sps:$4 sm:$0xff]  }
 0x285   :  { %5483 = vmatprep.subr.bf16.mxu1 %v12975_v57  ;;  %v13046_v57 = vld [vmem:[#allocation7 + $0x104] ss:$24 sps:$4 sm:$0xff]  }
 0x287   :  { %5156 = vmatpush1.bf16.msra.mxu0 %v12970_v60  ;;  %v13049_v60 = vld [vmem:[#allocation11 + $0xf4] ss:$24 sps:$4 sm:$0xff]  }
 0x288   :  { %5484 = vmatpush1.bf16.msra.mxu1 %v12973_v61  ;;  %5157 = vmatprep.subr.bf16.mxu0 %v12978_v41  ;;  %v13044_v61 = vld [vmem:[#allocation7 + $0x100] ss:$24 sps:$4 sm:$0xff]  }
 0x289   :  { %5485 = vmatprep.subr.bf16.mxu1 %v12981_v63  ;;  %v13047_v41 = vld [vmem:[#allocation11 + $0xf0] ss:$24 sps:$4 sm:$0xff]  }
 0x28a   :  { %v13052_v63 = vld [vmem:[#allocation7 + $0x134] ss:$24 sps:$4 sm:$0xff]  }
 0x28b   :  { %5158 = vmatpush1.bf16.msra.mxu0 %v12976_v0  ;;  %v13055_v0 = vld [vmem:[#allocation11 + $0x124] ss:$24 sps:$4 sm:$0xff]  }
 0x28c   :  { %5486 = vmatpush1.bf16.msra.mxu1 %v12979_v1  ;;  %5159 = vmatprep.subr.bf16.mxu0 %v12984_v2  ;;  %v13050_v1 = vld [vmem:[#allocation7 + $0x130] ss:$24 sps:$4 sm:$0xff]  }
 0x28d   :  { %5487 = vmatprep.subr.bf16.mxu1 %v12987_v3  ;;  %v13053_v2 = vld [vmem:[#allocation11 + $0x120] ss:$24 sps:$4 sm:$0xff]  }
 0x28e   :  { %v13058_v3 = vld [vmem:[#allocation7 + $0x164] ss:$24 sps:$4 sm:$0xff]  }
 0x28f   :  { %5160 = vmatpush1.bf16.msra.mxu0 %v12982_v4  ;;  %v13061_v4 = vld [vmem:[#allocation11 + $0x154] ss:$24 sps:$4 sm:$0xff]  }
 0x290   :  { %5488 = vmatpush1.bf16.msra.mxu1 %v12985_v6  ;;  %5161 = vmatprep.subr.bf16.mxu0 %v12990_v7  ;;  %v13056_v6 = vld [vmem:[#allocation7 + $0x160] ss:$24 sps:$4 sm:$0xff]  }
 0x291   :  { %5489 = vmatprep.subr.bf16.mxu1 %v12993_v8  ;;  %v13059_v7 = vld [vmem:[#allocation11 + $0x150] ss:$24 sps:$4 sm:$0xff]  }
 0x292   :  { %v13064_v8 = vld [vmem:[#allocation7 + $0x194] ss:$24 sps:$4 sm:$0xff]  }
 0x293   :  { %5162 = vmatpush1.bf16.msra.mxu0 %v12988_v12  ;;  %v13067_v12 = vld [vmem:[#allocation11 + $0x184] ss:$24 sps:$4 sm:$0xff]  }
 0x294   :  { %5490 = vmatpush1.bf16.msra.mxu1 %v12991_v14  ;;  %5163 = vmatprep.subr.bf16.mxu0 %v12996_v16  ;;  %v13062_v14 = vld [vmem:[#allocation7 + $0x190] ss:$24 sps:$4 sm:$0xff]  }
 0x295   :  { %5491 = vmatprep.subr.bf16.mxu1 %v12999_v17  ;;  %v13065_v16 = vld [vmem:[#allocation11 + $0x180] ss:$24 sps:$4 sm:$0xff]  }
 0x296   :  { %v13070_v17 = vld [vmem:[#allocation7 + $0x1c4] ss:$24 sps:$4 sm:$0xff]  }
 0x297   :  { %5164 = vmatpush1.bf16.msra.mxu0 %v12994_v59  ;;  %v13073_v59 = vld [vmem:[#allocation11 + $0x1b4] ss:$24 sps:$4 sm:$0xff]  }
 0x298   :  { %5492 = vmatpush1.bf16.msra.mxu1 %v12997_v20  ;;  %5165 = vmatprep.subr.bf16.mxu0 %v13002_v22  ;;  %v13068_v20 = vld [vmem:[#allocation7 + $0x1c0] ss:$24 sps:$4 sm:$0xff]  }
 0x299   :  { %5493 = vmatprep.subr.bf16.mxu1 %v13005_v23  ;;  %v13071_v22 = vld [vmem:[#allocation11 + $0x1b0] ss:$24 sps:$4 sm:$0xff]  }
 0x29a   :  { %v13076_v23 = vld [vmem:[#allocation7 + $0x1f4] ss:$24 sps:$4 sm:$0xff]  }
 0x29b   :  { %5166 = vmatpush1.bf16.msra.mxu0 %v13000_v25  ;;  %v13079_v25 = vld [vmem:[#allocation11 + $0x1e4] ss:$24 sps:$4 sm:$0xff]  }
 0x29c   :  { %5494 = vmatpush1.bf16.msra.mxu1 %v13003_v13  ;;  %5167 = vmatprep.subr.bf16.mxu0 %v13008_v26  ;;  %v13074_v13 = vld [vmem:[#allocation7 + $0x1f0] ss:$24 sps:$4 sm:$0xff]  }
 0x29d   :  { %5495 = vmatprep.subr.bf16.mxu1 %v13011_v27  ;;  %v13077_v26 = vld [vmem:[#allocation11 + $0x1e0] ss:$24 sps:$4 sm:$0xff]  }
 0x29e   :  { %v13082_v27 = vld [vmem:[#allocation7 + $0x224] ss:$24 sps:$4 sm:$0xff]  }
 0x29f   :  { %5168 = vmatpush1.bf16.msra.mxu0 %v13006_v28  ;;  %v13085_v28 = vld [vmem:[#allocation11 + $0x214] ss:$24 sps:$4 sm:$0xff]  }
 0x2a0   :  { %5496 = vmatpush1.bf16.msra.mxu1 %v13009_v32  ;;  %5506 = vmatprep.subr.bf16.mxu0 %v13016_v33  ;;  %v13080_v32 = vld [vmem:[#allocation7 + $0x220] ss:$24 sps:$4 sm:$0xff]  }
 0x2a1   :  { %7886 = vmatprep.subr.bf16.mxu1 %v13019_v34  ;;  %v13083_v33 = vld [vmem:[#allocation11 + $0x210] ss:$24 sps:$4 sm:$0xff]  }
 0x2a2   :  { %5170 = vmatmul.mubr.bf16.vlgmr.msra.gmra.mrb[0].mxu0 %v14847_v36  ;;  %v13088_v34 = vld [vmem:[#allocation7 + $0x254] ss:$24 sps:$4 sm:$0xff]  }
 0x2a3   :  { %5498 = vmatmul.mubr.bf16.vlgmr.msra.gmra.mrb[0].mxu1 %v14847_v36  ;;  %5507 = vmatpush1.bf16.msra.mxu0 %v13014_v37  ;;  %v13091_v37 = vld [vmem:[#allocation11 + $0x244] ss:$24 sps:$4 sm:$0xff]  }
 0x2a4   :  { %7887 = vmatpush1.bf16.msra.mxu1 %v13017_v38  ;;  %5508 = vmatprep.subr.bf16.mxu0 %v13022_v39  ;;  %v13086_v38 = vld [vmem:[#allocation7 + $0x250] ss:$24 sps:$4 sm:$0xff]  }
 0x2a5   :  { %7888 = vmatprep.subr.bf16.mxu1 %v13025_v40  ;;  %5538 = vmatprep.mubr.bf16.mxu0 %v14743_v48  ;;  %v13038_v48 = vld [vmem:[#allocation7 + $0xd0] ss:$24 sps:$4 sm:$0xff]   ;;  %v13094_v40 = vld [vmem:[#allocation7 + $0x284] ss:$24 sps:$4 sm:$0xff]  }
 0x2a6   :  { %7918 = vmatprep.mubr.bf16.mxu1 %v14851_v43  ;;  %v13089_v39 = vld [vmem:[#allocation11 + $0x240] ss:$24 sps:$4 sm:$0xff]  }
 0x2a7   :  { %5509 = vmatpush1.bf16.msra.mxu0 %v13020_v10  ;;  %v13097_v10 = vld [vmem:[#allocation11 + $0x274] ss:$24 sps:$4 sm:$0xff]  }
 0x2a8   :  { %7889 = vmatpush1.bf16.msra.mxu1 %v13023_v44  ;;  %5510 = vmatprep.subr.bf16.mxu0 %v13028_v45  ;;  %v13092_v44 = vld [vmem:[#allocation7 + $0x280] ss:$24 sps:$4 sm:$0xff]  }
 0x2a9   :  { %7890 = vmatprep.subr.bf16.mxu1 %v13031_v46  ;;  %v13095_v45 = vld [vmem:[#allocation11 + $0x270] ss:$24 sps:$4 sm:$0xff]  }
 0x2aa   :  { %v13100_v46 = vld [vmem:[#allocation7 + $0x2b4] ss:$24 sps:$4 sm:$0xff]  }
 0x2ab   :  { %5511 = vmatpush1.bf16.msra.mxu0 %v13026_v31  ;;  %v13103_v31 = vld [vmem:[#allocation11 + $0x2a4] ss:$24 sps:$4 sm:$0xff]  }
 0x2ac   :  { %7891 = vmatpush1.bf16.msra.mxu1 %v13029_v49  ;;  %5512 = vmatprep.subr.bf16.mxu0 %v13034_v50  ;;  %v13098_v49 = vld [vmem:[#allocation7 + $0x2b0] ss:$24 sps:$4 sm:$0xff]  }
 0x2ad   :  { %7892 = vmatprep.subr.bf16.mxu1 %v13037_v51  ;;  %v13101_v50 = vld [vmem:[#allocation11 + $0x2a0] ss:$24 sps:$4 sm:$0xff]  }
 0x2ae   :  { %v13106_v51 = vld [vmem:[#allocation7 + $0x2e4] ss:$24 sps:$4 sm:$0xff]  }
 0x2af   :  { %5513 = vmatpush1.bf16.msra.mxu0 %v13032_v52  ;;  %v13109_v52 = vld [vmem:[#allocation11 + $0x2d4] ss:$24 sps:$4 sm:$0xff]  }
 0x2b0   :  { %7893 = vmatpush1.bf16.msra.mxu1 %v13035_v53  ;;  %5514 = vmatprep.subr.bf16.mxu0 %v13040_v54  ;;  %v13104_v53 = vld [vmem:[#allocation7 + $0x2e0] ss:$24 sps:$4 sm:$0xff]  }
 0x2b1   :  { %7894 = vmatprep.subr.bf16.mxu1 %v13043_v55  ;;  %v13107_v54 = vld [vmem:[#allocation11 + $0x2d0] ss:$24 sps:$4 sm:$0xff]  }
 0x2b2   :  { %v13112_v55 = vld [vmem:[#allocation7 + $0x314] ss:$24 sps:$4 sm:$0xff]  }
 0x2b3   :  { %5515 = vmatpush1.bf16.msra.mxu0 %v13038_v48  ;;  %v13117_v48 = vld [vmem:[#allocation11 + $0x304] ss:$24 sps:$4 sm:$0xff]  }
 0x2b4   :  { %7895 = vmatpush1.bf16.msra.mxu1 %v13041_v56  ;;  %5516 = vmatprep.subr.bf16.mxu0 %v13046_v57  ;;  %v13110_v56 = vld [vmem:[#allocation7 + $0x310] ss:$24 sps:$4 sm:$0xff]   ;;  %v14859_v57 = vcombine.low %v14843_v21, %v14843_v21  ;;  %v13118_v21 = vld [vmem:[#allocation7 + $0x340] ss:$24 sps:$4 sm:$0xff]  }
 0x2b5   :  { %7896 = vmatprep.subr.bf16.mxu1 %v13049_v60  ;;  %v14861_v60 = vld [vmem:[#allocation2 + $0x8] sm:$0xff] }
 0x2b7   :  { %5517 = vmatpush1.bf16.msra.mxu0 %v13044_v61  ;;  %v13115_v61 = vld [vmem:[#allocation11 + $0x300] ss:$24 sps:$4 sm:$0xff]  }
 0x2b8   :  { %7897 = vmatpush1.bf16.msra.mxu1 %v13047_v41  ;;  %5518 = vmatprep.subr.bf16.mxu0 %v13052_v63  ;;  %v13120_v41 = vld [vmem:[#allocation7 + $0x344] ss:$24 sps:$4 sm:$0xff]  }
 0x2b9   :  { %7898 = vmatprep.subr.bf16.mxu1 %v13055_v0  ;;  %v13123_v63 = vld [vmem:[#allocation11 + $0x334] ss:$24 sps:$4 sm:$0xff]   ;;  %v14865_v0 = vcombine.high %v14861_v60, %v14861_v60 }
 0x2bb   :  { %5519 = vmatpush1.bf16.msra.mxu0 %v13050_v1  ;;  %v13121_v1 = vld [vmem:[#allocation11 + $0x330] ss:$24 sps:$4 sm:$0xff]  }
 0x2bc   :  { %7899 = vmatpush1.bf16.msra.mxu1 %v13053_v2  ;;  %5520 = vmatprep.subr.bf16.mxu0 %v13058_v3  ;;  %v13126_v2 = vld [vmem:[#allocation7 + $0x374] ss:$24 sps:$4 sm:$0xff]  }
 0x2bd   :  { %7900 = vmatprep.subr.bf16.mxu1 %v13061_v4  ;;  %v13129_v3 = vld [vmem:[#allocation11 + $0x364] ss:$24 sps:$4 sm:$0xff]  }
 0x2be   :  { %v13124_v4 = vld [vmem:[#allocation7 + $0x370] ss:$24 sps:$4 sm:$0xff]  }
 0x2bf   :  { %5521 = vmatpush1.bf16.msra.mxu0 %v13056_v6  ;;  %v13127_v6 = vld [vmem:[#allocation11 + $0x360] ss:$24 sps:$4 sm:$0xff]  }
 0x2c0   :  { %7901 = vmatpush1.bf16.msra.mxu1 %v13059_v7  ;;  %5522 = vmatprep.subr.bf16.mxu0 %v13064_v8  ;;  %v13135_v7 = vld [vmem:[#allocation11 + $0x394] ss:$24 sps:$4 sm:$0xff]  }
 0x2c1   :  { %7902 = vmatprep.subr.bf16.mxu1 %v13067_v12  ;;  %v13130_v8 = vld [vmem:[#allocation7 + $0x3a0] ss:$24 sps:$4 sm:$0xff]  }
 0x2c2   :  { %v13133_v12 = vld [vmem:[#allocation11 + $0x390] ss:$24 sps:$4 sm:$0xff]  }
 0x2c3   :  { %5523 = vmatpush1.bf16.msra.mxu0 %v13062_v14  ;;  %v13138_v14 = vld [vmem:[#allocation7 + $0x3d4] ss:$24 sps:$4 sm:$0xff]  }
 0x2c4   :  { %7903 = vmatpush1.bf16.msra.mxu1 %v13065_v16  ;;  %5524 = vmatprep.subr.bf16.mxu0 %v13070_v17  ;;  %v13141_v16 = vld [vmem:[#allocation11 + $0x3c4] ss:$24 sps:$4 sm:$0xff]   ;;  %v13139_v17 = vld [vmem:[#allocation11 + $0x3c0] ss:$24 sps:$4 sm:$0xff]  }
 0x2c5   :  { %7904 = vmatprep.subr.bf16.mxu1 %v13073_v59  ;;  %v13144_v59 = vld [vmem:[#allocation7 + $0x404] ss:$24 sps:$4 sm:$0xff]  }
 0x2c7   :  { %5525 = vmatpush1.bf16.msra.mxu0 %v13068_v20  ;;  %v13147_v20 = vld [vmem:[#allocation11 + $0x3f4] ss:$24 sps:$4 sm:$0xff]  }
 0x2c8   :  { %7905 = vmatpush1.bf16.msra.mxu1 %v13071_v22  ;;  %5526 = vmatprep.subr.bf16.mxu0 %v13076_v23  ;;  %v13142_v22 = vld [vmem:[#allocation7 + $0x400] ss:$24 sps:$4 sm:$0xff]  }
 0x2c9   :  { %7906 = vmatprep.subr.bf16.mxu1 %v13079_v25  ;;  %v13145_v23 = vld [vmem:[#allocation11 + $0x3f0] ss:$24 sps:$4 sm:$0xff]  }
 0x2ca   :  { %v13150_v25 = vld [vmem:[#allocation7 + $0x434] ss:$24 sps:$4 sm:$0xff]  }
 0x2cb   :  { %5527 = vmatpush1.bf16.msra.mxu0 %v13074_v13  ;;  %v13153_v13 = vld [vmem:[#allocation11 + $0x424] ss:$24 sps:$4 sm:$0xff]  }
 0x2cc   :  { %7907 = vmatpush1.bf16.msra.mxu1 %v13077_v26  ;;  %5528 = vmatprep.subr.bf16.mxu0 %v13082_v27  ;;  %v13148_v26 = vld [vmem:[#allocation7 + $0x430] ss:$24 sps:$4 sm:$0xff]  }
 0x2cd   :  { %7908 = vmatprep.subr.bf16.mxu1 %v13085_v28  ;;  %v13151_v27 = vld [vmem:[#allocation11 + $0x420] ss:$24 sps:$4 sm:$0xff]  }
 0x2ce   :  { %v13156_v28 = vld [vmem:[#allocation7 + $0x464] ss:$24 sps:$4 sm:$0xff]  }
 0x2cf   :  { %5529 = vmatpush1.bf16.msra.mxu0 %v13080_v32  ;;  %v13159_v32 = vld [vmem:[#allocation11 + $0x454] ss:$24 sps:$4 sm:$0xff]  }
 0x2d0   :  { %7909 = vmatpush1.bf16.msra.mxu1 %v13083_v33  ;;  %5530 = vmatprep.subr.bf16.mxu0 %v13088_v34  ;;  %v13154_v33 = vld [vmem:[#allocation7 + $0x460] ss:$24 sps:$4 sm:$0xff]  }
 0x2d1   :  { %7910 = vmatprep.subr.bf16.mxu1 %v13091_v37  ;;  %v13157_v34 = vld [vmem:[#allocation11 + $0x450] ss:$24 sps:$4 sm:$0xff]  }
 0x2d2   :  { %v13162_v37 = vld [vmem:[#allocation7 + $0x494] ss:$24 sps:$4 sm:$0xff]  }
 0x2d3   :  { %5531 = vmatpush1.bf16.msra.mxu0 %v13086_v38  ;;  %v13165_v38 = vld [vmem:[#allocation11 + $0x484] ss:$24 sps:$4 sm:$0xff]  }
 0x2d4   :  { %7911 = vmatpush1.bf16.msra.mxu1 %v13089_v39  ;;  %5532 = vmatprep.subr.bf16.mxu0 %v13094_v40  ;;  %v13160_v39 = vld [vmem:[#allocation7 + $0x490] ss:$24 sps:$4 sm:$0xff]  }
 0x2d5   :  { %7912 = vmatprep.subr.bf16.mxu1 %v13097_v10  ;;  %v13163_v40 = vld [vmem:[#allocation11 + $0x480] ss:$24 sps:$4 sm:$0xff]  }
 0x2d6   :  { %v13168_v10 = vld [vmem:[#allocation7 + $0x4c4] ss:$24 sps:$4 sm:$0xff]  }
 0x2d7   :  { %5533 = vmatpush1.bf16.msra.mxu0 %v13092_v44  ;;  %v13171_v44 = vld [vmem:[#allocation11 + $0x4b4] ss:$24 sps:$4 sm:$0xff]  }
 0x2d8   :  { %7913 = vmatpush1.bf16.msra.mxu1 %v13095_v45  ;;  %5534 = vmatprep.subr.bf16.mxu0 %v13100_v46  ;;  %v13166_v45 = vld [vmem:[#allocation7 + $0x4c0] ss:$24 sps:$4 sm:$0xff]  }
 0x2d9   :  { %7914 = vmatprep.subr.bf16.mxu1 %v13103_v31  ;;  %v13169_v46 = vld [vmem:[#allocation11 + $0x4b0] ss:$24 sps:$4 sm:$0xff]  }
 0x2da   :  { %v13174_v31 = vld [vmem:[#allocation7 + $0x4f4] ss:$24 sps:$4 sm:$0xff]  }
 0x2db   :  { %5535 = vmatpush1.bf16.msra.mxu0 %v13098_v49  ;;  %v13177_v49 = vld [vmem:[#allocation11 + $0x4e4] ss:$24 sps:$4 sm:$0xff]  }
 0x2dc   :  { %7915 = vmatpush1.bf16.msra.mxu1 %v13101_v50  ;;  %5536 = vmatprep.subr.bf16.mxu0 %v13106_v51  ;;  %v13172_v50 = vld [vmem:[#allocation7 + $0x4f0] ss:$24 sps:$4 sm:$0xff]  }
 0x2dd   :  { %7916 = vmatprep.subr.bf16.mxu1 %v13109_v52  ;;  %v13175_v51 = vld [vmem:[#allocation11 + $0x4e0] ss:$24 sps:$4 sm:$0xff]  }
 0x2de   :  { %v13180_v52 = vld [vmem:[#allocation7 + $0x524] ss:$24 sps:$4 sm:$0xff]  }
 0x2df   :  { %5537 = vmatpush1.bf16.msra.mxu0 %v13104_v53  ;;  %v13183_v53 = vld [vmem:[#allocation11 + $0x514] ss:$24 sps:$4 sm:$0xff]  }
 0x2e0   :  { %7917 = vmatpush1.bf16.msra.mxu1 %v13107_v54  ;;  %5547 = vmatprep.subr.bf16.mxu0 %v13112_v55  ;;  %v13178_v54 = vld [vmem:[#allocation7 + $0x520] ss:$24 sps:$4 sm:$0xff]  }
 0x2e1   :  { %7927 = vmatprep.subr.bf16.mxu1 %v13117_v48  ;;  %v13181_v55 = vld [vmem:[#allocation11 + $0x510] ss:$24 sps:$4 sm:$0xff]  }
 0x2e2   :  { %5539 = vmatmul.mubr.bf16.vlgmr.msra.gmra.mrb[4].mxu0 %v14747_v5  ;;  %v13132_v5 = vld [vmem:[#allocation7 + $0x3a4] ss:$24 sps:$4 sm:$0xff]   ;;  %v13186_v48 = vld [vmem:[#allocation7 + $0x554] ss:$24 sps:$4 sm:$0xff]  }
 0x2e3   :  { %7919 = vmatmul.mubr.bf16.vlgmr.msra.gmra.mrb[4].mxu1 %v14859_v57  ;;  %5548 = vmatpush1.bf16.msra.mxu0 %v13110_v56  ;;  %v13189_v56 = vld [vmem:[#allocation11 + $0x544] ss:$24 sps:$4 sm:$0xff]  }
 0x2e4   :  { %7928 = vmatpush1.bf16.msra.mxu1 %v13115_v61  ;;  %5549 = vmatprep.subr.bf16.mxu0 %v13120_v41  ;;  %v13184_v61 = vld [vmem:[#allocation7 + $0x550] ss:$24 sps:$4 sm:$0xff]  }
 0x2e5   :  { %7929 = vmatprep.subr.bf16.mxu1 %v13123_v63  ;;  %5579 = vmatprep.mubr.bf16.mxu0 %v14755_v30  ;;  %v13136_v30 = vld [vmem:[#allocation7 + $0x3d0] ss:$24 sps:$4 sm:$0xff]   ;;  %v13192_v63 = vld [vmem:[#allocation7 + $0x584] ss:$24 sps:$4 sm:$0xff]  }
 0x2e6   :  { %7959 = vmatprep.mubr.bf16.mxu1 %v14865_v0  ;;  %v13187_v41 = vld [vmem:[#allocation11 + $0x540] ss:$24 sps:$4 sm:$0xff]  }
 0x2e7   :  { %5550 = vmatpush1.bf16.msra.mxu0 %v13118_v21  ;;  %v13195_v21 = vld [vmem:[#allocation11 + $0x574] ss:$24 sps:$4 sm:$0xff]  }
 0x2e8   :  { %7930 = vmatpush1.bf16.msra.mxu1 %v13121_v1  ;;  %5551 = vmatprep.subr.bf16.mxu0 %v13126_v2  ;;  %v13190_v1 = vld [vmem:[#allocation7 + $0x580] ss:$24 sps:$4 sm:$0xff]  }
 0x2e9   :  { %7931 = vmatprep.subr.bf16.mxu1 %v13129_v3  ;;  %v13193_v2 = vld [vmem:[#allocation11 + $0x570] ss:$24 sps:$4 sm:$0xff]  }
 0x2ea   :  { %v13198_v3 = vld [vmem:[#allocation7 + $0x5b4] ss:$24 sps:$4 sm:$0xff]  }
 0x2eb   :  { %5552 = vmatpush1.bf16.msra.mxu0 %v13124_v4  ;;  %v13201_v4 = vld [vmem:[#allocation11 + $0x5a4] ss:$24 sps:$4 sm:$0xff]  }
 0x2ec   :  { %7932 = vmatpush1.bf16.msra.mxu1 %v13127_v6  ;;  %5553 = vmatprep.subr.bf16.mxu0 %v13132_v5  ;;  %v13196_v6 = vld [vmem:[#allocation7 + $0x5b0] ss:$24 sps:$4 sm:$0xff]  }
 0x2ed   :  { %7933 = vmatprep.subr.bf16.mxu1 %v13135_v7  ;;  %v13199_v5 = vld [vmem:[#allocation11 + $0x5a0] ss:$24 sps:$4 sm:$0xff]  }
 0x2ee   :  { %v13204_v7 = vld [vmem:[#allocation7 + $0x5e4] ss:$24 sps:$4 sm:$0xff]  }
 0x2ef   :  { %5554 = vmatpush1.bf16.msra.mxu0 %v13130_v8  ;;  %v13207_v8 = vld [vmem:[#allocation11 + $0x5d4] ss:$24 sps:$4 sm:$0xff]  }
 0x2f0   :  { %7934 = vmatpush1.bf16.msra.mxu1 %v13133_v12  ;;  %5555 = vmatprep.subr.bf16.mxu0 %v13138_v14  ;;  %v13202_v12 = vld [vmem:[#allocation7 + $0x5e0] ss:$24 sps:$4 sm:$0xff]  }
 0x2f1   :  { %7935 = vmatprep.subr.bf16.mxu1 %v13141_v16  ;;  %v13205_v14 = vld [vmem:[#allocation11 + $0x5d0] ss:$24 sps:$4 sm:$0xff]  }
 0x2f2   :  { %v13210_v16 = vld [vmem:[#allocation7 + $0x614] ss:$24 sps:$4 sm:$0xff]  }
 0x2f3   :  { %5556 = vmatpush1.bf16.msra.mxu0 %v13136_v30  ;;  %v13215_v30 = vld [vmem:[#allocation11 + $0x604] ss:$24 sps:$4 sm:$0xff]  }
 0x2f4   :  { %7936 = vmatpush1.bf16.msra.mxu1 %v13139_v17  ;;  %5557 = vmatprep.subr.bf16.mxu0 %v13144_v59  ;;  %v14871_v17 = vld [vmem:[#allocation2 + $0x10] sm:$0xff]  ;;  %v14875_v59 = vcombine.low %v14861_v60, %v14861_v60 }
 0x2f5   :  { %7937 = vmatprep.subr.bf16.mxu1 %v13147_v20  ;;  %v13208_v20 = vld [vmem:[#allocation7 + $0x610] ss:$24 sps:$4 sm:$0xff]   ;;  %v13216_v60 = vld [vmem:[#allocation7 + $0x640] ss:$24 sps:$4 sm:$0xff]  }
 0x2f7   :  { %5558 = vmatpush1.bf16.msra.mxu0 %v13142_v22  ;;  %v13213_v22 = vld [vmem:[#allocation11 + $0x600] ss:$24 sps:$4 sm:$0xff]  }
 0x2f8   :  { %7938 = vmatpush1.bf16.msra.mxu1 %v13145_v23  ;;  %5559 = vmatprep.subr.bf16.mxu0 %v13150_v25  ;;  %v13218_v23 = vld [vmem:[#allocation7 + $0x644] ss:$24 sps:$4 sm:$0xff]  }
 0x2f9   :  { %7939 = vmatprep.subr.bf16.mxu1 %v13153_v13  ;;  %v13221_v25 = vld [vmem:[#allocation11 + $0x634] ss:$24 sps:$4 sm:$0xff]   ;;  %v14879_v13 = vcombine.high %v14871_v17, %v14871_v17 }
 0x2fb   :  { %5560 = vmatpush1.bf16.msra.mxu0 %v13148_v26  ;;  %v13219_v26 = vld [vmem:[#allocation11 + $0x630] ss:$24 sps:$4 sm:$0xff]  }
 0x2fc   :  { %7940 = vmatpush1.bf16.msra.mxu1 %v13151_v27  ;;  %5561 = vmatprep.subr.bf16.mxu0 %v13156_v28  ;;  %v13224_v27 = vld [vmem:[#allocation7 + $0x674] ss:$24 sps:$4 sm:$0xff]  }
 0x2fd   :  { %7941 = vmatprep.subr.bf16.mxu1 %v13159_v32  ;;  %v13227_v28 = vld [vmem:[#allocation11 + $0x664] ss:$24 sps:$4 sm:$0xff]  }
 0x2fe   :  { %v13222_v32 = vld [vmem:[#allocation7 + $0x670] ss:$24 sps:$4 sm:$0xff]  }
 0x2ff   :  { %5562 = vmatpush1.bf16.msra.mxu0 %v13154_v33  ;;  %v13225_v33 = vld [vmem:[#allocation11 + $0x660] ss:$24 sps:$4 sm:$0xff]  }
 0x300   :  { %7942 = vmatpush1.bf16.msra.mxu1 %v13157_v34  ;;  %5563 = vmatprep.subr.bf16.mxu0 %v13162_v37  ;;  %v13233_v34 = vld [vmem:[#allocation11 + $0x694] ss:$24 sps:$4 sm:$0xff]  }
 0x301   :  { %7943 = vmatprep.subr.bf16.mxu1 %v13165_v38  ;;  %v13228_v37 = vld [vmem:[#allocation7 + $0x6a0] ss:$24 sps:$4 sm:$0xff]  }
 0x302   :  { %v13231_v38 = vld [vmem:[#allocation11 + $0x690] ss:$24 sps:$4 sm:$0xff]  }
 0x303   :  { %5564 = vmatpush1.bf16.msra.mxu0 %v13160_v39  ;;  %v13236_v39 = vld [vmem:[#allocation7 + $0x6d4] ss:$24 sps:$4 sm:$0xff]  }
 0x304   :  { %7944 = vmatpush1.bf16.msra.mxu1 %v13163_v40  ;;  %5565 = vmatprep.subr.bf16.mxu0 %v13168_v10  ;;  %v13239_v40 = vld [vmem:[#allocation11 + $0x6c4] ss:$24 sps:$4 sm:$0xff]  }
 0x305   :  { %7945 = vmatprep.subr.bf16.mxu1 %v13171_v44  ;;  %v13234_v10 = vld [vmem:[#allocation7 + $0x6d0] ss:$24 sps:$4 sm:$0xff]   ;;  %v13242_v44 = vld [vmem:[#allocation7 + $0x704] ss:$24 sps:$4 sm:$0xff]  }
 0x307   :  { %5566 = vmatpush1.bf16.msra.mxu0 %v13166_v45  ;;  %v13245_v45 = vld [vmem:[#allocation11 + $0x6f4] ss:$24 sps:$4 sm:$0xff]  }
 0x308   :  { %7946 = vmatpush1.bf16.msra.mxu1 %v13169_v46  ;;  %5567 = vmatprep.subr.bf16.mxu0 %v13174_v31  ;;  %v13240_v46 = vld [vmem:[#allocation7 + $0x700] ss:$24 sps:$4 sm:$0xff]  }
 0x309   :  { %7947 = vmatprep.subr.bf16.mxu1 %v13177_v49  ;;  %v13243_v31 = vld [vmem:[#allocation11 + $0x6f0] ss:$24 sps:$4 sm:$0xff]  }
 0x30a   :  { %v13248_v49 = vld [vmem:[#allocation7 + $0x734] ss:$24 sps:$4 sm:$0xff]  }
 0x30b   :  { %5568 = vmatpush1.bf16.msra.mxu0 %v13172_v50  ;;  %v13251_v50 = vld [vmem:[#allocation11 + $0x724] ss:$24 sps:$4 sm:$0xff]  }
 0x30c   :  { %7948 = vmatpush1.bf16.msra.mxu1 %v13175_v51  ;;  %5569 = vmatprep.subr.bf16.mxu0 %v13180_v52  ;;  %v13246_v51 = vld [vmem:[#allocation7 + $0x730] ss:$24 sps:$4 sm:$0xff]  }
 0x30d   :  { %7949 = vmatprep.subr.bf16.mxu1 %v13183_v53  ;;  %v13249_v52 = vld [vmem:[#allocation11 + $0x720] ss:$24 sps:$4 sm:$0xff]  }
 0x30e   :  { %v13254_v53 = vld [vmem:[#allocation7 + $0x764] ss:$24 sps:$4 sm:$0xff]  }
 0x30f   :  { %5570 = vmatpush1.bf16.msra.mxu0 %v13178_v54  ;;  %v13257_v54 = vld [vmem:[#allocation11 + $0x754] ss:$24 sps:$4 sm:$0xff]  }
 0x310   :  { %7950 = vmatpush1.bf16.msra.mxu1 %v13181_v55  ;;  %5571 = vmatprep.subr.bf16.mxu0 %v13186_v48  ;;  %v13252_v55 = vld [vmem:[#allocation7 + $0x760] ss:$24 sps:$4 sm:$0xff]  }
 0x311   :  { %7951 = vmatprep.subr.bf16.mxu1 %v13189_v56  ;;  %v13255_v48 = vld [vmem:[#allocation11 + $0x750] ss:$24 sps:$4 sm:$0xff]  }
 0x312   :  { %v13260_v56 = vld [vmem:[#allocation7 + $0x794] ss:$24 sps:$4 sm:$0xff]  }
 0x313   :  { %5572 = vmatpush1.bf16.msra.mxu0 %v13184_v61  ;;  %v13263_v61 = vld [vmem:[#allocation11 + $0x784] ss:$24 sps:$4 sm:$0xff]  }
 0x314   :  { %7952 = vmatpush1.bf16.msra.mxu1 %v13187_v41  ;;  %5573 = vmatprep.subr.bf16.mxu0 %v13192_v63  ;;  %v13258_v41 = vld [vmem:[#allocation7 + $0x790] ss:$24 sps:$4 sm:$0xff]  }
 0x315   :  { %7953 = vmatprep.subr.bf16.mxu1 %v13195_v21  ;;  %v13261_v63 = vld [vmem:[#allocation11 + $0x780] ss:$24 sps:$4 sm:$0xff]  }
 0x316   :  { %v13266_v21 = vld [vmem:[#allocation7 + $0x7c4] ss:$24 sps:$4 sm:$0xff]  }
 0x317   :  { %5574 = vmatpush1.bf16.msra.mxu0 %v13190_v1  ;;  %v13269_v1 = vld [vmem:[#allocation11 + $0x7b4] ss:$24 sps:$4 sm:$0xff]  }
 0x318   :  { %7954 = vmatpush1.bf16.msra.mxu1 %v13193_v2  ;;  %5575 = vmatprep.subr.bf16.mxu0 %v13198_v3  ;;  %v13264_v2 = vld [vmem:[#allocation7 + $0x7c0] ss:$24 sps:$4 sm:$0xff]  }
 0x319   :  { %7955 = vmatprep.subr.bf16.mxu1 %v13201_v4  ;;  %v13267_v3 = vld [vmem:[#allocation11 + $0x7b0] ss:$24 sps:$4 sm:$0xff]  }
 0x31a   :  { %v13272_v4 = vld [vmem:[#allocation7 + $0x7f4] ss:$24 sps:$4 sm:$0xff]  }
 0x31b   :  { %5576 = vmatpush1.bf16.msra.mxu0 %v13196_v6  ;;  %v13275_v6 = vld [vmem:[#allocation11 + $0x7e4] ss:$24 sps:$4 sm:$0xff]  }
 0x31c   :  { %7956 = vmatpush1.bf16.msra.mxu1 %v13199_v5  ;;  %5577 = vmatprep.subr.bf16.mxu0 %v13204_v7  ;;  %v13270_v5 = vld [vmem:[#allocation7 + $0x7f0] ss:$24 sps:$4 sm:$0xff]  }
 0x31d   :  { %7957 = vmatprep.subr.bf16.mxu1 %v13207_v8  ;;  %v13273_v7 = vld [vmem:[#allocation11 + $0x7e0] ss:$24 sps:$4 sm:$0xff]  }
 0x31e   :  { %v13278_v8 = vld [vmem:[#allocation7 + $0x824] ss:$24 sps:$4 sm:$0xff]  }
 0x31f   :  { %5578 = vmatpush1.bf16.msra.mxu0 %v13202_v12  ;;  %v13281_v12 = vld [vmem:[#allocation11 + $0x814] ss:$24 sps:$4 sm:$0xff]  }
 0x320   :  { %7958 = vmatpush1.bf16.msra.mxu1 %v13205_v14  ;;  %5588 = vmatprep.subr.bf16.mxu0 %v13210_v16  ;;  %v13276_v14 = vld [vmem:[#allocation7 + $0x820] ss:$24 sps:$4 sm:$0xff]  }
 0x321   :  { %7968 = vmatprep.subr.bf16.mxu1 %v13215_v30  ;;  %v13279_v16 = vld [vmem:[#allocation11 + $0x810] ss:$24 sps:$4 sm:$0xff]  }
 0x322   :  { %5580 = vmatmul.mubr.bf16.vlgmr.msra.gmra.mrb[4].mxu0 %v14761_v9  ;;  %v13230_v9 = vld [vmem:[#allocation7 + $0x6a4] ss:$24 sps:$4 sm:$0xff]   ;;  %v13284_v30 = vld [vmem:[#allocation7 + $0x854] ss:$24 sps:$4 sm:$0xff]  }
 0x323   :  { %7960 = vmatmul.mubr.bf16.vlgmr.msra.gmra.mrb[8].mxu1 %v14875_v59  ;;  %5589 = vmatpush1.bf16.msra.mxu0 %v13208_v20  ;;  %v13287_v20 = vld [vmem:[#allocation11 + $0x844] ss:$24 sps:$4 sm:$0xff]  }
 0x324   :  { %7969 = vmatpush1.bf16.msra.mxu1 %v13213_v22  ;;  %5590 = vmatprep.subr.bf16.mxu0 %v13218_v23  ;;  %v13282_v22 = vld [vmem:[#allocation7 + $0x850] ss:$24 sps:$4 sm:$0xff]  }
 0x325   :  { %7970 = vmatprep.subr.bf16.mxu1 %v13221_v25  ;;  %8000 = vmatprep.mubr.bf16.mxu1 %v14879_v13  ;;  %v13285_v23 = vld [vmem:[#allocation11 + $0x840] ss:$24 sps:$4 sm:$0xff]  }
 0x326   :  { %5620 = vmatprep.mubr.bf16.mxu0 %v14767_v15  ;;  %v13237_v15 = vld [vmem:[#allocation11 + $0x6c0] ss:$24 sps:$4 sm:$0xff]  }
 0x327   :  { %5591 = vmatpush1.bf16.msra.mxu0 %v13216_v60  ;;  %v13290_v25 = vld [vmem:[#allocation7 + $0x884] ss:$24 sps:$4 sm:$0xff]  }
 0x328   :  { %7971 = vmatpush1.bf16.msra.mxu1 %v13219_v26  ;;  %5592 = vmatprep.subr.bf16.mxu0 %v13224_v27  ;;  %v13293_v60 = vld [vmem:[#allocation11 + $0x874] ss:$24 sps:$4 sm:$0xff]   ;;  %v13291_v27 = vld [vmem:[#allocation11 + $0x870] ss:$24 sps:$4 sm:$0xff]  }
 0x329   :  { %7972 = vmatprep.subr.bf16.mxu1 %v13227_v28  ;;  %v13288_v26 = vld [vmem:[#allocation7 + $0x880] ss:$24 sps:$4 sm:$0xff]   ;;  %v13296_v28 = vld [vmem:[#allocation7 + $0x8b4] ss:$24 sps:$4 sm:$0xff]  }
 0x32b   :  { %5593 = vmatpush1.bf16.msra.mxu0 %v13222_v32  ;;  %v13299_v32 = vld [vmem:[#allocation11 + $0x8a4] ss:$24 sps:$4 sm:$0xff]  }
 0x32c   :  { %7973 = vmatpush1.bf16.msra.mxu1 %v13225_v33  ;;  %5594 = vmatprep.subr.bf16.mxu0 %v13230_v9  ;;  %v13294_v33 = vld [vmem:[#allocation7 + $0x8b0] ss:$24 sps:$4 sm:$0xff]  }
 0x32d   :  { %7974 = vmatprep.subr.bf16.mxu1 %v13233_v34  ;;  %v13297_v9 = vld [vmem:[#allocation11 + $0x8a0] ss:$24 sps:$4 sm:$0xff]  }
 0x32e   :  { %v13302_v34 = vld [vmem:[#allocation7 + $0x8e4] ss:$24 sps:$4 sm:$0xff]  }
 0x32f   :  { %5595 = vmatpush1.bf16.msra.mxu0 %v13228_v37  ;;  %v13305_v37 = vld [vmem:[#allocation11 + $0x8d4] ss:$24 sps:$4 sm:$0xff]  }
 0x330   :  { %7975 = vmatpush1.bf16.msra.mxu1 %v13231_v38  ;;  %5596 = vmatprep.subr.bf16.mxu0 %v13236_v39  ;;  %v13300_v38 = vld [vmem:[#allocation7 + $0x8e0] ss:$24 sps:$4 sm:$0xff]  }
 0x331   :  { %7976 = vmatprep.subr.bf16.mxu1 %v13239_v40  ;;  %v13303_v39 = vld [vmem:[#allocation11 + $0x8d0] ss:$24 sps:$4 sm:$0xff]  }
 0x332   :  { %v13310_v40 = vld [vmem:[#allocation7 + $0x914] ss:$24 sps:$4 sm:$0xff]  }
 0x333   :  { %5597 = vmatpush1.bf16.msra.mxu0 %v13234_v10  ;;  %v13313_v10 = vld [vmem:[#allocation11 + $0xc] ss:$24 sps:$4 sm:$0xff]  }
 0x334   :  { %7977 = vmatpush1.bf16.msra.mxu1 %v13237_v15  ;;  %5598 = vmatprep.subr.bf16.mxu0 %v13242_v44  ;;  %v14887_v15 = vcombine.low %v14871_v17, %v14871_v17  ;;  %v13308_v44 = vld [vmem:[#allocation7 + $0x910] ss:$24 sps:$4 sm:$0xff]   ;;  %v13322_v17 = vld [vmem:[#allocation7 + $0x974] ss:$24 sps:$4 sm:$0xff]  }
 0x335   :  { %7978 = vmatprep.subr.bf16.mxu1 %v13245_v45  ;;  %v13311_v45 = vld [vmem:[#allocation11 + $0x8] ss:$24 sps:$4 sm:$0xff]  }
 0x337   :  { %5599 = vmatpush1.bf16.msra.mxu0 %v13240_v46  ;;  %v13316_v46 = vld [vmem:[#allocation7 + $0x944] ss:$24 sps:$4 sm:$0xff]  }
 0x338   :  { %7979 = vmatpush1.bf16.msra.mxu1 %v13243_v31  ;;  %5600 = vmatprep.subr.bf16.mxu0 %v13248_v49  ;;  %v13319_v31 = vld [vmem:[#allocation11 + $0x3c] ss:$24 sps:$4 sm:$0xff]  }
 0x339   :  { %7980 = vmatprep.subr.bf16.mxu1 %v13251_v50  ;;  %v13314_v49 = vld [vmem:[#allocation7 + $0x940] ss:$24 sps:$4 sm:$0xff]  }
 0x33a   :  { %v13317_v50 = vld [vmem:[#allocation11 + $0x38] ss:$24 sps:$4 sm:$0xff]  }
 0x33b   :  { %5601 = vmatpush1.bf16.msra.mxu0 %v13246_v51  ;;  %v13325_v51 = vld [vmem:[#allocation11 + $0x6c] ss:$24 sps:$4 sm:$0xff]  }
 0x33c   :  { %7981 = vmatpush1.bf16.msra.mxu1 %v13249_v52  ;;  %5602 = vmatprep.subr.bf16.mxu0 %v13254_v53  ;;  %v13320_v52 = vld [vmem:[#allocation7 + $0x970] ss:$24 sps:$4 sm:$0xff]  }
 0x33d   :  { %7982 = vmatprep.subr.bf16.mxu1 %v13257_v54  ;;  %v13323_v53 = vld [vmem:[#allocation11 + $0x68] ss:$24 sps:$4 sm:$0xff]  }
 0x33e   :  { %v13328_v54 = vld [vmem:[#allocation7 + $0x9a4] ss:$24 sps:$4 sm:$0xff]  }
 0x33f   :  { %5603 = vmatpush1.bf16.msra.mxu0 %v13252_v55  ;;  %v13326_v55 = vld [vmem:[#allocation7 + $0x9a0] ss:$24 sps:$4 sm:$0xff]  }
 0x340   :  { %7983 = vmatpush1.bf16.msra.mxu1 %v13255_v48  ;;  %5604 = vmatprep.subr.bf16.mxu0 %v13260_v56  ;;  %v13329_v48 = vld [vmem:[#allocation11 + $0x98] ss:$24 sps:$4 sm:$0xff]  }
 0x341   :  { %7984 = vmatprep.subr.bf16.mxu1 %v13263_v61  ;;  %v13334_v56 = vld [vmem:[#allocation7 + $0x9d4] ss:$24 sps:$4 sm:$0xff]  }
 0x342   :  { %v13337_v61 = vld [vmem:[#allocation11 + $0xcc] ss:$24 sps:$4 sm:$0xff]  }
 0x343   :  { %5605 = vmatpush1.bf16.msra.mxu0 %v13258_v41  ;;  %v13335_v41 = vld [vmem:[#allocation11 + $0xc8] ss:$24 sps:$4 sm:$0xff]  }
 0x344   :  { %7985 = vmatpush1.bf16.msra.mxu1 %v13261_v63  ;;  %5606 = vmatprep.subr.bf16.mxu0 %v13266_v21  ;;  %v13340_v63 = vld [vmem:[#allocation7 + $0xa04] ss:$24 sps:$4 sm:$0xff]  }
 0x345   :  { %7986 = vmatprep.subr.bf16.mxu1 %v13269_v1  ;;  %v13343_v21 = vld [vmem:[#allocation11 + $0xfc] ss:$24 sps:$4 sm:$0xff]  }
 0x346   :  { %v13338_v1 = vld [vmem:[#allocation7 + $0xa00] ss:$24 sps:$4 sm:$0xff]  }
 0x347   :  { %5607 = vmatpush1.bf16.msra.mxu0 %v13264_v2  ;;  %v13341_v2 = vld [vmem:[#allocation11 + $0xf8] ss:$24 sps:$4 sm:$0xff]  }
 0x348   :  { %7987 = vmatpush1.bf16.msra.mxu1 %v13267_v3  ;;  %5608 = vmatprep.subr.bf16.mxu0 %v13272_v4  ;;  %v13346_v3 = vld [vmem:[#allocation7 + $0xa34] ss:$24 sps:$4 sm:$0xff]  }
 0x349   :  { %7988 = vmatprep.subr.bf16.mxu1 %v13275_v6  ;;  %v13349_v4 = vld [vmem:[#allocation11 + $0x12c] ss:$24 sps:$4 sm:$0xff]  }
 0x34b   :  { %5609 = vmatpush1.bf16.msra.mxu0 %v13270_v5 }
 0x34c   :  { %7989 = vmatpush1.bf16.msra.mxu1 %v13273_v7  ;;  %5610 = vmatprep.subr.bf16.mxu0 %v13278_v8 }
 0x34d   :  { %7990 = vmatprep.subr.bf16.mxu1 %v13281_v12 }
 0x34f   :  { %5611 = vmatpush1.bf16.msra.mxu0 %v13276_v14 }
 0x350   :  { %7991 = vmatpush1.bf16.msra.mxu1 %v13279_v16  ;;  %5612 = vmatprep.subr.bf16.mxu0 %v13284_v30  ;;  %v13344_v16 = vld [vmem:[#allocation7 + $0xa30] ss:$24 sps:$4 sm:$0xff]  }
 0x351   :  { %7992 = vmatprep.subr.bf16.mxu1 %v13287_v20  ;;  %v13347_v30 = vld [vmem:[#allocation11 + $0x128] ss:$24 sps:$4 sm:$0xff]  }
 0x353   :  { %5613 = vmatpush1.bf16.msra.mxu0 %v13282_v22 }
 0x354   :  { %7993 = vmatpush1.bf16.msra.mxu1 %v13285_v23  ;;  %5614 = vmatprep.subr.bf16.mxu0 %v13290_v25  ;;  %v13352_v23 = vld [vmem:[#allocation7 + $0xa64] ss:$24 sps:$4 sm:$0xff]  }
 0x355   :  { %7994 = vmatprep.subr.bf16.mxu1 %v13293_v60  ;;  %v13355_v25 = vld [vmem:[#allocation11 + $0x15c] ss:$24 sps:$4 sm:$0xff]  }
 0x356   :  { %v13350_v60 = vld [vmem:[#allocation7 + $0xa60] ss:$24 sps:$4 sm:$0xff]  }
 0x357   :  { %5615 = vmatpush1.bf16.msra.mxu0 %v13288_v26  ;;  %v13353_v26 = vld [vmem:[#allocation11 + $0x158] ss:$24 sps:$4 sm:$0xff]  }
 0x358   :  { %7995 = vmatpush1.bf16.msra.mxu1 %v13291_v27  ;;  %5616 = vmatprep.subr.bf16.mxu0 %v13296_v28  ;;  %v13358_v27 = vld [vmem:[#allocation7 + $0xa94] ss:$24 sps:$4 sm:$0xff]  }
 0x359   :  { %7996 = vmatprep.subr.bf16.mxu1 %v13299_v32  ;;  %v13361_v28 = vld [vmem:[#allocation11 + $0x18c] ss:$24 sps:$4 sm:$0xff]  }
 0x35a   :  { %v13356_v32 = vld [vmem:[#allocation7 + $0xa90] ss:$24 sps:$4 sm:$0xff]  }
 0x35b   :  { %5617 = vmatpush1.bf16.msra.mxu0 %v13294_v33  ;;  %v13359_v33 = vld [vmem:[#allocation11 + $0x188] ss:$24 sps:$4 sm:$0xff]  }
 0x35c   :  { %7997 = vmatpush1.bf16.msra.mxu1 %v13297_v9  ;;  %5618 = vmatprep.subr.bf16.mxu0 %v13302_v34  ;;  %v13364_v9 = vld [vmem:[#allocation7 + $0xac4] ss:$24 sps:$4 sm:$0xff]  }
 0x35d   :  { %7998 = vmatprep.subr.bf16.mxu1 %v13305_v37  ;;  %v13367_v34 = vld [vmem:[#allocation11 + $0x1bc] ss:$24 sps:$4 sm:$0xff]  }
 0x35e   :  { %v13362_v37 = vld [vmem:[#allocation7 + $0xac0] ss:$24 sps:$4 sm:$0xff]  }
 0x35f   :  { %5619 = vmatpush1.bf16.msra.mxu0 %v13300_v38  ;;  %v13365_v38 = vld [vmem:[#allocation11 + $0x1b8] ss:$24 sps:$4 sm:$0xff]  }
 0x360   :  { %7999 = vmatpush1.bf16.msra.mxu1 %v13303_v39  ;;  %5629 = vmatprep.subr.bf16.mxu0 %v13310_v40  ;;  %v13370_v39 = vld [vmem:[#allocation7 + $0xaf4] ss:$24 sps:$4 sm:$0xff]  }
 0x361   :  { %8009 = vmatprep.subr.bf16.mxu1 %v13313_v10  ;;  %v13373_v40 = vld [vmem:[#allocation11 + $0x1ec] ss:$24 sps:$4 sm:$0xff]  }
 0x362   :  { %5621 = vmatmul.mubr.bf16.vlgmr.msra.gmra.mrb[4].mxu0 %v14775_v19  ;;  %v13331_v19 = vld [vmem:[#allocation11 + $0x9c] ss:$24 sps:$4 sm:$0xff]   ;;  %v13368_v10 = vld [vmem:[#allocation7 + $0xaf0] ss:$24 sps:$4 sm:$0xff]  }
 0x363   :  { %8001 = vmatmul.mubr.bf16.vlgmr.msra.gmra.mrb[12].mxu1 %v14887_v15  ;;  %5630 = vmatpush1.bf16.msra.mxu0 %v13308_v44  ;;  %v13371_v44 = vld [vmem:[#allocation11 + $0x1e8] ss:$24 sps:$4 sm:$0xff]  }
 0x364   :  { %8010 = vmatpush1.bf16.msra.mxu1 %v13311_v45  ;;  %5631 = vmatprep.subr.bf16.mxu0 %v13316_v46  ;;  %v13376_v45 = vld [vmem:[#allocation7 + $0xb24] ss:$24 sps:$4 sm:$0xff]  }
 0x365   :  { %8011 = vmatprep.subr.bf16.mxu1 %v13319_v31  ;;  %5661 = vmatprep.mubr.bf16.mxu0 %v14781_v24  ;;  %v13332_v24 = vld [vmem:[#allocation7 + $0x9d0] ss:$24 sps:$4 sm:$0xff]   ;;  %v13379_v46 = vld [vmem:[#allocation11 + $0x21c] ss:$24 sps:$4 sm:$0xff]  }
 0x366   :  { %8041 = vmatprep.mubr.bf16.mxu1 %v14851_v43  ;;  %v13374_v31 = vld [vmem:[#allocation7 + $0xb20] ss:$24 sps:$4 sm:$0xff]  }
 0x367   :  { %5632 = vmatpush1.bf16.msra.mxu0 %v13314_v49  ;;  %v13377_v49 = vld [vmem:[#allocation11 + $0x218] ss:$24 sps:$4 sm:$0xff]  }
 0x368   :  { %8012 = vmatpush1.bf16.msra.mxu1 %v13317_v50  ;;  %5633 = vmatprep.subr.bf16.mxu0 %v13322_v17  ;;  %v13382_v50 = vld [vmem:[#allocation7 + $0xb54] ss:$24 sps:$4 sm:$0xff]  }
 0x369   :  { %8013 = vmatprep.subr.bf16.mxu1 %v13325_v51  ;;  %v13385_v17 = vld [vmem:[#allocation11 + $0x24c] ss:$24 sps:$4 sm:$0xff]  }
 0x36a   :  { %v13380_v51 = vld [vmem:[#allocation7 + $0xb50] ss:$24 sps:$4 sm:$0xff]  }
 0x36b   :  { %5634 = vmatpush1.bf16.msra.mxu0 %v13320_v52  ;;  %v13383_v52 = vld [vmem:[#allocation11 + $0x248] ss:$24 sps:$4 sm:$0xff]  }
 0x36c   :  { %8014 = vmatpush1.bf16.msra.mxu1 %v13323_v53  ;;  %5635 = vmatprep.subr.bf16.mxu0 %v13328_v54  ;;  %v13388_v53 = vld [vmem:[#allocation7 + $0xb84] ss:$24 sps:$4 sm:$0xff]  }
 0x36d   :  { %8015 = vmatprep.subr.bf16.mxu1 %v13331_v19  ;;  %v13391_v54 = vld [vmem:[#allocation11 + $0x27c] ss:$24 sps:$4 sm:$0xff]  }
 0x36e   :  { %v13386_v19 = vld [vmem:[#allocation7 + $0xb80] ss:$24 sps:$4 sm:$0xff]  }
 0x36f   :  { %5636 = vmatpush1.bf16.msra.mxu0 %v13326_v55  ;;  %v13389_v55 = vld [vmem:[#allocation11 + $0x278] ss:$24 sps:$4 sm:$0xff]  }
 0x370   :  { %8016 = vmatpush1.bf16.msra.mxu1 %v13329_v48  ;;  %5637 = vmatprep.subr.bf16.mxu0 %v13334_v56  ;;  %v13394_v48 = vld [vmem:[#allocation7 + $0xbb4] ss:$24 sps:$4 sm:$0xff]  }
 0x371   :  { %8017 = vmatprep.subr.bf16.mxu1 %v13337_v61  ;;  %v13397_v56 = vld [vmem:[#allocation11 + $0x2ac] ss:$24 sps:$4 sm:$0xff]  }
 0x372   :  { %v13392_v61 = vld [vmem:[#allocation7 + $0xbb0] ss:$24 sps:$4 sm:$0xff]  }
 0x373   :  { %5638 = vmatpush1.bf16.msra.mxu0 %v13332_v24  ;;  %v13395_v24 = vld [vmem:[#allocation11 + $0x2a8] ss:$24 sps:$4 sm:$0xff]  }
 0x374   :  { %8018 = vmatpush1.bf16.msra.mxu1 %v13335_v41  ;;  %5639 = vmatprep.subr.bf16.mxu0 %v13340_v63  ;;  %v13400_v41 = vld [vmem:[#allocation7 + $0xbe4] ss:$24 sps:$4 sm:$0xff]  }
 0x375   :  { %8019 = vmatprep.subr.bf16.mxu1 %v13343_v21  ;;  %v14893_v6 = vpop.f32.mrb[0].mxu0  ;;  %v13403_v63 = vld [vmem:[#allocation11 + $0x2dc] ss:$24 sps:$4 sm:$0xff]  }
 0x376   :  { %v14895_v5 = vpop.f32.mrb[0].mxu1  ;;  %v14897_v7 = vpop.f32.mrb[1].mxu0  ;;  %v13398_v21 = vld [vmem:[#allocation7 + $0xbe0] ss:$24 sps:$4 sm:$0xff]  }
 0x377   :  { %v14899_v8 = vpop.f32.mrb[1].mxu1  ;;  %v5175_v12 = vpop.f32.mrb[2].mxu0  ;;  %5640 = vmatpush1.bf16.msra.mxu0 %v13338_v1  ;;  %v13401_v1 = vld [vmem:[#allocation11 + $0x2d8] ss:$24 sps:$4 sm:$0xff]  }
 0x378   :  { %v5503_v14 = vpop.f32.mrb[2].mxu1  ;;  %8020 = vmatpush1.bf16.msra.mxu1 %v13341_v2  ;;  %v5176_v20 = vpop.f32.mrb[3].mxu0  ;;  %5641 = vmatprep.subr.bf16.mxu0 %v13346_v3  ;;  %v13406_v2 = vld [vmem:[#allocation7 + $0xc14] ss:$24 sps:$4 sm:$0xff]  }
 0x379   :  { %v5504_v22 = vpop.f32.mrb[3].mxu1  ;;  %8021 = vmatprep.subr.bf16.mxu1 %v13349_v4  ;;  %v13409_v3 = vld [vmem:[#allocation11 + $0x30c] ss:$24 sps:$4 sm:$0xff]   ;;  %v13407_v12 = vld [vmem:[#allocation11 + $0x308] ss:$24 sps:$4 sm:$0xff]  }
 0x37a   :  { %v13404_v4 = vld [vmem:[#allocation7 + $0xc10] ss:$24 sps:$4 sm:$0xff]   ;;  %v13412_v14 = vld [vmem:[#allocation7 + $0xc44] ss:$24 sps:$4 sm:$0xff]   ;;  %v13418_v22 = vld [vmem:[#allocation7 + $0xc74] ss:$24 sps:$4 sm:$0xff]  }
 0x37b   :  { %5642 = vmatpush1.bf16.msra.mxu0 %v13344_v16  ;;  %v13415_v16 = vld [vmem:[#allocation11 + $0x33c] ss:$24 sps:$4 sm:$0xff]   ;;  %v13413_v20 = vld [vmem:[#allocation11 + $0x338] ss:$24 sps:$4 sm:$0xff]  }
 0x37c   :  { %8022 = vmatpush1.bf16.msra.mxu1 %v13347_v30  ;;  %5643 = vmatprep.subr.bf16.mxu0 %v13352_v23  ;;  %v13410_v30 = vld [vmem:[#allocation7 + $0xc40] ss:$24 sps:$4 sm:$0xff]   ;;  %v13421_v23 = vld [vmem:[#allocation11 + $0x36c] ss:$24 sps:$4 sm:$0xff]  }
 0x37d   :  { %8023 = vmatprep.subr.bf16.mxu1 %v13355_v25  ;;  %v13416_v25 = vld [vmem:[#allocation7 + $0xc70] ss:$24 sps:$4 sm:$0xff]  }
 0x37f   :  { %5644 = vmatpush1.bf16.msra.mxu0 %v13350_v60  ;;  %v13419_v60 = vld [vmem:[#allocation11 + $0x368] ss:$24 sps:$4 sm:$0xff]  }
 0x380   :  { %8024 = vmatpush1.bf16.msra.mxu1 %v13353_v26  ;;  %5645 = vmatprep.subr.bf16.mxu0 %v13358_v27  ;;  %v13427_v26 = vld [vmem:[#allocation11 + $0x39c] ss:$24 sps:$4 sm:$0xff]  }
 0x381   :  { %8025 = vmatprep.subr.bf16.mxu1 %v13361_v28  ;;  %v13422_v27 = vld [vmem:[#allocation7 + $0xca0] ss:$24 sps:$4 sm:$0xff]  }
 0x382   :  { %v13425_v28 = vld [vmem:[#allocation11 + $0x398] ss:$24 sps:$4 sm:$0xff]  }
 0x383   :  { %5646 = vmatpush1.bf16.msra.mxu0 %v13356_v32  ;;  %v13430_v32 = vld [vmem:[#allocation7 + $0xcd4] ss:$24 sps:$4 sm:$0xff]  }
 0x384   :  { %8026 = vmatpush1.bf16.msra.mxu1 %v13359_v33  ;;  %5647 = vmatprep.subr.bf16.mxu0 %v13364_v9  ;;  %v13433_v33 = vld [vmem:[#allocation11 + $0x3cc] ss:$24 sps:$4 sm:$0xff]   ;;  %v13431_v9 = vld [vmem:[#allocation11 + $0x3c8] ss:$24 sps:$4 sm:$0xff]  }
 0x385   :  { %8027 = vmatprep.subr.bf16.mxu1 %v13367_v34  ;;  %v13436_v34 = vld [vmem:[#allocation7 + $0xd04] ss:$24 sps:$4 sm:$0xff]  }
 0x387   :  { %5648 = vmatpush1.bf16.msra.mxu0 %v13362_v37  ;;  %v13439_v37 = vld [vmem:[#allocation11 + $0x3fc] ss:$24 sps:$4 sm:$0xff]  }
 0x388   :  { %8028 = vmatpush1.bf16.msra.mxu1 %v13365_v38  ;;  %5649 = vmatprep.subr.bf16.mxu0 %v13370_v39  ;;  %v13434_v38 = vld [vmem:[#allocation7 + $0xd00] ss:$24 sps:$4 sm:$0xff]  }
 0x389   :  { %8029 = vmatprep.subr.bf16.mxu1 %v13373_v40  ;;  %v13437_v39 = vld [vmem:[#allocation11 + $0x3f8] ss:$24 sps:$4 sm:$0xff]  }
 0x38a   :  { %v13442_v40 = vld [vmem:[#allocation7 + $0xd34] ss:$24 sps:$4 sm:$0xff]  }
 0x38b   :  { %5650 = vmatpush1.bf16.msra.mxu0 %v13368_v10  ;;  %v13445_v10 = vld [vmem:[#allocation11 + $0x42c] ss:$24 sps:$4 sm:$0xff]  }
 0x38c   :  { %8030 = vmatpush1.bf16.msra.mxu1 %v13371_v44  ;;  %5651 = vmatprep.subr.bf16.mxu0 %v13376_v45 }
 0x38d   :  { %8031 = vmatprep.subr.bf16.mxu1 %v13379_v46  ;;  %v13440_v46 = vld [vmem:[#allocation7 + $0xd30] ss:$24 sps:$4 sm:$0xff]  }
 0x38f   :  { %5652 = vmatpush1.bf16.msra.mxu0 %v13374_v31  ;;  %v13443_v31 = vld [vmem:[#allocation11 + $0x428] ss:$24 sps:$4 sm:$0xff]  }
 0x390   :  { %8032 = vmatpush1.bf16.msra.mxu1 %v13377_v49  ;;  %5653 = vmatprep.subr.bf16.mxu0 %v13382_v50  ;;  %v13448_v50 = vld [vmem:[#allocation7 + $0xd64] ss:$24 sps:$4 sm:$0xff]  }
 0x391   :  { %8033 = vmatprep.subr.bf16.mxu1 %v13385_v17  ;;  %v13451_v17 = vld [vmem:[#allocation11 + $0x45c] ss:$24 sps:$4 sm:$0xff]  }
 0x393   :  { %5654 = vmatpush1.bf16.msra.mxu0 %v13380_v51 }
 0x394   :  { %8034 = vmatpush1.bf16.msra.mxu1 %v13383_v52  ;;  %5655 = vmatprep.subr.bf16.mxu0 %v13388_v53  ;;  %v13446_v52 = vld [vmem:[#allocation7 + $0xd60] ss:$24 sps:$4 sm:$0xff]  }
 0x395   :  { %8035 = vmatprep.subr.bf16.mxu1 %v13391_v54  ;;  %v13449_v53 = vld [vmem:[#allocation11 + $0x458] ss:$24 sps:$4 sm:$0xff]  }
 0x396   :  { %v13454_v54 = vld [vmem:[#allocation7 + $0xd94] ss:$24 sps:$4 sm:$0xff]  }
 0x397   :  { %5656 = vmatpush1.bf16.msra.mxu0 %v13386_v19  ;;  %v13457_v19 = vld [vmem:[#allocation11 + $0x48c] ss:$24 sps:$4 sm:$0xff]  }
 0x398   :  { %8036 = vmatpush1.bf16.msra.mxu1 %v13389_v55  ;;  %5657 = vmatprep.subr.bf16.mxu0 %v13394_v48  ;;  %v13452_v55 = vld [vmem:[#allocation7 + $0xd90] ss:$24 sps:$4 sm:$0xff]  }
 0x399   :  { %8037 = vmatprep.subr.bf16.mxu1 %v13397_v56  ;;  %v13455_v48 = vld [vmem:[#allocation11 + $0x488] ss:$24 sps:$4 sm:$0xff]  }
 0x39a   :  { %v13460_v56 = vld [vmem:[#allocation7 + $0xdc4] ss:$24 sps:$4 sm:$0xff]  }
 0x39b   :  { %5658 = vmatpush1.bf16.msra.mxu0 %v13392_v61  ;;  %v13463_v61 = vld [vmem:[#allocation11 + $0x4bc] ss:$24 sps:$4 sm:$0xff]  }
 0x39c   :  { %8038 = vmatpush1.bf16.msra.mxu1 %v13395_v24  ;;  %5659 = vmatprep.subr.bf16.mxu0 %v13400_v41  ;;  %v13458_v24 = vld [vmem:[#allocation7 + $0xdc0] ss:$24 sps:$4 sm:$0xff]  }
 0x39d   :  { %8039 = vmatprep.subr.bf16.mxu1 %v13403_v63  ;;  %v13461_v41 = vld [vmem:[#allocation11 + $0x4b8] ss:$24 sps:$4 sm:$0xff]  }
 0x39e   :  { %v13466_v63 = vld [vmem:[#allocation7 + $0xdf4] ss:$24 sps:$4 sm:$0xff]  }
 0x39f   :  { %5660 = vmatpush1.bf16.msra.mxu0 %v13398_v21  ;;  %v13469_v21 = vld [vmem:[#allocation11 + $0x4ec] ss:$24 sps:$4 sm:$0xff]  }
 0x3a0   :  { %8040 = vmatpush1.bf16.msra.mxu1 %v13401_v1  ;;  %5670 = vmatprep.subr.bf16.mxu0 %v13406_v2  ;;  %v13464_v1 = vld [vmem:[#allocation7 + $0xdf0] ss:$24 sps:$4 sm:$0xff]  }
 0x3a1   :  { %8050 = vmatprep.subr.bf16.mxu1 %v13409_v3  ;;  %v13467_v2 = vld [vmem:[#allocation11 + $0x4e8] ss:$24 sps:$4 sm:$0xff]  }
 0x3a2   :  { %5662 = vmatmul.mubr.bf16.vlgmr.msra.gmra.mrb[4].mxu0 %v14789_v29  ;;  %v13424_v29 = vld [vmem:[#allocation7 + $0xca4] ss:$24 sps:$4 sm:$0xff]  }
 0x3a3   :  { %8042 = vmatmul.mubr.bf16.vlgmr.msra.gmra.mrb[16].mxu1 %v14859_v57  ;;  %5671 = vmatpush1.bf16.msra.mxu0 %v13404_v4  ;;  %v13472_v3 = vld [vmem:[#allocation7 + $0xe24] ss:$24 sps:$4 sm:$0xff]  }
 0x3a4   :  { %8051 = vmatpush1.bf16.msra.mxu1 %v13407_v12  ;;  %5672 = vmatprep.subr.bf16.mxu0 %v13412_v14  ;;  %v13475_v4 = vld [vmem:[#allocation11 + $0x51c] ss:$24 sps:$4 sm:$0xff]   ;;  %v13473_v14 = vld [vmem:[#allocation11 + $0x518] ss:$24 sps:$4 sm:$0xff]  }
 0x3a5   :  { %8052 = vmatprep.subr.bf16.mxu1 %v13415_v16  ;;  %5702 = vmatprep.mubr.bf16.mxu0 %v14795_v35  ;;  %v13428_v35 = vld [vmem:[#allocation7 + $0xcd0] ss:$24 sps:$4 sm:$0xff]   ;;  %v13470_v12 = vld [vmem:[#allocation7 + $0xe20] ss:$24 sps:$4 sm:$0xff]   ;;  %v13478_v16 = vld [vmem:[#allocation7 + $0xe54] ss:$24 sps:$4 sm:$0xff]  }
 0x3a6   :  { %8082 = vmatprep.mubr.bf16.mxu1 %v14865_v0 }
 0x3a7   :  { %5673 = vmatpush1.bf16.msra.mxu0 %v13410_v30  ;;  %v13481_v30 = vld [vmem:[#allocation11 + $0x54c] ss:$24 sps:$4 sm:$0xff]  }
 0x3a8   :  { %8053 = vmatpush1.bf16.msra.mxu1 %v13413_v20  ;;  %5674 = vmatprep.subr.bf16.mxu0 %v13418_v22  ;;  %v13476_v20 = vld [vmem:[#allocation7 + $0xe50] ss:$24 sps:$4 sm:$0xff]  }
 0x3a9   :  { %8054 = vmatprep.subr.bf16.mxu1 %v13421_v23  ;;  %v13479_v22 = vld [vmem:[#allocation11 + $0x548] ss:$24 sps:$4 sm:$0xff]  }
 0x3aa   :  { %v13484_v23 = vld [vmem:[#allocation7 + $0xe84] ss:$24 sps:$4 sm:$0xff]  }
 0x3ab   :  { %5675 = vmatpush1.bf16.msra.mxu0 %v13416_v25  ;;  %v13487_v25 = vld [vmem:[#allocation11 + $0x57c] ss:$24 sps:$4 sm:$0xff]  }
 0x3ac   :  { %8055 = vmatpush1.bf16.msra.mxu1 %v13419_v60  ;;  %5676 = vmatprep.subr.bf16.mxu0 %v13424_v29  ;;  %v13482_v60 = vld [vmem:[#allocation7 + $0xe80] ss:$24 sps:$4 sm:$0xff]  }
 0x3ad   :  { %8056 = vmatprep.subr.bf16.mxu1 %v13427_v26  ;;  %v13485_v29 = vld [vmem:[#allocation11 + $0x578] ss:$24 sps:$4 sm:$0xff]  }
 0x3ae   :  { %v13490_v26 = vld [vmem:[#allocation7 + $0xeb4] ss:$24 sps:$4 sm:$0xff]  }
 0x3af   :  { %5677 = vmatpush1.bf16.msra.mxu0 %v13422_v27  ;;  %v13493_v27 = vld [vmem:[#allocation11 + $0x5ac] ss:$24 sps:$4 sm:$0xff]  }
 0x3b0   :  { %8057 = vmatpush1.bf16.msra.mxu1 %v13425_v28  ;;  %5678 = vmatprep.subr.bf16.mxu0 %v13430_v32  ;;  %v13488_v28 = vld [vmem:[#allocation7 + $0xeb0] ss:$24 sps:$4 sm:$0xff]  }
 0x3b1   :  { %8058 = vmatprep.subr.bf16.mxu1 %v13433_v33  ;;  %v13491_v32 = vld [vmem:[#allocation11 + $0x5a8] ss:$24 sps:$4 sm:$0xff]  }
 0x3b2   :  { %v13496_v33 = vld [vmem:[#allocation7 + $0xee4] ss:$24 sps:$4 sm:$0xff]  }
 0x3b3   :  { %5679 = vmatpush1.bf16.msra.mxu0 %v13428_v35  ;;  %v13499_v35 = vld [vmem:[#allocation11 + $0x5dc] ss:$24 sps:$4 sm:$0xff]  }
 0x3b4   :  { %8059 = vmatpush1.bf16.msra.mxu1 %v13431_v9  ;;  %5680 = vmatprep.subr.bf16.mxu0 %v13436_v34  ;;  %v13494_v9 = vld [vmem:[#allocation7 + $0xee0] ss:$24 sps:$4 sm:$0xff]  }
 0x3b5   :  { %8060 = vmatprep.subr.bf16.mxu1 %v13439_v37  ;;  %v13497_v34 = vld [vmem:[#allocation11 + $0x5d8] ss:$24 sps:$4 sm:$0xff]  }
 0x3b6   :  { %v14905_v44 = vpop.f32.mrb[4].mxu1  ;;  %v13502_v37 = vld [vmem:[#allocation7 + $0xf14] ss:$24 sps:$4 sm:$0xff]  }
 0x3b7   :  { %v14907_v45 = vpop.f32.mrb[5].mxu1  ;;  %5681 = vmatpush1.bf16.msra.mxu0 %v13434_v38  ;;  %v13505_v38 = vld [vmem:[#allocation11 + $0x60c] ss:$24 sps:$4 sm:$0xff]  }
 0x3b8   :  { %8061 = vmatpush1.bf16.msra.mxu1 %v13437_v39  ;;  %v7924_v49 = vpop.f32.mrb[6].mxu1  ;;  %5682 = vmatprep.subr.bf16.mxu0 %v13442_v40  ;;  %v13500_v39 = vld [vmem:[#allocation7 + $0xf10] ss:$24 sps:$4 sm:$0xff]  }
 0x3b9   :  { %8062 = vmatprep.subr.bf16.mxu1 %v13445_v10  ;;  %v7925_v51 = vpop.f32.mrb[7].mxu1  ;;  %v13503_v40 = vld [vmem:[#allocation11 + $0x608] ss:$24 sps:$4 sm:$0xff]   ;;  %v13509_v49 = vld [vmem:[#allocation11 + $0x638] ss:$24 sps:$4 sm:$0xff]  }
 0x3ba   :  { %v13508_v10 = vld [vmem:[#allocation7 + $0xf44] ss:$24 sps:$4 sm:$0xff]   ;;  %v13512_v51 = vld [vmem:[#allocation7 + $0xf70] ss:$24 sps:$4 sm:$0xff]  }
 0x3bb   :  { %5683 = vmatpush1.bf16.msra.mxu0 %v13440_v46  ;;  %v13511_v46 = vld [vmem:[#allocation11 + $0x63c] ss:$24 sps:$4 sm:$0xff]  }
 0x3bc   :  { %8063 = vmatpush1.bf16.msra.mxu1 %v13443_v31  ;;  %5684 = vmatprep.subr.bf16.mxu0 %v13448_v50  ;;  %v13506_v31 = vld [vmem:[#allocation7 + $0xf40] ss:$24 sps:$4 sm:$0xff]   ;;  %v13514_v50 = vld [vmem:[#allocation7 + $0xf74] ss:$24 sps:$4 sm:$0xff]  }
 0x3bd   :  { %8064 = vmatprep.subr.bf16.mxu1 %v13451_v17  ;;  %v13517_v17 = vld [vmem:[#allocation11 + $0x66c] ss:$24 sps:$4 sm:$0xff]  }
 0x3bf   :  { %5685 = vmatpush1.bf16.msra.mxu0 %v13446_v52  ;;  %v13515_v52 = vld [vmem:[#allocation11 + $0x668] ss:$24 sps:$4 sm:$0xff]  }
 0x3c0   :  { %8065 = vmatpush1.bf16.msra.mxu1 %v13449_v53  ;;  %5686 = vmatprep.subr.bf16.mxu0 %v13454_v54  ;;  %v13523_v53 = vld [vmem:[#allocation11 + $0x69c] ss:$24 sps:$4 sm:$0xff]  }
 0x3c1   :  { %8066 = vmatprep.subr.bf16.mxu1 %v13457_v19  ;;  %v13518_v54 = vld [vmem:[#allocation7 + $0xfa0] ss:$24 sps:$4 sm:$0xff]  }
 0x3c2   :  { %v13521_v19 = vld [vmem:[#allocation11 + $0x698] ss:$24 sps:$4 sm:$0xff]  }
 0x3c3   :  { %5687 = vmatpush1.bf16.msra.mxu0 %v13452_v55  ;;  %v13526_v55 = vld [vmem:[#allocation7 + $0xfd4] ss:$24 sps:$4 sm:$0xff]  }
 0x3c4   :  { %8067 = vmatpush1.bf16.msra.mxu1 %v13455_v48  ;;  %5688 = vmatprep.subr.bf16.mxu0 %v13460_v56  ;;  %v13529_v48 = vld [vmem:[#allocation11 + $0x6cc] ss:$24 sps:$4 sm:$0xff]  }
 0x3c5   :  { %8068 = vmatprep.subr.bf16.mxu1 %v13463_v61  ;;  %v13524_v56 = vld [vmem:[#allocation7 + $0xfd0] ss:$24 sps:$4 sm:$0xff]   ;;  %v13532_v61 = vld [vmem:[#allocation7 + $0x1004] ss:$24 sps:$4 sm:$0xff]  }
 0x3c7   :  { %5689 = vmatpush1.bf16.msra.mxu0 %v13458_v24  ;;  %v13535_v24 = vld [vmem:[#allocation11 + $0x6fc] ss:$24 sps:$4 sm:$0xff]  }
 0x3c8   :  { %8069 = vmatpush1.bf16.msra.mxu1 %v13461_v41  ;;  %5690 = vmatprep.subr.bf16.mxu0 %v13466_v63  ;;  %v13530_v41 = vld [vmem:[#allocation7 + $0x1000] ss:$24 sps:$4 sm:$0xff]  }
 0x3c9   :  { %8070 = vmatprep.subr.bf16.mxu1 %v13469_v21  ;;  %v13533_v63 = vld [vmem:[#allocation11 + $0x6f8] ss:$24 sps:$4 sm:$0xff]  }
 0x3ca   :  { %v13538_v21 = vld [vmem:[#allocation7 + $0x1034] ss:$24 sps:$4 sm:$0xff]  }
 0x3cb   :  { %5691 = vmatpush1.bf16.msra.mxu0 %v13464_v1  ;;  %v13541_v1 = vld [vmem:[#allocation11 + $0x72c] ss:$24 sps:$4 sm:$0xff]  }
 0x3cc   :  { %8071 = vmatpush1.bf16.msra.mxu1 %v13467_v2  ;;  %5692 = vmatprep.subr.bf16.mxu0 %v13472_v3 }
 0x3cd   :  { %8072 = vmatprep.subr.bf16.mxu1 %v13475_v4 }
 0x3cf   :  { %5693 = vmatpush1.bf16.msra.mxu0 %v13470_v12  ;;  %v13536_v12 = vld [vmem:[#allocation7 + $0x1030] ss:$24 sps:$4 sm:$0xff]  }
 0x3d0   :  { %8073 = vmatpush1.bf16.msra.mxu1 %v13473_v14  ;;  %5694 = vmatprep.subr.bf16.mxu0 %v13478_v16  ;;  %v13539_v14 = vld [vmem:[#allocation11 + $0x728] ss:$24 sps:$4 sm:$0xff]  }
 0x3d1   :  { %8074 = vmatprep.subr.bf16.mxu1 %v13481_v30 }
 0x3d3   :  { %5695 = vmatpush1.bf16.msra.mxu0 %v13476_v20  ;;  %v13544_v20 = vld [vmem:[#allocation7 + $0x1064] ss:$24 sps:$4 sm:$0xff]  }
 0x3d4   :  { %8075 = vmatpush1.bf16.msra.mxu1 %v13479_v22  ;;  %5696 = vmatprep.subr.bf16.mxu0 %v13484_v23  ;;  %v13547_v22 = vld [vmem:[#allocation11 + $0x75c] ss:$24 sps:$4 sm:$0xff]  }
 0x3d5   :  { %8076 = vmatprep.subr.bf16.mxu1 %v13487_v25  ;;  %v13542_v25 = vld [vmem:[#allocation7 + $0x1060] ss:$24 sps:$4 sm:$0xff]  }
 0x3d7   :  { %5697 = vmatpush1.bf16.msra.mxu0 %v13482_v60  ;;  %v13545_v60 = vld [vmem:[#allocation11 + $0x758] ss:$24 sps:$4 sm:$0xff]  }
 0x3d8   :  { %8077 = vmatpush1.bf16.msra.mxu1 %v13485_v29  ;;  %5698 = vmatprep.subr.bf16.mxu0 %v13490_v26  ;;  %v13553_v29 = vld [vmem:[#allocation11 + $0x78c] ss:$24 sps:$4 sm:$0xff]  }
 0x3d9   :  { %8078 = vmatprep.subr.bf16.mxu1 %v13493_v27  ;;  %v13548_v26 = vld [vmem:[#allocation7 + $0x1090] ss:$24 sps:$4 sm:$0xff]  }
 0x3da   :  { %v13551_v27 = vld [vmem:[#allocation11 + $0x788] ss:$24 sps:$4 sm:$0xff]  }
 0x3db   :  { %5699 = vmatpush1.bf16.msra.mxu0 %v13488_v28  ;;  %v13559_v28 = vld [vmem:[#allocation11 + $0x7bc] ss:$24 sps:$4 sm:$0xff]  }
 0x3dc   :  { %8079 = vmatpush1.bf16.msra.mxu1 %v13491_v32  ;;  %5700 = vmatprep.subr.bf16.mxu0 %v13496_v33  ;;  %v13554_v32 = vld [vmem:[#allocation7 + $0x10c0] ss:$24 sps:$4 sm:$0xff]  }
 0x3dd   :  { %8080 = vmatprep.subr.bf16.mxu1 %v13499_v35  ;;  %v13557_v33 = vld [vmem:[#allocation11 + $0x7b8] ss:$24 sps:$4 sm:$0xff]  }
 0x3de   :  { %v13562_v35 = vld [vmem:[#allocation7 + $0x10f4] ss:$24 sps:$4 sm:$0xff]  }
 0x3df   :  { %5701 = vmatpush1.bf16.msra.mxu0 %v13494_v9  ;;  %v13565_v9 = vld [vmem:[#allocation11 + $0x7ec] ss:$24 sps:$4 sm:$0xff]  }
 0x3e0   :  { %8081 = vmatpush1.bf16.msra.mxu1 %v13497_v34  ;;  %5711 = vmatprep.subr.bf16.mxu0 %v13502_v37  ;;  %v13560_v34 = vld [vmem:[#allocation7 + $0x10f0] ss:$24 sps:$4 sm:$0xff]  }
 0x3e1   :  { %8091 = vmatprep.subr.bf16.mxu1 %v13505_v38  ;;  %v13563_v37 = vld [vmem:[#allocation11 + $0x7e8] ss:$24 sps:$4 sm:$0xff]  }
 0x3e2   :  { %5703 = vmatmul.mubr.bf16.vlgmr.msra.gmra.mrb[4].mxu0 %v14805_v42  ;;  %v13520_v42 = vld [vmem:[#allocation7 + $0xfa4] ss:$24 sps:$4 sm:$0xff]  }
 0x3e3   :  { %8083 = vmatmul.mubr.bf16.vlgmr.msra.gmra.mrb[20].mxu1 %v14875_v59  ;;  %5712 = vmatpush1.bf16.msra.mxu0 %v13500_v39  ;;  %v13568_v38 = vld [vmem:[#allocation7 + $0x1124] ss:$24 sps:$4 sm:$0xff]  }
 0x3e4   :  { %8092 = vmatpush1.bf16.msra.mxu1 %v13503_v40  ;;  %5713 = vmatprep.subr.bf16.mxu0 %v13508_v10  ;;  %v13571_v39 = vld [vmem:[#allocation11 + $0x81c] ss:$24 sps:$4 sm:$0xff]   ;;  %v13569_v10 = vld [vmem:[#allocation11 + $0x818] ss:$24 sps:$4 sm:$0xff]  }
 0x3e5   :  { %8093 = vmatprep.subr.bf16.mxu1 %v13511_v46  ;;  %8123 = vmatprep.mubr.bf16.mxu1 %v14879_v13  ;;  %v13566_v40 = vld [vmem:[#allocation7 + $0x1120] ss:$24 sps:$4 sm:$0xff]   ;;  %v13574_v46 = vld [vmem:[#allocation7 + $0x1154] ss:$24 sps:$4 sm:$0xff]  }
 0x3e6   :  { %5743 = vmatprep.mubr.bf16.mxu0 %v14809_v47  ;;  %v13527_v47 = vld [vmem:[#allocation11 + $0x6c8] ss:$24 sps:$4 sm:$0xff]  }
 0x3e7   :  { %5714 = vmatpush1.bf16.msra.mxu0 %v13506_v31  ;;  %v13577_v31 = vld [vmem:[#allocation11 + $0x84c] ss:$24 sps:$4 sm:$0xff]  }
 0x3e8   :  { %8094 = vmatpush1.bf16.msra.mxu1 %v13509_v49  ;;  %5715 = vmatprep.subr.bf16.mxu0 %v13514_v50  ;;  %v13572_v49 = vld [vmem:[#allocation7 + $0x1150] ss:$24 sps:$4 sm:$0xff]  }
 0x3e9   :  { %8095 = vmatprep.subr.bf16.mxu1 %v13517_v17  ;;  %v13575_v50 = vld [vmem:[#allocation11 + $0x848] ss:$24 sps:$4 sm:$0xff]  }
 0x3ea   :  { %v13580_v17 = vld [vmem:[#allocation7 + $0x1184] ss:$24 sps:$4 sm:$0xff]  }
 0x3eb   :  { %5716 = vmatpush1.bf16.msra.mxu0 %v13512_v51  ;;  %v13583_v51 = vld [vmem:[#allocation11 + $0x87c] ss:$24 sps:$4 sm:$0xff]  }
 0x3ec   :  { %8096 = vmatpush1.bf16.msra.mxu1 %v13515_v52  ;;  %5717 = vmatprep.subr.bf16.mxu0 %v13520_v42  ;;  %v13578_v52 = vld [vmem:[#allocation7 + $0x1180] ss:$24 sps:$4 sm:$0xff]  }
 0x3ed   :  { %8097 = vmatprep.subr.bf16.mxu1 %v13523_v53  ;;  %v13581_v42 = vld [vmem:[#allocation11 + $0x878] ss:$24 sps:$4 sm:$0xff]  }
 0x3ee   :  { %v13586_v53 = vld [vmem:[#allocation7 + $0x11b4] ss:$24 sps:$4 sm:$0xff]  }
 0x3ef   :  { %5718 = vmatpush1.bf16.msra.mxu0 %v13518_v54  ;;  %v13589_v54 = vld [vmem:[#allocation11 + $0x8ac] ss:$24 sps:$4 sm:$0xff]  }
 0x3f0   :  { %8098 = vmatpush1.bf16.msra.mxu1 %v13521_v19  ;;  %5719 = vmatprep.subr.bf16.mxu0 %v13526_v55  ;;  %v13584_v19 = vld [vmem:[#allocation7 + $0x11b0] ss:$24 sps:$4 sm:$0xff]  }
 0x3f1   :  { %8099 = vmatprep.subr.bf16.mxu1 %v13529_v48  ;;  %v13587_v55 = vld [vmem:[#allocation11 + $0x8a8] ss:$24 sps:$4 sm:$0xff]  }
 0x3f2   :  { %v13592_v48 = vld [vmem:[#allocation7 + $0x11e4] ss:$24 sps:$4 sm:$0xff]  }
 0x3f3   :  { %5720 = vmatpush1.bf16.msra.mxu0 %v13524_v56  ;;  %v13595_v56 = vld [vmem:[#allocation11 + $0x8dc] ss:$24 sps:$4 sm:$0xff]  }
 0x3f4   :  { %8100 = vmatpush1.bf16.msra.mxu1 %v13527_v47  ;;  %5721 = vmatprep.subr.bf16.mxu0 %v13532_v61  ;;  %v13590_v47 = vld [vmem:[#allocation7 + $0x11e0] ss:$24 sps:$4 sm:$0xff]  }
 0x3f5   :  { %8101 = vmatprep.subr.bf16.mxu1 %v13535_v24  ;;  %v13593_v61 = vld [vmem:[#allocation11 + $0x8d8] ss:$24 sps:$4 sm:$0xff]  }
 0x3f6   :  { %v7961_v2 = vpop.f32.mrb[8].mxu1  ;;  %v13598_v24 = vld [vmem:[#allocation7 + $0x1214] ss:$24 sps:$4 sm:$0xff]  }
 0x3f7   :  { %v14914_v3 = vadd.f32 %v7961_v2, %v14905_v44  ;;  %v7963_v4 = vpop.f32.mrb[9].mxu1  ;;  %5722 = vmatpush1.bf16.msra.mxu0 %v13530_v41  ;;  %v13550_v44 = vld [vmem:[#allocation7 + $0x1094] ss:$24 sps:$4 sm:$0xff]  }
 0x3f8   :  { %8102 = vmatpush1.bf16.msra.mxu1 %v13533_v63  ;;  %v14917_v16 = vadd.f32 %v7963_v4, %v14907_v45  ;;  %v7965_v30 = vpop.f32.mrb[10].mxu1  ;;  %5723 = vmatprep.subr.bf16.mxu0 %v13538_v21  ;;  %v13556_v45 = vld [vmem:[#allocation7 + $0x10c4] ss:$24 sps:$4 sm:$0xff]   ;;  %v13596_v63 = vld [vmem:[#allocation7 + $0x1210] ss:$24 sps:$4 sm:$0xff]  }
 0x3f9   :  { %8103 = vmatprep.subr.bf16.mxu1 %v13541_v1  ;;  %v7966_v23 = vpop.f32.mrb[11].mxu1  ;;  %v13601_v41 = vld [vmem:[#allocation11 + $0x14] ss:$24 sps:$4 sm:$0xff]   ;;  %v13599_v21 = vld [vmem:[#allocation11 + $0x10] ss:$24 sps:$4 sm:$0xff]  }
 0x3fa   :  { %v13604_v1 = vld [vmem:[#allocation7 + $0x1244] ss:$24 sps:$4 sm:$0xff]   ;;  %v13602_v4 = vld [vmem:[#allocation7 + $0x1240] ss:$24 sps:$4 sm:$0xff]  }
 0x3fb   :  { %5724 = vmatpush1.bf16.msra.mxu0 %v13536_v12  ;;  %v13607_v2 = vld [vmem:[#allocation11 + $0x44] ss:$24 sps:$4 sm:$0xff]   ;;  %v13605_v12 = vld [vmem:[#allocation11 + $0x40] ss:$24 sps:$4 sm:$0xff]   ;;  %v13613_v30 = vld [vmem:[#allocation11 + $0x74] ss:$24 sps:$4 sm:$0xff]  }
 0x3fc   :  { %8104 = vmatpush1.bf16.msra.mxu1 %v13539_v14  ;;  %5725 = vmatprep.subr.bf16.mxu0 %v13544_v20  ;;  %v13610_v14 = vld [vmem:[#allocation7 + $0x1274] ss:$24 sps:$4 sm:$0xff]   ;;  %v13608_v20 = vld [vmem:[#allocation7 + $0x1270] ss:$24 sps:$4 sm:$0xff]   ;;  %v13616_v23 = vld [vmem:[#allocation7 + $0x12a4] ss:$24 sps:$4 sm:$0xff]  }
 0x3fd   :  { %8105 = vmatprep.subr.bf16.mxu1 %v13547_v22  ;;  %v13611_v22 = vld [vmem:[#allocation11 + $0x70] ss:$24 sps:$4 sm:$0xff]  }
 0x3ff   :  { %5726 = vmatpush1.bf16.msra.mxu0 %v13542_v25  ;;  %v13614_v25 = vld [vmem:[#allocation7 + $0x12a0] ss:$24 sps:$4 sm:$0xff]  }
 0x400   :  { %8106 = vmatpush1.bf16.msra.mxu1 %v13545_v60  ;;  %5727 = vmatprep.subr.bf16.mxu0 %v13550_v44  ;;  %v13617_v60 = vld [vmem:[#allocation11 + $0xa0] ss:$24 sps:$4 sm:$0xff]   ;;  %v13622_v44 = vld [vmem:[#allocation7 + $0x12d4] ss:$24 sps:$4 sm:$0xff]  }
 0x401   :  { %8107 = vmatprep.subr.bf16.mxu1 %v13553_v29  ;;  %v13625_v29 = vld [vmem:[#allocation11 + $0xd4] ss:$24 sps:$4 sm:$0xff]  }
 0x403   :  { %5728 = vmatpush1.bf16.msra.mxu0 %v13548_v26  ;;  %v13628_v26 = vld [vmem:[#allocation7 + $0x1304] ss:$24 sps:$4 sm:$0xff]  }
 0x404   :  { %8108 = vmatpush1.bf16.msra.mxu1 %v13551_v27  ;;  %5729 = vmatprep.subr.bf16.mxu0 %v13556_v45  ;;  %v13631_v27 = vld [vmem:[#allocation11 + $0x104] ss:$24 sps:$4 sm:$0xff]  }
 0x405   :  { %8109 = vmatprep.subr.bf16.mxu1 %v13559_v28  ;;  %v13626_v45 = vld [vmem:[#allocation7 + $0x1300] ss:$24 sps:$4 sm:$0xff]  }
 0x406   :  { %v13629_v28 = vld [vmem:[#allocation11 + $0x100] ss:$24 sps:$4 sm:$0xff]  }
 0x407   :  { %5730 = vmatpush1.bf16.msra.mxu0 %v13554_v32  ;;  %v13634_v32 = vld [vmem:[#allocation7 + $0x1334] ss:$24 sps:$4 sm:$0xff]  }
 0x408   :  { %8110 = vmatpush1.bf16.msra.mxu1 %v13557_v33  ;;  %5731 = vmatprep.subr.bf16.mxu0 %v13562_v35  ;;  %v13637_v33 = vld [vmem:[#allocation11 + $0x134] ss:$24 sps:$4 sm:$0xff]  }
 0x409   :  { %8111 = vmatprep.subr.bf16.mxu1 %v13565_v9 }
 0x40b   :  { %5732 = vmatpush1.bf16.msra.mxu0 %v13560_v34 }
 0x40c   :  { %8112 = vmatpush1.bf16.msra.mxu1 %v13563_v37  ;;  %5733 = vmatprep.subr.bf16.mxu0 %v13568_v38  ;;  %v13632_v38 = vld [vmem:[#allocation7 + $0x1330] ss:$24 sps:$4 sm:$0xff]  }
 0x40d   :  { %8113 = vmatprep.subr.bf16.mxu1 %v13571_v39  ;;  %v13635_v39 = vld [vmem:[#allocation11 + $0x130] ss:$24 sps:$4 sm:$0xff]  }
 0x40f   :  { %5734 = vmatpush1.bf16.msra.mxu0 %v13566_v40 }
 0x410   :  { %8114 = vmatpush1.bf16.msra.mxu1 %v13569_v10  ;;  %5735 = vmatprep.subr.bf16.mxu0 %v13574_v46  ;;  %v13640_v10 = vld [vmem:[#allocation7 + $0x1364] ss:$24 sps:$4 sm:$0xff]  }
 0x411   :  { %8115 = vmatprep.subr.bf16.mxu1 %v13577_v31  ;;  %v13643_v46 = vld [vmem:[#allocation11 + $0x164] ss:$24 sps:$4 sm:$0xff]  }
 0x413   :  { %5736 = vmatpush1.bf16.msra.mxu0 %v13572_v49  ;;  %v13638_v49 = vld [vmem:[#allocation7 + $0x1360] ss:$24 sps:$4 sm:$0xff]  }
 0x414   :  { %8116 = vmatpush1.bf16.msra.mxu1 %v13575_v50  ;;  %5737 = vmatprep.subr.bf16.mxu0 %v13580_v17  ;;  %v13641_v50 = vld [vmem:[#allocation11 + $0x160] ss:$24 sps:$4 sm:$0xff]   ;;  %v13649_v17 = vld [vmem:[#allocation11 + $0x194] ss:$24 sps:$4 sm:$0xff]  }
 0x415   :  { %8117 = vmatprep.subr.bf16.mxu1 %v13583_v51  ;;  %v13647_v51 = vld [vmem:[#allocation11 + $0x190] ss:$24 sps:$4 sm:$0xff]  }
 0x417   :  { %5738 = vmatpush1.bf16.msra.mxu0 %v13578_v52  ;;  %v13652_v52 = vld [vmem:[#allocation7 + $0x13c4] ss:$24 sps:$4 sm:$0xff]  }
 0x418   :  { %8118 = vmatpush1.bf16.msra.mxu1 %v13581_v42  ;;  %5739 = vmatprep.subr.bf16.mxu0 %v13586_v53  ;;  %v13655_v42 = vld [vmem:[#allocation11 + $0x1c4] ss:$24 sps:$4 sm:$0xff]  }
 0x419   :  { %8119 = vmatprep.subr.bf16.mxu1 %v13589_v54  ;;  %v13650_v53 = vld [vmem:[#allocation7 + $0x13c0] ss:$24 sps:$4 sm:$0xff]  }
 0x41a   :  { %v13653_v54 = vld [vmem:[#allocation11 + $0x1c0] ss:$24 sps:$4 sm:$0xff]  }
 0x41b   :  { %5740 = vmatpush1.bf16.msra.mxu0 %v13584_v19  ;;  %v13658_v19 = vld [vmem:[#allocation7 + $0x13f4] ss:$24 sps:$4 sm:$0xff]  }
 0x41c   :  { %8120 = vmatpush1.bf16.msra.mxu1 %v13587_v55  ;;  %5741 = vmatprep.subr.bf16.mxu0 %v13592_v48  ;;  %v13661_v55 = vld [vmem:[#allocation11 + $0x1f4] ss:$24 sps:$4 sm:$0xff]  }
 0x41d   :  { %8121 = vmatprep.subr.bf16.mxu1 %v13595_v56  ;;  %v13656_v48 = vld [vmem:[#allocation7 + $0x13f0] ss:$24 sps:$4 sm:$0xff]  }
 0x41e   :  { %v13659_v56 = vld [vmem:[#allocation11 + $0x1f0] ss:$24 sps:$4 sm:$0xff]  }
 0x41f   :  { %5742 = vmatpush1.bf16.msra.mxu0 %v13590_v47  ;;  %v13664_v47 = vld [vmem:[#allocation7 + $0x1424] ss:$24 sps:$4 sm:$0xff]  }
 0x420   :  { %8122 = vmatpush1.bf16.msra.mxu1 %v13593_v61  ;;  %5752 = vmatprep.subr.bf16.mxu0 %v13598_v24  ;;  %v13667_v61 = vld [vmem:[#allocation11 + $0x224] ss:$24 sps:$4 sm:$0xff]  }
 0x421   :  { %8132 = vmatprep.subr.bf16.mxu1 %v13601_v41  ;;  %v13662_v24 = vld [vmem:[#allocation7 + $0x1420] ss:$24 sps:$4 sm:$0xff]  }
 0x422   :  { %5744 = vmatmul.mubr.bf16.vlgmr.msra.gmra.mrb[4].mxu0 %v14817_v58  ;;  %v13619_v58 = vld [vmem:[#allocation11 + $0xa4] ss:$24 sps:$4 sm:$0xff]   ;;  %v13665_v41 = vld [vmem:[#allocation11 + $0x220] ss:$24 sps:$4 sm:$0xff]  }
 0x423   :  { %8124 = vmatmul.mubr.bf16.vlgmr.msra.gmra.mrb[24].mxu1 %v14887_v15  ;;  %5753 = vmatpush1.bf16.msra.mxu0 %v13596_v63  ;;  %v13670_v63 = vld [vmem:[#allocation7 + $0x1454] ss:$24 sps:$4 sm:$0xff]  }
 0x424   :  { %8133 = vmatpush1.bf16.msra.mxu1 %v13599_v21  ;;  %5754 = vmatprep.subr.bf16.mxu0 %v13604_v1  ;;  %v13673_v21 = vld [vmem:[#allocation11 + $0x254] ss:$24 sps:$4 sm:$0xff]  }
 0x425   :  { %8134 = vmatprep.subr.bf16.mxu1 %v13607_v2  ;;  %5784 = vmatprep.mubr.bf16.mxu0 %v14823_v62  ;;  %v13620_v62 = vld [vmem:[#allocation7 + $0x12d0] ss:$24 sps:$4 sm:$0xff]  }
 0x426   :  { %8164 = vmatprep.mubr.bf16.mxu1 %v14851_v43  ;;  %v13623_v43 = vld [vmem:[#allocation11 + $0xd0] ss:$24 sps:$4 sm:$0xff]  }
 0x427   :  { %5755 = vmatpush1.bf16.msra.mxu0 %v13602_v4  ;;  %v13668_v1 = vld [vmem:[#allocation7 + $0x1450] ss:$24 sps:$4 sm:$0xff]   ;;  %v13676_v4 = vld [vmem:[#allocation7 + $0x1484] ss:$24 sps:$4 sm:$0xff]  }
 0x428   :  { %8135 = vmatpush1.bf16.msra.mxu1 %v13605_v12  ;;  %5756 = vmatprep.subr.bf16.mxu0 %v13610_v14  ;;  %v13671_v2 = vld [vmem:[#allocation11 + $0x250] ss:$24 sps:$4 sm:$0xff]   ;;  %v13679_v12 = vld [vmem:[#allocation11 + $0x284] ss:$24 sps:$4 sm:$0xff]  }
 0x429   :  { %8136 = vmatprep.subr.bf16.mxu1 %v13613_v30  ;;  %v13674_v14 = vld [vmem:[#allocation7 + $0x1480] ss:$24 sps:$4 sm:$0xff]  }
 0x42a   :  { %v13677_v30 = vld [vmem:[#allocation11 + $0x280] ss:$24 sps:$4 sm:$0xff]  }
 0x42b   :  { %5757 = vmatpush1.bf16.msra.mxu0 %v13608_v20  ;;  %v13682_v20 = vld [vmem:[#allocation7 + $0x14b4] ss:$24 sps:$4 sm:$0xff]  }
 0x42c   :  { %8137 = vmatpush1.bf16.msra.mxu1 %v13611_v22  ;;  %5758 = vmatprep.subr.bf16.mxu0 %v13616_v23  ;;  %v13685_v22 = vld [vmem:[#allocation11 + $0x2b4] ss:$24 sps:$4 sm:$0xff]  }
 0x42d   :  { %8138 = vmatprep.subr.bf16.mxu1 %v13619_v58  ;;  %v13680_v23 = vld [vmem:[#allocation7 + $0x14b0] ss:$24 sps:$4 sm:$0xff]  }
 0x42e   :  { %v13683_v58 = vld [vmem:[#allocation11 + $0x2b0] ss:$24 sps:$4 sm:$0xff]  }
 0x42f   :  { %5759 = vmatpush1.bf16.msra.mxu0 %v13614_v25  ;;  %v13688_v25 = vld [vmem:[#allocation7 + $0x14e4] ss:$24 sps:$4 sm:$0xff]  }
 0x430   :  { %8139 = vmatpush1.bf16.msra.mxu1 %v13617_v60  ;;  %5760 = vmatprep.subr.bf16.mxu0 %v13622_v44  ;;  %v13691_v60 = vld [vmem:[#allocation11 + $0x2e4] ss:$24 sps:$4 sm:$0xff]  }
 0x431   :  { %8140 = vmatprep.subr.bf16.mxu1 %v13625_v29  ;;  %v13686_v44 = vld [vmem:[#allocation7 + $0x14e0] ss:$24 sps:$4 sm:$0xff]  }
 0x432   :  { %v13689_v29 = vld [vmem:[#allocation11 + $0x2e0] ss:$24 sps:$4 sm:$0xff]  }
 0x433   :  { %5761 = vmatpush1.bf16.msra.mxu0 %v13620_v62  ;;  %v13694_v62 = vld [vmem:[#allocation7 + $0x1514] ss:$24 sps:$4 sm:$0xff]  }
 0x434   :  { %8141 = vmatpush1.bf16.msra.mxu1 %v13623_v43  ;;  %5762 = vmatprep.subr.bf16.mxu0 %v13628_v26  ;;  %v13697_v43 = vld [vmem:[#allocation11 + $0x314] ss:$24 sps:$4 sm:$0xff]  }
 0x435   :  { %8142 = vmatprep.subr.bf16.mxu1 %v13631_v27  ;;  %v13692_v26 = vld [vmem:[#allocation7 + $0x1510] ss:$24 sps:$4 sm:$0xff]  }
 0x436   :  { %v8002_v35 = vpop.f32.mrb[12].mxu1  ;;  %v13695_v27 = vld [vmem:[#allocation11 + $0x310] ss:$24 sps:$4 sm:$0xff]  }
 0x437   :  { %v14924_v9 = vadd.f32 %v8002_v35, %v14914_v3  ;;  %v8004_v34 = vpop.f32.mrb[13].mxu1  ;;  %5763 = vmatpush1.bf16.msra.mxu0 %v13626_v45  ;;  %v13646_v3 = vld [vmem:[#allocation7 + $0x1394] ss:$24 sps:$4 sm:$0xff]   ;;  %v13700_v45 = vld [vmem:[#allocation7 + $0x1544] ss:$24 sps:$4 sm:$0xff]  }
 0x438   :  { %v14927_v37 = vadd.f32 %v8004_v34, %v14917_v16  ;;  %8143 = vmatpush1.bf16.msra.mxu1 %v13629_v28  ;;  %v8006_v40 = vpop.f32.mrb[14].mxu1  ;;  %5764 = vmatprep.subr.bf16.mxu0 %v13634_v32  ;;  %v13644_v16 = vld [vmem:[#allocation7 + $0x1390] ss:$24 sps:$4 sm:$0xff]   ;;  %v13698_v32 = vld [vmem:[#allocation7 + $0x1540] ss:$24 sps:$4 sm:$0xff]  }
 0x439   :  { %8144 = vmatprep.subr.bf16.mxu1 %v13637_v33  ;;  %v8007_v31 = vpop.f32.mrb[15].mxu1  ;;  %v13703_v28 = vld [vmem:[#allocation11 + $0x344] ss:$24 sps:$4 sm:$0xff]   ;;  %v13701_v33 = vld [vmem:[#allocation11 + $0x340] ss:$24 sps:$4 sm:$0xff]  }
 0x43a   :  { %v13706_v35 = vld [vmem:[#allocation7 + $0x1574] ss:$24 sps:$4 sm:$0xff]   ;;  %v13710_v40 = vld [vmem:[#allocation7 + $0x15a0] ss:$24 sps:$4 sm:$0xff]  }
 0x43b   :  { %5765 = vmatpush1.bf16.msra.mxu0 %v13632_v38  ;;  %v13709_v34 = vld [vmem:[#allocation11 + $0x374] ss:$24 sps:$4 sm:$0xff]  }
 0x43c   :  { %8145 = vmatpush1.bf16.msra.mxu1 %v13635_v39  ;;  %5766 = vmatprep.subr.bf16.mxu0 %v13640_v10  ;;  %v13704_v38 = vld [vmem:[#allocation7 + $0x1570] ss:$24 sps:$4 sm:$0xff]  }
 0x43d   :  { %8146 = vmatprep.subr.bf16.mxu1 %v13643_v46  ;;  %v13707_v39 = vld [vmem:[#allocation11 + $0x370] ss:$24 sps:$4 sm:$0xff]   ;;  %v13713_v10 = vld [vmem:[#allocation11 + $0x3a0] ss:$24 sps:$4 sm:$0xff]   ;;  %v13721_v31 = vld [vmem:[#allocation11 + $0x3d4] ss:$24 sps:$4 sm:$0xff]  }
 0x43e   :  { %v13718_v46 = vld [vmem:[#allocation7 + $0x15d4] ss:$24 sps:$4 sm:$0xff]  }
 0x43f   :  { %5767 = vmatpush1.bf16.msra.mxu0 %v13638_v49  ;;  %v13724_v49 = vld [vmem:[#allocation7 + $0x1604] ss:$24 sps:$4 sm:$0xff]  }
 0x440   :  { %8147 = vmatpush1.bf16.msra.mxu1 %v13641_v50  ;;  %5768 = vmatprep.subr.bf16.mxu0 %v13646_v3  ;;  %v13727_v50 = vld [vmem:[#allocation11 + $0x404] ss:$24 sps:$4 sm:$0xff]  }
 0x441   :  { %8148 = vmatprep.subr.bf16.mxu1 %v13649_v17  ;;  %v13722_v3 = vld [vmem:[#allocation7 + $0x1600] ss:$24 sps:$4 sm:$0xff]  }
 0x442   :  { %v13725_v17 = vld [vmem:[#allocation11 + $0x400] ss:$24 sps:$4 sm:$0xff]  }
 0x443   :  { %5769 = vmatpush1.bf16.msra.mxu0 %v13644_v16  ;;  %v13730_v16 = vld [vmem:[#allocation7 + $0x1634] ss:$24 sps:$4 sm:$0xff]  }
 0x444   :  { %8149 = vmatpush1.bf16.msra.mxu1 %v13647_v51  ;;  %5770 = vmatprep.subr.bf16.mxu0 %v13652_v52  ;;  %v13733_v51 = vld [vmem:[#allocation11 + $0x434] ss:$24 sps:$4 sm:$0xff]  }
 0x445   :  { %8150 = vmatprep.subr.bf16.mxu1 %v13655_v42 }
 0x447   :  { %5771 = vmatpush1.bf16.msra.mxu0 %v13650_v53  ;;  %v13728_v53 = vld [vmem:[#allocation7 + $0x1630] ss:$24 sps:$4 sm:$0xff]  }
 0x448   :  { %8151 = vmatpush1.bf16.msra.mxu1 %v13653_v54  ;;  %5772 = vmatprep.subr.bf16.mxu0 %v13658_v19  ;;  %v13731_v54 = vld [vmem:[#allocation11 + $0x430] ss:$24 sps:$4 sm:$0xff]  }
 0x449   :  { %8152 = vmatprep.subr.bf16.mxu1 %v13661_v55  ;;  %v13736_v55 = vld [vmem:[#allocation7 + $0x1664] ss:$24 sps:$4 sm:$0xff]  }
 0x44b   :  { %5773 = vmatpush1.bf16.msra.mxu0 %v13656_v48  ;;  %v13739_v48 = vld [vmem:[#allocation11 + $0x464] ss:$24 sps:$4 sm:$0xff]  }
 0x44c   :  { %8153 = vmatpush1.bf16.msra.mxu1 %v13659_v56  ;;  %5774 = vmatprep.subr.bf16.mxu0 %v13664_v47  ;;  %v13734_v47 = vld [vmem:[#allocation7 + $0x1660] ss:$24 sps:$4 sm:$0xff]  }
 0x44d   :  { %8154 = vmatprep.subr.bf16.mxu1 %v13667_v61  ;;  %v13737_v61 = vld [vmem:[#allocation11 + $0x460] ss:$24 sps:$4 sm:$0xff]  }
 0x44f   :  { %5775 = vmatpush1.bf16.msra.mxu0 %v13662_v24  ;;  %v13742_v24 = vld [vmem:[#allocation7 + $0x1694] ss:$24 sps:$4 sm:$0xff]  }
 0x450   :  { %8155 = vmatpush1.bf16.msra.mxu1 %v13665_v41  ;;  %5776 = vmatprep.subr.bf16.mxu0 %v13670_v63  ;;  %v13745_v41 = vld [vmem:[#allocation11 + $0x494] ss:$24 sps:$4 sm:$0xff]  }
 0x451   :  { %8156 = vmatprep.subr.bf16.mxu1 %v13673_v21  ;;  %v13740_v63 = vld [vmem:[#allocation7 + $0x1690] ss:$24 sps:$4 sm:$0xff]  }
 0x452   :  { %v13743_v21 = vld [vmem:[#allocation11 + $0x490] ss:$24 sps:$4 sm:$0xff]  }
 0x453   :  { %5777 = vmatpush1.bf16.msra.mxu0 %v13668_v1  ;;  %v13748_v1 = vld [vmem:[#allocation7 + $0x16c4] ss:$24 sps:$4 sm:$0xff]  }
 0x454   :  { %8157 = vmatpush1.bf16.msra.mxu1 %v13671_v2  ;;  %5778 = vmatprep.subr.bf16.mxu0 %v13676_v4  ;;  %v13751_v2 = vld [vmem:[#allocation11 + $0x4c4] ss:$24 sps:$4 sm:$0xff]  }
 0x455   :  { %8158 = vmatprep.subr.bf16.mxu1 %v13679_v12  ;;  %v13746_v4 = vld [vmem:[#allocation7 + $0x16c0] ss:$24 sps:$4 sm:$0xff]  }
 0x456   :  { %v13749_v12 = vld [vmem:[#allocation11 + $0x4c0] ss:$24 sps:$4 sm:$0xff]  }
 0x457   :  { %5779 = vmatpush1.bf16.msra.mxu0 %v13674_v14  ;;  %v13754_v14 = vld [vmem:[#allocation7 + $0x16f4] ss:$24 sps:$4 sm:$0xff]  }
 0x458   :  { %8159 = vmatpush1.bf16.msra.mxu1 %v13677_v30  ;;  %5780 = vmatprep.subr.bf16.mxu0 %v13682_v20  ;;  %v13757_v30 = vld [vmem:[#allocation11 + $0x4f4] ss:$24 sps:$4 sm:$0xff]  }
 0x459   :  { %8160 = vmatprep.subr.bf16.mxu1 %v13685_v22  ;;  %v13752_v20 = vld [vmem:[#allocation7 + $0x16f0] ss:$24 sps:$4 sm:$0xff]  }
 0x45a   :  { %v13755_v22 = vld [vmem:[#allocation11 + $0x4f0] ss:$24 sps:$4 sm:$0xff]  }
 0x45b   :  { %5781 = vmatpush1.bf16.msra.mxu0 %v13680_v23  ;;  %v13760_v23 = vld [vmem:[#allocation7 + $0x1724] ss:$24 sps:$4 sm:$0xff]  }
 0x45c   :  { %8161 = vmatpush1.bf16.msra.mxu1 %v13683_v58  ;;  %5782 = vmatprep.subr.bf16.mxu0 %v13688_v25  ;;  %v13763_v58 = vld [vmem:[#allocation11 + $0x524] ss:$24 sps:$4 sm:$0xff]   ;;  %v924_v25 = vlaneseq }
 0x45d   :  { %8162 = vmatprep.subr.bf16.mxu1 %v13691_v60  ;;  %v13758_v60 = vld [vmem:[#allocation7 + $0x1720] ss:$24 sps:$4 sm:$0xff]  }
 0x45f   :  { %5783 = vmatpush1.bf16.msra.mxu0 %v13686_v44  ;;  %v13761_v44 = vld [vmem:[#allocation11 + $0x520] ss:$24 sps:$4 sm:$0xff]  }
 0x460   :  { %8163 = vmatpush1.bf16.msra.mxu1 %v13689_v29  ;;  %5793 = vmatprep.subr.bf16.mxu0 %v13694_v62  ;;  %v13766_v29 = vld [vmem:[#allocation7 + $0x1754] ss:$24 sps:$4 sm:$0xff]  }
 0x461   :  { %8173 = vmatprep.subr.bf16.mxu1 %v13697_v43  ;;  %v13769_v62 = vld [vmem:[#allocation11 + $0x554] ss:$24 sps:$4 sm:$0xff]   ;;  %v14937_v43 = vshrl.u32 %v924_v25, 7  ;;  %v13827_v25 = vld [vmem:[#allocation10 + $0x120] ss:$24 sps:$4 sm:$0xff]  }
 0x462   :  { %5785 = vmatmul.mubr.bf16.vlgmr.msra.gmra.mrb[4].mxu0 %v14833_v11  ;;  %v13712_v11 = vld [vmem:[#allocation7 + $0x15a4] ss:$24 sps:$4 sm:$0xff]  }
 0x463   :  { %8165 = vmatmul.mubr.bf16.vlgmr.msra.gmra.mrb[28].mxu1 %v14859_v57  ;;  %5794 = vmatpush1.bf16.msra.mxu0 %v13692_v26  ;;  %v13715_v57 = vld [vmem:[#allocation11 + $0x3a4] ss:$24 sps:$4 sm:$0xff]  }
 0x464   :  { %8174 = vmatpush1.bf16.msra.mxu1 %v13695_v27  ;;  %5795 = vmatprep.subr.bf16.mxu0 %v13700_v45  ;;  %v13764_v26 = vld [vmem:[#allocation7 + $0x1750] ss:$24 sps:$4 sm:$0xff]   ;;  %v13772_v45 = vld [vmem:[#allocation7 + $0x1784] ss:$24 sps:$4 sm:$0xff]  }
 0x465   :  { %8175 = vmatprep.subr.bf16.mxu1 %v13703_v28  ;;  %5825 = vmatprep.mubr.bf16.mxu0 %v14837_v18  ;;  %v13716_v18 = vld [vmem:[#allocation7 + $0x15d0] ss:$24 sps:$4 sm:$0xff]  }
 0x466   :  { %8205 = vmatprep.mubr.bf16.mxu1 %v14865_v0  ;;  %v13719_v0 = vld [vmem:[#allocation11 + $0x3d0] ss:$24 sps:$4 sm:$0xff]   ;;  %v13775_v28 = vld [vmem:[#allocation11 + $0x584] ss:$24 sps:$4 sm:$0xff]  }
 0x467   :  { %5796 = vmatpush1.bf16.msra.mxu0 %v13698_v32  ;;  %v13767_v27 = vld [vmem:[#allocation11 + $0x550] ss:$24 sps:$4 sm:$0xff]   ;;  %v930_v32 = vsub.s32 1, %v14937_v43 }
 0x468   :  { %8176 = vmatpush1.bf16.msra.mxu1 %v13701_v33  ;;  %5797 = vmatprep.subr.bf16.mxu0 %v13706_v35  ;;  %v14940_v33 = vld [vmem:[#allocation8] sm:$0x3f] }
 0x469   :  { %8177 = vmatprep.subr.bf16.mxu1 %v13709_v34  ;;  %v13770_v35 = vld [vmem:[#allocation7 + $0x1780] ss:$24 sps:$4 sm:$0xff]  }
 0x46a   :  { %v13773_v34 = vld [vmem:[#allocation11 + $0x580] ss:$24 sps:$4 sm:$0xff]  }
 0x46b   :  { %5798 = vmatpush1.bf16.msra.mxu0 %v13704_v38  ;;  %v13778_v38 = vld [vmem:[#allocation7 + $0x17b4] ss:$24 sps:$4 sm:$0xff]  }
 0x46c   :  { %8178 = vmatpush1.bf16.msra.mxu1 %v13707_v39  ;;  %5799 = vmatprep.subr.bf16.mxu0 %v13712_v11  ;;  %v13781_v39 = vld [vmem:[#allocation11 + $0x5b4] ss:$24 sps:$4 sm:$0xff]   ;;  %v931_v11 = vrot.slane %v14940_v33, %v930_v32 }
 0x46d   :  { %8179 = vmatprep.subr.bf16.mxu1 %v13715_v57  ;;  %v13776_v57 = vld [vmem:[#allocation7 + $0x17b0] ss:$24 sps:$4 sm:$0xff]  }
 0x46f   :  { %5800 = vmatpush1.bf16.msra.mxu0 %v13710_v40  ;;  %v13779_v40 = vld [vmem:[#allocation11 + $0x5b0] ss:$24 sps:$4 sm:$0xff]  }
 0x470   :  { %8180 = vmatpush1.bf16.msra.mxu1 %v13713_v10  ;;  %5801 = vmatprep.subr.bf16.mxu0 %v13718_v46  ;;  %v13784_v10 = vld [vmem:[#allocation7 + $0x17e4] ss:$24 sps:$4 sm:$0xff]  }
 0x471   :  { %8181 = vmatprep.subr.bf16.mxu1 %v13721_v31  ;;  %v13787_v46 = vld [vmem:[#allocation11 + $0x5e4] ss:$24 sps:$4 sm:$0xff]   ;;  %v12127_v31 = vadd.f32 %v14897_v7, %v931_v11  ;;  %v13794_v7 = vld [vmem:[#allocation11 + $0x640] ss:$24 sps:$4 sm:$0xff]   ;;  %v13845_v11 = vld [vmem:[#allocation10 + $0x1b0] ss:$24 sps:$4 sm:$0xff]  }
 0x473   :  { %5802 = vmatpush1.bf16.msra.mxu0 %v13716_v18  ;;  %v13782_v18 = vld [vmem:[#allocation7 + $0x17e0] ss:$24 sps:$4 sm:$0xff]  }
 0x474   :  { %8182 = vmatpush1.bf16.msra.mxu1 %v13719_v0  ;;  %5803 = vmatprep.subr.bf16.mxu0 %v13724_v49  ;;  %v13785_v0 = vld [vmem:[#allocation11 + $0x5e0] ss:$24 sps:$4 sm:$0xff]   ;;  %v13790_v49 = vld [vmem:[#allocation11 + $0x614] ss:$24 sps:$4 sm:$0xff]  }
 0x475   :  { %8183 = vmatprep.subr.bf16.mxu1 %v13727_v50  ;;  %v13793_v50 = vld [vmem:[#allocation10 + $0x4] ss:$24 sps:$4 sm:$0xff]  }
 0x476   :  { %v14933_v52 = vpop.f32.mrb[16].mxu1 }
 0x477   :  { %v14935_v42 = vpop.f32.mrb[17].mxu1  ;;  %5804 = vmatpush1.bf16.msra.mxu0 %v13722_v3  ;;  %v5835_v3 = vmax.f32 %v12127_v31, 0.0  ;;  %v13856_v31 = vld [vmem:[#allocation11 + $0x824] ss:$24 sps:$4 sm:$0xff]  }
 0x478   :  { %8184 = vmatpush1.bf16.msra.mxu1 %v13725_v17  ;;  %v8047_v19 = vpop.f32.mrb[18].mxu1  ;;  %5805 = vmatprep.subr.bf16.mxu0 %v13730_v16  ;;  %v13788_v17 = vld [vmem:[#allocation11 + $0x610] ss:$24 sps:$4 sm:$0xff]   ;;  %v13791_v16 = vld [vmem:[#allocation10] ss:$24 sps:$4 sm:$0xff]  }
 0x479   :  { %8185 = vmatprep.subr.bf16.mxu1 %v13733_v51  ;;  %v8048_v56 = vpop.f32.mrb[19].mxu1  ;;  %v13796_v51 = vld [vmem:[#allocation11 + $0x644] ss:$24 sps:$4 sm:$0xff]   ;;  %v13797_v19 = vld [vmem:[#allocation10 + $0x30] ss:$24 sps:$4 sm:$0xff]  }
 0x47a   :  { %v13800_v56 = vld [vmem:[#allocation11 + $0x670] ss:$24 sps:$4 sm:$0xff]  }
 0x47b   :  { %5806 = vmatpush1.bf16.msra.mxu0 %v13728_v53  ;;  %v13799_v53 = vld [vmem:[#allocation10 + $0x34] ss:$24 sps:$4 sm:$0xff]  }
 0x47c   :  { %8186 = vmatpush1.bf16.msra.mxu1 %v13731_v54  ;;  %5807 = vmatprep.subr.bf16.mxu0 %v13736_v55  ;;  %v14946_v54 = vpack.c.bf16 %v5835_v3, %v5835_v3  ;;  %v13802_v55 = vld [vmem:[#allocation11 + $0x674] ss:$24 sps:$4 sm:$0xff]   ;;  %v13865_v3 = vld [vmem:[#allocation10 + $0x244] ss:$24 sps:$4 sm:$0xff]  }
 0x47d   :  { %8187 = vmatprep.subr.bf16.mxu1 %v13739_v48  ;;  %v13805_v48 = vld [vmem:[#allocation10 + $0x64] ss:$24 sps:$4 sm:$0xff]  }
 0x47f   :  { %5808 = vmatpush1.bf16.msra.mxu0 %v13734_v47  ;;  %v13803_v47 = vld [vmem:[#allocation10 + $0x60] ss:$24 sps:$4 sm:$0xff]  }
 0x480   :  { %8188 = vmatpush1.bf16.msra.mxu1 %v13737_v61  ;;  %5809 = vmatprep.subr.bf16.mxu0 %v13742_v24  ;;  %v13806_v61 = vld [vmem:[#allocation11 + $0x6a0] ss:$24 sps:$4 sm:$0xff]   ;;  %v13809_v24 = vld [vmem:[#allocation10 + $0x90] ss:$24 sps:$4 sm:$0xff]  }
 0x481   :  { %8189 = vmatprep.subr.bf16.mxu1 %v13745_v41  ;;  %v13814_v41 = vld [vmem:[#allocation11 + $0x6d4] ss:$24 sps:$4 sm:$0xff]  }
 0x483   :  { %5810 = vmatpush1.bf16.msra.mxu0 %v13740_v63  ;;  %v13817_v63 = vld [vmem:[#allocation10 + $0xc4] ss:$24 sps:$4 sm:$0xff]  }
 0x484   :  { %8190 = vmatpush1.bf16.msra.mxu1 %v13743_v21  ;;  %5811 = vmatprep.subr.bf16.mxu0 %v13748_v1  ;;  %v13812_v21 = vld [vmem:[#allocation11 + $0x6d0] ss:$24 sps:$4 sm:$0xff]   ;;  %v13820_v1 = vld [vmem:[#allocation11 + $0x704] ss:$24 sps:$4 sm:$0xff]  }
 0x485   :  { %8191 = vmatprep.subr.bf16.mxu1 %v13751_v2  ;;  %v13823_v2 = vld [vmem:[#allocation10 + $0xf4] ss:$24 sps:$4 sm:$0xff]  }
 0x487   :  { %5812 = vmatpush1.bf16.msra.mxu0 %v13746_v4  ;;  %v13818_v4 = vld [vmem:[#allocation11 + $0x700] ss:$24 sps:$4 sm:$0xff]  }
 0x488   :  { %8192 = vmatpush1.bf16.msra.mxu1 %v13749_v12  ;;  %5813 = vmatprep.subr.bf16.mxu0 %v13754_v14  ;;  %v13821_v12 = vld [vmem:[#allocation10 + $0xf0] ss:$24 sps:$4 sm:$0xff]   ;;  %v13826_v14 = vld [vmem:[#allocation11 + $0x734] ss:$24 sps:$4 sm:$0xff]  }
 0x489   :  { %8193 = vmatprep.subr.bf16.mxu1 %v13757_v30  ;;  %v13829_v30 = vld [vmem:[#allocation10 + $0x124] ss:$24 sps:$4 sm:$0xff]  }
 0x48b   :  { %5814 = vmatpush1.bf16.msra.mxu0 %v13752_v20 }
 0x48c   :  { %8194 = vmatpush1.bf16.msra.mxu1 %v13755_v22  ;;  %5815 = vmatprep.subr.bf16.mxu0 %v13760_v23 }
 0x48d   :  { %8195 = vmatprep.subr.bf16.mxu1 %v13763_v58  ;;  %v13824_v58 = vld [vmem:[#allocation11 + $0x730] ss:$24 sps:$4 sm:$0xff]  }
 0x48f   :  { %5816 = vmatpush1.bf16.msra.mxu0 %v13758_v60 }
 0x490   :  { %8196 = vmatpush1.bf16.msra.mxu1 %v13761_v44  ;;  %5817 = vmatprep.subr.bf16.mxu0 %v13766_v29  ;;  %v13832_v29 = vld [vmem:[#allocation11 + $0x764] ss:$24 sps:$4 sm:$0xff]  }
 0x491   :  { %8197 = vmatprep.subr.bf16.mxu1 %v13769_v62  ;;  %v13835_v62 = vld [vmem:[#allocation10 + $0x154] ss:$24 sps:$4 sm:$0xff]  }
 0x493   :  { %5818 = vmatpush1.bf16.msra.mxu0 %v13764_v26 }
 0x494   :  { %8198 = vmatpush1.bf16.msra.mxu1 %v13767_v27  ;;  %5819 = vmatprep.subr.bf16.mxu0 %v13772_v45  ;;  %v13830_v27 = vld [vmem:[#allocation11 + $0x760] ss:$24 sps:$4 sm:$0xff]   ;;  %v13833_v45 = vld [vmem:[#allocation10 + $0x150] ss:$24 sps:$4 sm:$0xff]  }
 0x495   :  { %8199 = vmatprep.subr.bf16.mxu1 %v13775_v28  ;;  %v13841_v28 = vld [vmem:[#allocation10 + $0x184] ss:$24 sps:$4 sm:$0xff]  }
 0x497   :  { %5820 = vmatpush1.bf16.msra.mxu0 %v13770_v35  ;;  %v13836_v35 = vld [vmem:[#allocation11 + $0x790] ss:$24 sps:$4 sm:$0xff]  }
 0x498   :  { %8200 = vmatpush1.bf16.msra.mxu1 %v13773_v34  ;;  %5821 = vmatprep.subr.bf16.mxu0 %v13778_v38  ;;  %v13839_v34 = vld [vmem:[#allocation10 + $0x180] ss:$24 sps:$4 sm:$0xff]   ;;  %v13847_v38 = vld [vmem:[#allocation10 + $0x1b4] ss:$24 sps:$4 sm:$0xff]  }
 0x499   :  { %8201 = vmatprep.subr.bf16.mxu1 %v13781_v39  ;;  %v13842_v39 = vld [vmem:[#allocation11 + $0x7c0] ss:$24 sps:$4 sm:$0xff]  }
 0x49b   :  { %5822 = vmatpush1.bf16.msra.mxu0 %v13776_v57  ;;  %v13850_v57 = vld [vmem:[#allocation11 + $0x7f4] ss:$24 sps:$4 sm:$0xff]  }
 0x49c   :  { %8202 = vmatpush1.bf16.msra.mxu1 %v13779_v40  ;;  %5823 = vmatprep.subr.bf16.mxu0 %v13784_v10  ;;  %v13853_v40 = vld [vmem:[#allocation10 + $0x1e4] ss:$24 sps:$4 sm:$0xff]   ;;  %v13848_v10 = vld [vmem:[#allocation11 + $0x7f0] ss:$24 sps:$4 sm:$0xff]  }
 0x49d   :  { %8203 = vmatprep.subr.bf16.mxu1 %v13787_v46  ;;  %v13851_v46 = vld [vmem:[#allocation10 + $0x1e0] ss:$24 sps:$4 sm:$0xff]  }
 0x49f   :  { %5824 = vmatpush1.bf16.msra.mxu0 %v13782_v18  ;;  %v13859_v18 = vld [vmem:[#allocation10 + $0x214] ss:$24 sps:$4 sm:$0xff]  }
 0x4a0   :  { %8204 = vmatpush1.bf16.msra.mxu1 %v13785_v0  ;;  %8214 = vmatprep.subr.bf16.mxu0 %v13790_v49  ;;  %v13854_v0 = vld [vmem:[#allocation11 + $0x820] ss:$24 sps:$4 sm:$0xff]   ;;  %v13857_v49 = vld [vmem:[#allocation10 + $0x210] ss:$24 sps:$4 sm:$0xff]  }
 0x4a1   :  { %9695 = vmatprep.subr.bf16.mxu1 %v13793_v50  ;;  %v13862_v50 = vld [vmem:[#allocation11 + $0x854] ss:$24 sps:$4 sm:$0xff]  }
 0x4a2   :  { %5826 = vmatmul.mubr.bf16.vlgmr.msra.gmra.mrb[4].mxu0 %v14847_v36  ;;  %v13808_v36 = vld [vmem:[#allocation11 + $0x6a4] ss:$24 sps:$4 sm:$0xff]  }
 0x4a3   :  { %8206 = vmatmul.mubr.bf16.vlgmr.msra.gmra.mrb[32].mxu1 %v14875_v59  ;;  %8215 = vmatpush1.bf16.msra.mxu0 %v13788_v17  ;;  %v13811_v59 = vld [vmem:[#allocation10 + $0x94] ss:$24 sps:$4 sm:$0xff]   ;;  %v13860_v17 = vld [vmem:[#allocation11 + $0x850] ss:$24 sps:$4 sm:$0xff]  }
 0x4a4   :  { %9696 = vmatpush1.bf16.msra.mxu1 %v13791_v16  ;;  %9727 = vmatprep.mubr.bf16.mxu1 %v14946_v54  ;;  %v13863_v16 = vld [vmem:[#allocation10 + $0x240] ss:$24 sps:$4 sm:$0xff]  }
 0x4a5   :  { %8216 = vmatprep.subr.bf16.mxu0 %v13796_v51  ;;  %9697 = vmatprep.subr.bf16.mxu1 %v13799_v53  ;;  %v926_v51 = vsub.s32 0, %v14937_v43  ;;  %v13868_v53 = vld [vmem:[#allocation11 + $0x884] ss:$24 sps:$4 sm:$0xff]  }
 0x4a6   :  { %8246 = vmatprep.mubr.bf16.mxu0 %v14879_v13  ;;  %v13815_v13 = vld [vmem:[#allocation10 + $0xc0] ss:$24 sps:$4 sm:$0xff]  }
 0x4a7   :  { %8217 = vmatpush1.bf16.msra.mxu0 %v13794_v7  ;;  %v13871_v7 = vld [vmem:[#allocation10 + $0x274] ss:$24 sps:$4 sm:$0xff]  }
 0x4a8   :  { %9698 = vmatpush1.bf16.msra.mxu1 %v13797_v19  ;;  %8218 = vmatprep.subr.bf16.mxu0 %v13802_v55  ;;  %v938_v19 = vsub.s32 3, %v14937_v43  ;;  %v13866_v55 = vld [vmem:[#allocation11 + $0x880] ss:$24 sps:$4 sm:$0xff]  }
 0x4a9   :  { %9699 = vmatprep.subr.bf16.mxu1 %v13805_v48  ;;  %v13869_v48 = vld [vmem:[#allocation10 + $0x270] ss:$24 sps:$4 sm:$0xff]  }
 0x4ab   :  { %8219 = vmatpush1.bf16.msra.mxu0 %v13800_v56  ;;  %v927_v56 = vrot.slane %v14940_v33, %v926_v51 }
 0x4ac   :  { %9700 = vmatpush1.bf16.msra.mxu1 %v13803_v47  ;;  %8220 = vmatprep.subr.bf16.mxu0 %v13808_v36  ;;  %v13874_v47 = vld [vmem:[#allocation11 + $0x8b4] ss:$24 sps:$4 sm:$0xff]   ;;  %v13877_v36 = vld [vmem:[#allocation10 + $0x2a4] ss:$24 sps:$4 sm:$0xff]  }
 0x4ad   :  { %9701 = vmatprep.subr.bf16.mxu1 %v13811_v59  ;;  %v939_v59 = vrot.slane %v14940_v33, %v938_v19 }
 0x4af   :  { %8221 = vmatpush1.bf16.msra.mxu0 %v13806_v61  ;;  %v13872_v61 = vld [vmem:[#allocation11 + $0x8b0] ss:$24 sps:$4 sm:$0xff]  }
 0x4b0   :  { %9702 = vmatpush1.bf16.msra.mxu1 %v13809_v24  ;;  %8222 = vmatprep.subr.bf16.mxu0 %v13814_v41  ;;  %v13875_v24 = vld [vmem:[#allocation10 + $0x2a0] ss:$24 sps:$4 sm:$0xff]   ;;  %v12126_v41 = vadd.f32 %v14893_v6, %v927_v56  ;;  %v13910_v56 = vld [vmem:[#allocation10 + $0x484] ss:$24 sps:$4 sm:$0xff]  }
 0x4b1   :  { %9703 = vmatprep.subr.bf16.mxu1 %v13817_v63  ;;  %v13880_v63 = vld [vmem:[#allocation11 + $0x8e4] ss:$24 sps:$4 sm:$0xff]  }
 0x4b3   :  { %8223 = vmatpush1.bf16.msra.mxu0 %v13812_v21  ;;  %v13883_v21 = vld [vmem:[#allocation10 + $0x2d4] ss:$24 sps:$4 sm:$0xff]  }
 0x4b4   :  { %9704 = vmatpush1.bf16.msra.mxu1 %v13815_v13  ;;  %8224 = vmatprep.subr.bf16.mxu0 %v13820_v1  ;;  %v12129_v13 = vadd.f32 %v14899_v8, %v939_v59  ;;  %v13878_v1 = vld [vmem:[#allocation11 + $0x8e0] ss:$24 sps:$4 sm:$0xff]  }
 0x4b5   :  { %9705 = vmatprep.subr.bf16.mxu1 %v13823_v2  ;;  %v13881_v2 = vld [vmem:[#allocation10 + $0x2d0] ss:$24 sps:$4 sm:$0xff]   ;;  %v14001_v59 = vld [vmem:[#allocation10 + $0x780] ss:$24 sps:$4 sm:$0xff]  }
 0x4b6   :  { %v8084_v20 = vpop.f32.mrb[20].mxu1 }
 0x4b7   :  { %v14953_v22 = vadd.f32 %v8084_v20, %v14933_v52  ;;  %v8086_v23 = vpop.f32.mrb[21].mxu1  ;;  %8225 = vmatpush1.bf16.msra.mxu0 %v13818_v4  ;;  %v13838_v52 = vld [vmem:[#allocation11 + $0x794] ss:$24 sps:$4 sm:$0xff]   ;;  %v5834_v4 = vmax.f32 %v12126_v41, 0.0  ;;  %v13884_v20 = vld [vmem:[#allocation10 + $0x300] ss:$24 sps:$4 sm:$0xff]  }
 0x4b8   :  { %9706 = vmatpush1.bf16.msra.mxu1 %v13821_v12  ;;  %v14956_v60 = vadd.f32 %v8086_v23, %v14935_v42  ;;  %v8088_v44 = vpop.f32.mrb[22].mxu1  ;;  %8226 = vmatprep.subr.bf16.mxu0 %v13826_v14  ;;  %v13844_v42 = vld [vmem:[#allocation11 + $0x7c4] ss:$24 sps:$4 sm:$0xff]   ;;  %v13889_v23 = vld [vmem:[#allocation10 + $0x334] ss:$24 sps:$4 sm:$0xff]  }
 0x4b9   :  { %9707 = vmatprep.subr.bf16.mxu1 %v13829_v30  ;;  %v8089_v26 = vpop.f32.mrb[23].mxu1  ;;  %v13886_v12 = vld [vmem:[#allocation10 + $0x304] ss:$24 sps:$4 sm:$0xff]   ;;  %v5837_v30 = vmax.f32 %v12129_v13, 0.0  ;;  %v14968_v6 = vpack.c.bf16 %v5834_v4, %v5834_v4  ;;  %v13887_v44 = vld [vmem:[#allocation10 + $0x330] ss:$24 sps:$4 sm:$0xff]  }
 0x4ba   :  { %v13955_v14 = vld [vmem:[#allocation10 + $0x604] ss:$24 sps:$4 sm:$0xff]   ;;  %v13914_v13 = vld [vmem:[#allocation10 + $0x4e0] ss:$24 sps:$4 sm:$0xff]   ;;  %v14021_v4 = vld [vmem:[#allocation10 + $0x814] ss:$24 sps:$4 sm:$0xff]  }
 0x4bb   :  { %8227 = vmatpush1.bf16.msra.mxu0 %v13824_v58  ;;  %v13953_v58 = vld [vmem:[#allocation10 + $0x600] ss:$24 sps:$4 sm:$0xff]   ;;  %v14970_v8 = vpack.c.bf16 %v5837_v30, %v5837_v30  ;;  %v13967_v26 = vld [vmem:[#allocation10 + $0x664] ss:$24 sps:$4 sm:$0xff]   ;;  %v14019_v30 = vld [vmem:[#allocation10 + $0x810] ss:$24 sps:$4 sm:$0xff]  }
 0x4bc   :  { %9708 = vmatpush1.bf16.msra.mxu1 %v13827_v25  ;;  %8228 = vmatprep.subr.bf16.mxu0 %v13832_v29  ;;  %v13961_v25 = vld [vmem:[#allocation10 + $0x634] ss:$24 sps:$4 sm:$0xff]   ;;  %v13892_v29 = vld [vmem:[#allocation10 + $0x364] ss:$24 sps:$4 sm:$0xff]  }
 0x4bd   :  { %9709 = vmatprep.subr.bf16.mxu1 %v13835_v62  ;;  %v13959_v62 = vld [vmem:[#allocation10 + $0x630] ss:$24 sps:$4 sm:$0xff]   ;;  %v13916_v41 = vld [vmem:[#allocation10 + $0x4e4] ss:$24 sps:$4 sm:$0xff]  }
 0x4bf   :  { %8229 = vmatpush1.bf16.msra.mxu0 %v13830_v27  ;;  %v13890_v27 = vld [vmem:[#allocation10 + $0x360] ss:$24 sps:$4 sm:$0xff]  }
 0x4c0   :  { %9710 = vmatpush1.bf16.msra.mxu1 %v13833_v45  ;;  %8230 = vmatprep.subr.bf16.mxu0 %v13838_v52  ;;  %v13895_v45 = vld [vmem:[#allocation10 + $0x394] ss:$24 sps:$4 sm:$0xff]   ;;  %v13965_v52 = vld [vmem:[#allocation10 + $0x660] ss:$24 sps:$4 sm:$0xff]  }
 0x4c1   :  { %9711 = vmatprep.subr.bf16.mxu1 %v13841_v28  ;;  %v13893_v28 = vld [vmem:[#allocation10 + $0x390] ss:$24 sps:$4 sm:$0xff]  }
 0x4c3   :  { %8231 = vmatpush1.bf16.msra.mxu0 %v13836_v35  ;;  %v13898_v35 = vld [vmem:[#allocation10 + $0x3c4] ss:$24 sps:$4 sm:$0xff]  }
 0x4c4   :  { %9712 = vmatpush1.bf16.msra.mxu1 %v13839_v34  ;;  %8232 = vmatprep.subr.bf16.mxu0 %v13844_v42  ;;  %v13971_v34 = vld [vmem:[#allocation10 + $0x690] ss:$24 sps:$4 sm:$0xff]   ;;  %v13979_v42 = vld [vmem:[#allocation10 + $0x6c4] ss:$24 sps:$4 sm:$0xff]  }
 0x4c5   :  { %9713 = vmatprep.subr.bf16.mxu1 %v13847_v38  ;;  %v13896_v38 = vld [vmem:[#allocation10 + $0x3c0] ss:$24 sps:$4 sm:$0xff]  }
 0x4c7   :  { %8233 = vmatpush1.bf16.msra.mxu0 %v13842_v39  ;;  %v13901_v39 = vld [vmem:[#allocation10 + $0x3f4] ss:$24 sps:$4 sm:$0xff]  }
 0x4c8   :  { %9714 = vmatpush1.bf16.msra.mxu1 %v13845_v11  ;;  %8234 = vmatprep.subr.bf16.mxu0 %v13850_v57  ;;  %v13977_v11 = vld [vmem:[#allocation10 + $0x6c0] ss:$24 sps:$4 sm:$0xff]   ;;  %v13985_v57 = vld [vmem:[#allocation10 + $0x6f4] ss:$24 sps:$4 sm:$0xff]  }
 0x4c9   :  { %9715 = vmatprep.subr.bf16.mxu1 %v13853_v40  ;;  %v13899_v40 = vld [vmem:[#allocation10 + $0x3f0] ss:$24 sps:$4 sm:$0xff]  }
 0x4cb   :  { %8235 = vmatpush1.bf16.msra.mxu0 %v13848_v10  ;;  %v13904_v10 = vld [vmem:[#allocation10 + $0x424] ss:$24 sps:$4 sm:$0xff]  }
 0x4cc   :  { %9716 = vmatpush1.bf16.msra.mxu1 %v13851_v46  ;;  %8236 = vmatprep.subr.bf16.mxu0 %v13856_v31  ;;  %v13983_v46 = vld [vmem:[#allocation10 + $0x6f0] ss:$24 sps:$4 sm:$0xff]  }
 0x4cd   :  { %9717 = vmatprep.subr.bf16.mxu1 %v13859_v18  ;;  %v13991_v18 = vld [vmem:[#allocation10 + $0x724] ss:$24 sps:$4 sm:$0xff]  }
 0x4cf   :  { %8237 = vmatpush1.bf16.msra.mxu0 %v13854_v0 }
 0x4d0   :  { %9718 = vmatpush1.bf16.msra.mxu1 %v13857_v49  ;;  %8238 = vmatprep.subr.bf16.mxu0 %v13862_v50 }
 0x4d1   :  { %9719 = vmatprep.subr.bf16.mxu1 %v13865_v3  ;;  %v13902_v3 = vld [vmem:[#allocation10 + $0x420] ss:$24 sps:$4 sm:$0xff]  }
 0x4d3   :  { %8239 = vmatpush1.bf16.msra.mxu0 %v13860_v17 }
 0x4d4   :  { %9720 = vmatpush1.bf16.msra.mxu1 %v13863_v16  ;;  %8240 = vmatprep.subr.bf16.mxu0 %v13868_v53  ;;  %v13907_v16 = vld [vmem:[#allocation10 + $0x454] ss:$24 sps:$4 sm:$0xff]  }
 0x4d5   :  { %9721 = vmatprep.subr.bf16.mxu1 %v13871_v7  ;;  %v13989_v7 = vld [vmem:[#allocation10 + $0x720] ss:$24 sps:$4 sm:$0xff]  }
 0x4d7   :  { %8241 = vmatpush1.bf16.msra.mxu0 %v13866_v55  ;;  %v13997_v55 = vld [vmem:[#allocation10 + $0x754] ss:$24 sps:$4 sm:$0xff]  }
 0x4d8   :  { %9722 = vmatpush1.bf16.msra.mxu1 %v13869_v48  ;;  %8242 = vmatprep.subr.bf16.mxu0 %v13874_v47  ;;  %v13905_v48 = vld [vmem:[#allocation10 + $0x450] ss:$24 sps:$4 sm:$0xff]   ;;  %v14003_v47 = vld [vmem:[#allocation10 + $0x784] ss:$24 sps:$4 sm:$0xff]  }
 0x4d9   :  { %9723 = vmatprep.subr.bf16.mxu1 %v13877_v36  ;;  %v13913_v36 = vld [vmem:[#allocation10 + $0x4b4] ss:$24 sps:$4 sm:$0xff]  }
 0x4db   :  { %8243 = vmatpush1.bf16.msra.mxu0 %v13872_v61  ;;  %v14009_v61 = vld [vmem:[#allocation10 + $0x7b4] ss:$24 sps:$4 sm:$0xff]  }
 0x4dc   :  { %9724 = vmatpush1.bf16.msra.mxu1 %v13875_v24  ;;  %8244 = vmatprep.subr.bf16.mxu0 %v13880_v63  ;;  %v13911_v24 = vld [vmem:[#allocation10 + $0x4b0] ss:$24 sps:$4 sm:$0xff]  }
 0x4dd   :  { %9725 = vmatprep.subr.bf16.mxu1 %v13883_v21  ;;  %v14007_v63 = vld [vmem:[#allocation10 + $0x7b0] ss:$24 sps:$4 sm:$0xff]   ;;  %v14015_v21 = vld [vmem:[#allocation10 + $0x7e4] ss:$24 sps:$4 sm:$0xff]  }
 0x4df   :  { %8245 = vmatpush1.bf16.msra.mxu0 %v13878_v1  ;;  %v13919_v1 = vld [vmem:[#allocation10 + $0x514] ss:$24 sps:$4 sm:$0xff]  }
 0x4e0   :  { %9726 = vmatpush1.bf16.msra.mxu1 %v13881_v2  ;;  %9736 = vmatprep.subr.bf16.mxu0 %v13886_v12  ;;  %v14013_v2 = vld [vmem:[#allocation10 + $0x7e0] ss:$24 sps:$4 sm:$0xff]   ;;  %v13917_v12 = vld [vmem:[#allocation10 + $0x510] ss:$24 sps:$4 sm:$0xff]  }
 0x4e1   :  { %9777 = vmatprep.subr.bf16.mxu1 %v13955_v14  ;;  %v13922_v14 = vld [vmem:[#allocation10 + $0x544] ss:$24 sps:$4 sm:$0xff]  }
 0x4e2   :  { %8247 = vmatmul.mubr.bf16.vlgmr.msra.gmra.mrb[8].mxu0 %v14887_v15  ;;  %v13973_v15 = vld [vmem:[#allocation10 + $0x694] ss:$24 sps:$4 sm:$0xff]  }
 0x4e3   :  { %9728 = vmatmul.mubr.bf16.vlgmr.msra.gmra.mrb[36].mxu1 %v14968_v6  ;;  %9737 = vmatpush1.bf16.msra.mxu0 %v13884_v20  ;;  %v14027_v20 = vld [vmem:[#allocation10 + $0x844] ss:$24 sps:$4 sm:$0xff]  }
 0x4e4   :  { %9768 = vmatprep.mubr.bf16.mxu0 %v14970_v8  ;;  %9738 = vmatprep.subr.bf16.mxu0 %v13889_v23  ;;  %v13920_v23 = vld [vmem:[#allocation10 + $0x540] ss:$24 sps:$4 sm:$0xff]  }
 0x4e5   :  { %9778 = vmatpush1.bf16.msra.mxu1 %v13953_v58  ;;  %v934_v58 = vsub.s32 2, %v14937_v43 }
 0x4e6   :  { %9779 = vmatprep.subr.bf16.mxu1 %v13961_v25  ;;  %v13925_v25 = vld [vmem:[#allocation10 + $0x574] ss:$24 sps:$4 sm:$0xff]  }
 0x4e7   :  { %9739 = vmatpush1.bf16.msra.mxu0 %v13887_v44  ;;  %v14025_v44 = vld [vmem:[#allocation10 + $0x840] ss:$24 sps:$4 sm:$0xff]  }
 0x4e8   :  { %9740 = vmatprep.subr.bf16.mxu0 %v13892_v29  ;;  %v14033_v29 = vld [vmem:[#allocation10 + $0x874] ss:$24 sps:$4 sm:$0xff]  }
 0x4e9   :  { %9780 = vmatpush1.bf16.msra.mxu1 %v13959_v62  ;;  %v13923_v62 = vld [vmem:[#allocation10 + $0x570] ss:$24 sps:$4 sm:$0xff]  }
 0x4ea   :  { %9781 = vmatprep.subr.bf16.mxu1 %v13967_v26  ;;  %v935_v26 = vrot.slane %v14940_v33, %v934_v58 }
 0x4eb   :  { %9741 = vmatpush1.bf16.msra.mxu0 %v13890_v27  ;;  %v13928_v27 = vld [vmem:[#allocation10 + $0x5a4] ss:$24 sps:$4 sm:$0xff]  }
 0x4ec   :  { %9742 = vmatprep.subr.bf16.mxu0 %v13895_v45  ;;  %v14031_v45 = vld [vmem:[#allocation10 + $0x870] ss:$24 sps:$4 sm:$0xff]  }
 0x4ed   :  { %9782 = vmatpush1.bf16.msra.mxu1 %v13965_v52  ;;  %v14039_v52 = vld [vmem:[#allocation10 + $0x8a4] ss:$24 sps:$4 sm:$0xff]  }
 0x4ee   :  { %9783 = vmatprep.subr.bf16.mxu1 %v13973_v15  ;;  %v13926_v15 = vld [vmem:[#allocation10 + $0x5a0] ss:$24 sps:$4 sm:$0xff]  }
 0x4ef   :  { %9743 = vmatpush1.bf16.msra.mxu0 %v13893_v28  ;;  %v12128_v28 = vadd.f32 %v14895_v5, %v935_v26  ;;  %v13937_v5 = vld [vmem:[#allocation10 + $0x3c] ss:$24 sps:$4 sm:$0xff]   ;;  %v14010_v26 = vld [vmem:[#allocation10 + $0x608] ss:$24 sps:$4 sm:$0xff]  }
 0x4f0   :  { %9744 = vmatprep.subr.bf16.mxu0 %v13898_v35  ;;  %v13931_v35 = vld [vmem:[#allocation10 + $0x5d4] ss:$24 sps:$4 sm:$0xff]  }
 0x4f1   :  { %9784 = vmatpush1.bf16.msra.mxu1 %v13971_v34  ;;  %v14037_v34 = vld [vmem:[#allocation10 + $0x8a0] ss:$24 sps:$4 sm:$0xff]  }
 0x4f2   :  { %9785 = vmatprep.subr.bf16.mxu1 %v13979_v42  ;;  %v14045_v42 = vld [vmem:[#allocation10 + $0x8d4] ss:$24 sps:$4 sm:$0xff]  }
 0x4f3   :  { %9745 = vmatpush1.bf16.msra.mxu0 %v13896_v38  ;;  %v13929_v38 = vld [vmem:[#allocation10 + $0x5d0] ss:$24 sps:$4 sm:$0xff]  }
 0x4f4   :  { %9746 = vmatprep.subr.bf16.mxu0 %v13901_v39  ;;  %v5836_v39 = vmax.f32 %v12128_v28, 0.0  ;;  %v14030_v28 = vld [vmem:[#allocation10 + $0x69c] ss:$24 sps:$4 sm:$0xff]  }
 0x4f5   :  { %9786 = vmatpush1.bf16.msra.mxu1 %v13977_v11  ;;  %v13934_v11 = vld [vmem:[#allocation10 + $0xc] ss:$24 sps:$4 sm:$0xff]  }
 0x4f6   :  { %v8125_v31 = vpop.f32.mrb[24].mxu1  ;;  %9787 = vmatprep.subr.bf16.mxu1 %v13985_v57  ;;  %v14043_v57 = vld [vmem:[#allocation10 + $0x8d0] ss:$24 sps:$4 sm:$0xff]  }
 0x4f7   :  { %v14976_v0 = vadd.f32 %v8125_v31, %v14953_v22  ;;  %v8127_v49 = vpop.f32.mrb[25].mxu1  ;;  %9747 = vmatpush1.bf16.msra.mxu0 %v13899_v40  ;;  %v13995_v22 = vld [vmem:[#allocation10 + $0x750] ss:$24 sps:$4 sm:$0xff]   ;;  %v14051_v40 = vld [vmem:[#allocation10 + $0x30c] ss:$24 sps:$4 sm:$0xff]  }
 0x4f8   :  { %v14979_v50 = vadd.f32 %v8127_v49, %v14956_v60  ;;  %v8129_v17 = vpop.f32.mrb[26].mxu1  ;;  %9748 = vmatprep.subr.bf16.mxu0 %v13904_v10  ;;  %v13908_v60 = vld [vmem:[#allocation10 + $0x480] ss:$24 sps:$4 sm:$0xff]  }
 0x4f9   :  { %v8130_v53 = vpop.f32.mrb[27].mxu1  ;;  %9788 = vmatpush1.bf16.msra.mxu1 %v13983_v46  ;;  %v13932_v10 = vld [vmem:[#allocation10 + $0x8] ss:$24 sps:$4 sm:$0xff]   ;;  %v14986_v46 = vpack.c.bf16 %v5836_v39, %v5836_v39  ;;  %v13935_v31 = vld [vmem:[#allocation10 + $0x38] ss:$24 sps:$4 sm:$0xff]   ;;  %v946_v39 = vsub.s32 5, %v14937_v43 }
 0x4fa   :  { %9789 = vmatprep.subr.bf16.mxu1 %v13991_v18  ;;  %v13940_v18 = vld [vmem:[#allocation10 + $0x6c] ss:$24 sps:$4 sm:$0xff]   ;;  %v13938_v49 = vld [vmem:[#allocation10 + $0x68] ss:$24 sps:$4 sm:$0xff]   ;;  %v13941_v17 = vld [vmem:[#allocation10 + $0x98] ss:$24 sps:$4 sm:$0xff]  }
 0x4fb   :  { %9749 = vmatpush1.bf16.msra.mxu0 %v13902_v3  ;;  %v13943_v3 = vld [vmem:[#allocation10 + $0x9c] ss:$24 sps:$4 sm:$0xff]   ;;  %v13944_v53 = vld [vmem:[#allocation10 + $0xc8] ss:$24 sps:$4 sm:$0xff]  }
 0x4fc   :  { %9750 = vmatprep.subr.bf16.mxu0 %v13907_v16  ;;  %v13946_v16 = vld [vmem:[#allocation10 + $0xcc] ss:$24 sps:$4 sm:$0xff]  }
 0x4fd   :  { %9790 = vmatpush1.bf16.msra.mxu1 %v13989_v7  ;;  %v13949_v7 = vld [vmem:[#allocation10 + $0xfc] ss:$24 sps:$4 sm:$0xff]  }
 0x4fe   :  { %9791 = vmatprep.subr.bf16.mxu1 %v13997_v55  ;;  %v13947_v55 = vld [vmem:[#allocation10 + $0xf8] ss:$24 sps:$4 sm:$0xff]  }
 0x4ff   :  { %9751 = vmatpush1.bf16.msra.mxu0 %v13905_v48  ;;  %v13952_v48 = vld [vmem:[#allocation10 + $0x12c] ss:$24 sps:$4 sm:$0xff]  }
 0x500   :  { %9752 = vmatprep.subr.bf16.mxu0 %v13910_v56 }
 0x501   :  { %9792 = vmatpush1.bf16.msra.mxu1 %v13995_v22 }
 0x502   :  { %9793 = vmatprep.subr.bf16.mxu1 %v14003_v47  ;;  %v13950_v47 = vld [vmem:[#allocation10 + $0x128] ss:$24 sps:$4 sm:$0xff]  }
 0x503   :  { %9753 = vmatpush1.bf16.msra.mxu0 %v13908_v60 }
 0x504   :  { %9754 = vmatprep.subr.bf16.mxu0 %v13913_v36  ;;  %v13958_v36 = vld [vmem:[#allocation10 + $0x15c] ss:$24 sps:$4 sm:$0xff]  }
 0x505   :  { %9794 = vmatpush1.bf16.msra.mxu1 %v14001_v59 }
 0x506   :  { %9795 = vmatprep.subr.bf16.mxu1 %v14009_v61  ;;  %v13956_v61 = vld [vmem:[#allocation10 + $0x158] ss:$24 sps:$4 sm:$0xff]  }
 0x507   :  { %9755 = vmatpush1.bf16.msra.mxu0 %v13911_v24  ;;  %v13964_v24 = vld [vmem:[#allocation10 + $0x18c] ss:$24 sps:$4 sm:$0xff]  }
 0x508   :  { %9756 = vmatprep.subr.bf16.mxu0 %v13916_v41  ;;  %v13962_v41 = vld [vmem:[#allocation10 + $0x188] ss:$24 sps:$4 sm:$0xff]  }
 0x509   :  { %9796 = vmatpush1.bf16.msra.mxu1 %v14007_v63  ;;  %v13970_v63 = vld [vmem:[#allocation10 + $0x1bc] ss:$24 sps:$4 sm:$0xff]  }
 0x50a   :  { %9797 = vmatprep.subr.bf16.mxu1 %v14015_v21  ;;  %v13968_v21 = vld [vmem:[#allocation10 + $0x1b8] ss:$24 sps:$4 sm:$0xff]  }
 0x50b   :  { %9757 = vmatpush1.bf16.msra.mxu0 %v13914_v13  ;;  %v13976_v13 = vld [vmem:[#allocation10 + $0x1ec] ss:$24 sps:$4 sm:$0xff]  }
 0x50c   :  { %9758 = vmatprep.subr.bf16.mxu0 %v13919_v1  ;;  %v13974_v1 = vld [vmem:[#allocation10 + $0x1e8] ss:$24 sps:$4 sm:$0xff]  }
 0x50d   :  { %9798 = vmatpush1.bf16.msra.mxu1 %v14013_v2  ;;  %v13982_v2 = vld [vmem:[#allocation10 + $0x21c] ss:$24 sps:$4 sm:$0xff]  }
 0x50e   :  { %9799 = vmatprep.subr.bf16.mxu1 %v14021_v4  ;;  %v13980_v4 = vld [vmem:[#allocation10 + $0x218] ss:$24 sps:$4 sm:$0xff]  }
 0x50f   :  { %9759 = vmatpush1.bf16.msra.mxu0 %v13917_v12  ;;  %v13988_v12 = vld [vmem:[#allocation10 + $0x24c] ss:$24 sps:$4 sm:$0xff]  }
 0x510   :  { %9760 = vmatprep.subr.bf16.mxu0 %v13922_v14  ;;  %v13986_v14 = vld [vmem:[#allocation10 + $0x248] ss:$24 sps:$4 sm:$0xff]  }
 0x511   :  { %9800 = vmatpush1.bf16.msra.mxu1 %v14019_v30  ;;  %v13994_v30 = vld [vmem:[#allocation10 + $0x27c] ss:$24 sps:$4 sm:$0xff]  }
 0x512   :  { %9801 = vmatprep.subr.bf16.mxu1 %v14027_v20  ;;  %v13992_v20 = vld [vmem:[#allocation10 + $0x278] ss:$24 sps:$4 sm:$0xff]  }
 0x513   :  { %9761 = vmatpush1.bf16.msra.mxu0 %v13920_v23  ;;  %v14000_v23 = vld [vmem:[#allocation10 + $0x2ac] ss:$24 sps:$4 sm:$0xff]  }
 0x514   :  { %9762 = vmatprep.subr.bf16.mxu0 %v13925_v25  ;;  %v13998_v25 = vld [vmem:[#allocation10 + $0x2a8] ss:$24 sps:$4 sm:$0xff]  }
 0x515   :  { %9802 = vmatpush1.bf16.msra.mxu1 %v14025_v44  ;;  %v14006_v44 = vld [vmem:[#allocation10 + $0x2dc] ss:$24 sps:$4 sm:$0xff]  }
 0x516   :  { %9803 = vmatprep.subr.bf16.mxu1 %v14033_v29  ;;  %v14004_v29 = vld [vmem:[#allocation10 + $0x2d8] ss:$24 sps:$4 sm:$0xff]  }
 0x517   :  { %9763 = vmatpush1.bf16.msra.mxu0 %v13923_v62  ;;  %v14012_v62 = vld [vmem:[#allocation10 + $0x60c] ss:$24 sps:$4 sm:$0xff]  }
 0x518   :  { %9764 = vmatprep.subr.bf16.mxu0 %v13928_v27  ;;  %v14018_v27 = vld [vmem:[#allocation10 + $0x63c] ss:$24 sps:$4 sm:$0xff]  }
 0x519   :  { %9804 = vmatpush1.bf16.msra.mxu1 %v14031_v45  ;;  %v14016_v45 = vld [vmem:[#allocation10 + $0x638] ss:$24 sps:$4 sm:$0xff]  }
 0x51a   :  { %9805 = vmatprep.subr.bf16.mxu1 %v14039_v52  ;;  %v14024_v52 = vld [vmem:[#allocation10 + $0x66c] ss:$24 sps:$4 sm:$0xff]  }
 0x51b   :  { %9765 = vmatpush1.bf16.msra.mxu0 %v13926_v15  ;;  %v14022_v15 = vld [vmem:[#allocation10 + $0x668] ss:$24 sps:$4 sm:$0xff]  }
 0x51c   :  { %9766 = vmatprep.subr.bf16.mxu0 %v13931_v35  ;;  %v14028_v35 = vld [vmem:[#allocation10 + $0x698] ss:$24 sps:$4 sm:$0xff]  }
 0x51d   :  { %9806 = vmatpush1.bf16.msra.mxu1 %v14037_v34  ;;  %v14036_v34 = vld [vmem:[#allocation10 + $0x6cc] ss:$24 sps:$4 sm:$0xff]  }
 0x51e   :  { %9807 = vmatprep.subr.bf16.mxu1 %v14045_v42  ;;  %v942_v42 = vsub.s32 4, %v14937_v43 }
 0x51f   :  { %9767 = vmatpush1.bf16.msra.mxu0 %v13929_v38  ;;  %v14034_v38 = vld [vmem:[#allocation10 + $0x6c8] ss:$24 sps:$4 sm:$0xff]  }
 0x520   :  { %9818 = vmatprep.subr.bf16.mxu0 %v13934_v11  ;;  %v14042_v11 = vld [vmem:[#allocation10 + $0x6fc] ss:$24 sps:$4 sm:$0xff]  }
 0x521   :  { %9808 = vmatpush1.bf16.msra.mxu1 %v14043_v57  ;;  %v943_v57 = vrot.slane %v14940_v33, %v942_v42 }
 0x522   :  { %9859 = vmatprep.subr.bf16.mxu1 %v14051_v40  ;;  %9769 = vmatmul.mubr.bf16.vlgmr.msra.gmra.mrb[12].mxu0 %v14986_v46  ;;  %v947_v40 = vrot.slane %v14940_v33, %v946_v39 }
 0x523   :  { %9819 = vmatpush1.bf16.msra.mxu0 %v13932_v10  ;;  %9850 = vmatprep.mubr.bf16.mxu0 %v14946_v54  ;;  %v14040_v10 = vld [vmem:[#allocation10 + $0x6f8] ss:$24 sps:$4 sm:$0xff]  }
 0x524   :  { %9820 = vmatprep.subr.bf16.mxu0 %v13937_v5  ;;  %v14048_v5 = vld [vmem:[#allocation10 + $0x72c] ss:$24 sps:$4 sm:$0xff]  }
 0x527   :  { %9821 = vmatpush1.bf16.msra.mxu0 %v13935_v31 }
 0x528   :  { %9822 = vmatprep.subr.bf16.mxu0 %v13940_v18 }
 0x52b   :  { %9823 = vmatpush1.bf16.msra.mxu0 %v13938_v49 }
 0x52c   :  { %9824 = vmatprep.subr.bf16.mxu0 %v13943_v3 }
 0x52f   :  { %9825 = vmatpush1.bf16.msra.mxu0 %v13941_v17 }
 0x530   :  { %9826 = vmatprep.subr.bf16.mxu0 %v13946_v16 }
 0x533   :  { %9827 = vmatpush1.bf16.msra.mxu0 %v13944_v53 }
 0x534   :  { %9828 = vmatprep.subr.bf16.mxu0 %v13949_v7 }
 0x536   :  { %v14990_v56 = vpop.f32.mrb[28].mxu1 }
 0x537   :  { %v14992_v22 = vpop.f32.mrb[29].mxu1  ;;  %9829 = vmatpush1.bf16.msra.mxu0 %v13947_v55  ;;  %v14046_v55 = vld [vmem:[#allocation10 + $0x728] ss:$24 sps:$4 sm:$0xff]  }
 0x538   :  { %v8170_v60 = vpop.f32.mrb[30].mxu1  ;;  %9830 = vmatprep.subr.bf16.mxu0 %v13952_v48 }
 0x539   :  { %v8171_v59 = vpop.f32.mrb[31].mxu1 }
 0x53b   :  { %9831 = vmatpush1.bf16.msra.mxu0 %v13950_v47 }
 0x53c   :  { %9832 = vmatprep.subr.bf16.mxu0 %v13958_v36  ;;  %v14054_v36 = vld [vmem:[#allocation10 + $0x75c] ss:$24 sps:$4 sm:$0xff]  }
 0x53f   :  { %9833 = vmatpush1.bf16.msra.mxu0 %v13956_v61 }
 0x540   :  { %9834 = vmatprep.subr.bf16.mxu0 %v13964_v24 }
 0x543   :  { %9835 = vmatpush1.bf16.msra.mxu0 %v13962_v41 }
 0x544   :  { %9836 = vmatprep.subr.bf16.mxu0 %v13970_v63  ;;  %v14052_v63 = vld [vmem:[#allocation10 + $0x758] ss:$24 sps:$4 sm:$0xff]  }
 0x547   :  { %9837 = vmatpush1.bf16.msra.mxu0 %v13968_v21  ;;  %v14057_v21 = vld [vmem:[#allocation10 + $0x33c] ss:$24 sps:$4 sm:$0xff]  }
 0x548   :  { %9838 = vmatprep.subr.bf16.mxu0 %v13976_v13  ;;  %v14055_v13 = vld [vmem:[#allocation10 + $0x338] ss:$24 sps:$4 sm:$0xff]  }
 0x54b   :  { %9839 = vmatpush1.bf16.msra.mxu0 %v13974_v1  ;;  %v14058_v1 = vld [vmem:[#allocation10 + $0x788] ss:$24 sps:$4 sm:$0xff]  }
 0x54c   :  { %9840 = vmatprep.subr.bf16.mxu0 %v13982_v2  ;;  %v14063_v2 = vld [vmem:[#allocation10 + $0x36c] ss:$24 sps:$4 sm:$0xff]  }
 0x54f   :  { %9841 = vmatpush1.bf16.msra.mxu0 %v13980_v4  ;;  %v14066_v4 = vld [vmem:[#allocation10 + $0x7bc] ss:$24 sps:$4 sm:$0xff]  }
 0x550   :  { %9842 = vmatprep.subr.bf16.mxu0 %v13988_v12  ;;  %v14061_v12 = vld [vmem:[#allocation10 + $0x368] ss:$24 sps:$4 sm:$0xff]  }
 0x553   :  { %9843 = vmatpush1.bf16.msra.mxu0 %v13986_v14  ;;  %v14064_v14 = vld [vmem:[#allocation10 + $0x7b8] ss:$24 sps:$4 sm:$0xff]  }
 0x554   :  { %9844 = vmatprep.subr.bf16.mxu0 %v13994_v30  ;;  %v14069_v30 = vld [vmem:[#allocation10 + $0x39c] ss:$24 sps:$4 sm:$0xff]  }
 0x557   :  { %9845 = vmatpush1.bf16.msra.mxu0 %v13992_v20  ;;  %v14072_v20 = vld [vmem:[#allocation10 + $0x7ec] ss:$24 sps:$4 sm:$0xff]  }
 0x558   :  { %9846 = vmatprep.subr.bf16.mxu0 %v14000_v23  ;;  %v14067_v23 = vld [vmem:[#allocation10 + $0x398] ss:$24 sps:$4 sm:$0xff]  }
 0x55b   :  { %9847 = vmatpush1.bf16.msra.mxu0 %v13998_v25  ;;  %v14070_v25 = vld [vmem:[#allocation10 + $0x7e8] ss:$24 sps:$4 sm:$0xff]  }
 0x55c   :  { %9848 = vmatprep.subr.bf16.mxu0 %v14006_v44  ;;  %v14075_v44 = vld [vmem:[#allocation10 + $0x3cc] ss:$24 sps:$4 sm:$0xff]  }
 0x55f   :  { %9849 = vmatpush1.bf16.msra.mxu0 %v14004_v29  ;;  %v14078_v29 = vld [vmem:[#allocation10 + $0x81c] ss:$24 sps:$4 sm:$0xff]  }
 0x560   :  { %9900 = vmatprep.subr.bf16.mxu0 %v14012_v62  ;;  %v14073_v62 = vld [vmem:[#allocation10 + $0x3c8] ss:$24 sps:$4 sm:$0xff]  }
 0x562   :  { %9851 = vmatmul.mubr.bf16.vlgmr.msra.gmra.mrb[16].mxu0 %v14968_v6 }
 0x563   :  { %9901 = vmatpush1.bf16.msra.mxu0 %v14010_v26  ;;  %v14076_v26 = vld [vmem:[#allocation10 + $0x818] ss:$24 sps:$4 sm:$0xff]  }
 0x564   :  { %9902 = vmatprep.subr.bf16.mxu0 %v14018_v27  ;;  %v14081_v27 = vld [vmem:[#allocation10 + $0x3fc] ss:$24 sps:$4 sm:$0xff]  }
 0x567   :  { %9903 = vmatpush1.bf16.msra.mxu0 %v14016_v45  ;;  %v14084_v45 = vld [vmem:[#allocation10 + $0x84c] ss:$24 sps:$4 sm:$0xff]  }
 0x568   :  { %9904 = vmatprep.subr.bf16.mxu0 %v14024_v52  ;;  %v14079_v52 = vld [vmem:[#allocation10 + $0x3f8] ss:$24 sps:$4 sm:$0xff]  }
 0x56b   :  { %9905 = vmatpush1.bf16.msra.mxu0 %v14022_v15  ;;  %v14082_v15 = vld [vmem:[#allocation10 + $0x848] ss:$24 sps:$4 sm:$0xff]  }
 0x56c   :  { %9906 = vmatprep.subr.bf16.mxu0 %v14030_v28  ;;  %v14087_v28 = vld [vmem:[#allocation10 + $0x42c] ss:$24 sps:$4 sm:$0xff]  }
 0x56f   :  { %9907 = vmatpush1.bf16.msra.mxu0 %v14028_v35  ;;  %v14090_v35 = vld [vmem:[#allocation10 + $0x87c] ss:$24 sps:$4 sm:$0xff]  }
 0x570   :  { %9908 = vmatprep.subr.bf16.mxu0 %v14036_v34  ;;  %v14085_v34 = vld [vmem:[#allocation10 + $0x428] ss:$24 sps:$4 sm:$0xff]  }
 0x573   :  { %9909 = vmatpush1.bf16.msra.mxu0 %v14034_v38  ;;  %v14088_v38 = vld [vmem:[#allocation10 + $0x878] ss:$24 sps:$4 sm:$0xff]  }
 0x574   :  { %9910 = vmatprep.subr.bf16.mxu0 %v14042_v11  ;;  %v14093_v11 = vld [vmem:[#allocation10 + $0x45c] ss:$24 sps:$4 sm:$0xff]  }
 0x575   :  { %v5827_v31 = vpop.f32.mrb[4].mxu0 }
 0x576   :  { %v8207_v18 = vpop.f32.mrb[32].mxu1  ;;  %v12130_v49 = vadd.f32 %v5827_v31, %v943_v57  ;;  %v5829_v3 = vpop.f32.mrb[5].mxu0  ;;  %v14096_v57 = vld [vmem:[#allocation10 + $0x8ac] ss:$24 sps:$4 sm:$0xff]   ;;  %v14102_v31 = vld [vmem:[#allocation10 + $0x8dc] ss:$24 sps:$4 sm:$0xff]  }
 0x577   :  { %v15004_v17 = vadd.f32 %v8207_v18, %v14990_v56  ;;  %v8209_v16 = vpop.f32.mrb[33].mxu1  ;;  %v12131_v53 = vadd.f32 %v5829_v3, %v947_v40  ;;  %v5831_v7 = vpop.f32.mrb[6].mxu0  ;;  %9911 = vmatpush1.bf16.msra.mxu0 %v14040_v10  ;;  %v14049_v56 = vld [vmem:[#allocation10 + $0x308] ss:$24 sps:$4 sm:$0xff]   ;;  %v14091_v40 = vld [vmem:[#allocation10 + $0x458] ss:$24 sps:$4 sm:$0xff]  }
 0x578   :  { %v15007_v48 = vadd.f32 %v8209_v16, %v14992_v22  ;;  %v8211_v47 = vpop.f32.mrb[34].mxu1  ;;  %v5838_v33 = vmax.f32 %v12130_v49, 0.0  ;;  %v5832_v60 = vpop.f32.mrb[7].mxu0  ;;  %9912 = vmatprep.subr.bf16.mxu0 %v14048_v5  ;;  %v14060_v22 = vld [vmem:[#allocation10 + $0x78c] ss:$24 sps:$4 sm:$0xff]  }
 0x579   :  { %v8212_v59 = vpop.f32.mrb[35].mxu1  ;;  %v5839_v61 = vmax.f32 %v12131_v53, 0.0  ;;  %v14094_v10 = vld [vmem:[#allocation10 + $0x8a8] ss:$24 sps:$4 sm:$0xff]   ;;  %v14099_v5 = vld [vmem:[#allocation10 + $0x48c] ss:$24 sps:$4 sm:$0xff]  }
 0x57a   :  { %v15011_v41 = vpack.c.bf16 %v5838_v33, %v5838_v33  ;;  %v14097_v18 = vld [vmem:[#allocation10 + $0x488] ss:$24 sps:$4 sm:$0xff]   ;;  %v14100_v49 = vld [vmem:[#allocation10 + $0x8d8] ss:$24 sps:$4 sm:$0xff]   ;;  %v14105_v3 = vld [vmem:[#allocation10 + $0x4bc] ss:$24 sps:$4 sm:$0xff]  }
 0x57b   :  { %v15009_v24 = vpack.c.bf16 %v5839_v61, %v5839_v61  ;;  %9913 = vmatpush1.bf16.msra.mxu0 %v14046_v55  ;;  %v14108_v16 = vld [vmem:[#allocation10 + $0x314] ss:$24 sps:$4 sm:$0xff]   ;;  %v14103_v53 = vld [vmem:[#allocation10 + $0x4b8] ss:$24 sps:$4 sm:$0xff]   ;;  %v14114_v47 = vld [vmem:[#allocation10 + $0x344] ss:$24 sps:$4 sm:$0xff]  }
 0x57c   :  { %9914 = vmatprep.subr.bf16.mxu0 %v14054_v36  ;;  %v14106_v7 = vld [vmem:[#allocation10 + $0x310] ss:$24 sps:$4 sm:$0xff]   ;;  %v14111_v55 = vld [vmem:[#allocation10 + $0x4ec] ss:$24 sps:$4 sm:$0xff]   ;;  %v14112_v60 = vld [vmem:[#allocation10 + $0x340] ss:$24 sps:$4 sm:$0xff]  }
 0x57d   :  { %9809 = vmatprep.mubr.bf16.mxu1 %v15009_v24  ;;  %9932 = vmatprep.mubr.bf16.mxu0 %v15009_v24  ;;  %v14109_v33 = vld [vmem:[#allocation10 + $0x4e8] ss:$24 sps:$4 sm:$0xff]   ;;  %v14117_v36 = vld [vmem:[#allocation10 + $0x51c] ss:$24 sps:$4 sm:$0xff]   ;;  %v14115_v61 = vld [vmem:[#allocation10 + $0x518] ss:$24 sps:$4 sm:$0xff]  }
 0x57e   :  { %9810 = vmatmul.mubr.bf16.vlgmr.msra.gmra.mrb[40].mxu1 %v15011_v41  ;;  %v14120_v59 = vld [vmem:[#allocation10 + $0x374] ss:$24 sps:$4 sm:$0xff]  }
 0x57f   :  { %9860 = vmatpush1.bf16.msra.mxu1 %v14049_v56  ;;  %9891 = vmatprep.mubr.bf16.mxu1 %v14970_v8  ;;  %v14118_v56 = vld [vmem:[#allocation10 + $0x370] ss:$24 sps:$4 sm:$0xff]  }
 0x580   :  { %9915 = vmatpush1.bf16.msra.mxu0 %v14052_v63  ;;  %9861 = vmatprep.subr.bf16.mxu1 %v14057_v21  ;;  %v14123_v63 = vld [vmem:[#allocation10 + $0x54c] ss:$24 sps:$4 sm:$0xff]  }
 0x581   :  { %9916 = vmatprep.subr.bf16.mxu0 %v14060_v22  ;;  %v14126_v21 = vld [vmem:[#allocation10 + $0x3a4] ss:$24 sps:$4 sm:$0xff]   ;;  %v14121_v22 = vld [vmem:[#allocation10 + $0x548] ss:$24 sps:$4 sm:$0xff]  }
 0x583   :  { %9862 = vmatpush1.bf16.msra.mxu1 %v14055_v13  ;;  %v14124_v13 = vld [vmem:[#allocation10 + $0x3a0] ss:$24 sps:$4 sm:$0xff]  }
 0x584   :  { %9917 = vmatpush1.bf16.msra.mxu0 %v14058_v1  ;;  %9863 = vmatprep.subr.bf16.mxu1 %v14063_v2  ;;  %v14129_v1 = vld [vmem:[#allocation10 + $0x57c] ss:$24 sps:$4 sm:$0xff]   ;;  %v14127_v2 = vld [vmem:[#allocation10 + $0x578] ss:$24 sps:$4 sm:$0xff]  }
 0x585   :  { %9918 = vmatprep.subr.bf16.mxu0 %v14066_v4  ;;  %v14130_v4 = vld [vmem:[#allocation10 + $0x3d0] ss:$24 sps:$4 sm:$0xff]  }
 0x587   :  { %9864 = vmatpush1.bf16.msra.mxu1 %v14061_v12  ;;  %v14135_v12 = vld [vmem:[#allocation10 + $0x5ac] ss:$24 sps:$4 sm:$0xff]  }
 0x588   :  { %9919 = vmatpush1.bf16.msra.mxu0 %v14064_v14  ;;  %9865 = vmatprep.subr.bf16.mxu1 %v14069_v30  ;;  %v14138_v14 = vld [vmem:[#allocation10 + $0x404] ss:$24 sps:$4 sm:$0xff]   ;;  %v14133_v30 = vld [vmem:[#allocation10 + $0x5a8] ss:$24 sps:$4 sm:$0xff]  }
 0x589   :  { %9920 = vmatprep.subr.bf16.mxu0 %v14072_v20  ;;  %v14136_v20 = vld [vmem:[#allocation10 + $0x400] ss:$24 sps:$4 sm:$0xff]  }
 0x58b   :  { %9866 = vmatpush1.bf16.msra.mxu1 %v14067_v23  ;;  %v14141_v23 = vld [vmem:[#allocation10 + $0x5dc] ss:$24 sps:$4 sm:$0xff]  }
 0x58c   :  { %9921 = vmatpush1.bf16.msra.mxu0 %v14070_v25  ;;  %9867 = vmatprep.subr.bf16.mxu1 %v14075_v44 }
 0x58d   :  { %9922 = vmatprep.subr.bf16.mxu0 %v14078_v29  ;;  %v14144_v29 = vld [vmem:[#allocation10 + $0x434] ss:$24 sps:$4 sm:$0xff]  }
 0x58f   :  { %9868 = vmatpush1.bf16.msra.mxu1 %v14073_v62 }
 0x590   :  { %9923 = vmatpush1.bf16.msra.mxu0 %v14076_v26  ;;  %9869 = vmatprep.subr.bf16.mxu1 %v14081_v27 }
 0x591   :  { %9924 = vmatprep.subr.bf16.mxu0 %v14084_v45 }
 0x593   :  { %9870 = vmatpush1.bf16.msra.mxu1 %v14079_v52 }
 0x594   :  { %9925 = vmatpush1.bf16.msra.mxu0 %v14082_v15  ;;  %9871 = vmatprep.subr.bf16.mxu1 %v14087_v28 }
 0x595   :  { %9926 = vmatprep.subr.bf16.mxu0 %v14090_v35  ;;  %v14139_v35 = vld [vmem:[#allocation10 + $0x5d8] ss:$24 sps:$4 sm:$0xff]  }
 0x597   :  { %9872 = vmatpush1.bf16.msra.mxu1 %v14085_v34 }
 0x598   :  { %9927 = vmatpush1.bf16.msra.mxu0 %v14088_v38  ;;  %9873 = vmatprep.subr.bf16.mxu1 %v14093_v11  ;;  %v14147_v11 = vld [vmem:[#allocation10 + $0x14] ss:$24 sps:$4 sm:$0xff]  }
 0x599   :  { %9928 = vmatprep.subr.bf16.mxu0 %v14096_v57 }
 0x59b   :  { %9874 = vmatpush1.bf16.msra.mxu1 %v14091_v40  ;;  %v14145_v40 = vld [vmem:[#allocation10 + $0x10] ss:$24 sps:$4 sm:$0xff]  }
 0x59c   :  { %9929 = vmatpush1.bf16.msra.mxu0 %v14094_v10  ;;  %9875 = vmatprep.subr.bf16.mxu1 %v14099_v5  ;;  %v14153_v10 = vld [vmem:[#allocation10 + $0x44] ss:$24 sps:$4 sm:$0xff]   ;;  %v14151_v5 = vld [vmem:[#allocation10 + $0x40] ss:$24 sps:$4 sm:$0xff]  }
 0x59d   :  { %9930 = vmatprep.subr.bf16.mxu0 %v14102_v31  ;;  %v14154_v31 = vld [vmem:[#allocation10 + $0x490] ss:$24 sps:$4 sm:$0xff]  }
 0x59f   :  { %9876 = vmatpush1.bf16.msra.mxu1 %v14097_v18  ;;  %v14159_v18 = vld [vmem:[#allocation10 + $0x74] ss:$24 sps:$4 sm:$0xff]  }
 0x5a0   :  { %9931 = vmatpush1.bf16.msra.mxu0 %v14100_v49  ;;  %9877 = vmatprep.subr.bf16.mxu1 %v14105_v3  ;;  %v14162_v49 = vld [vmem:[#allocation10 + $0x4c4] ss:$24 sps:$4 sm:$0xff]   ;;  %v14157_v3 = vld [vmem:[#allocation10 + $0x70] ss:$24 sps:$4 sm:$0xff]  }
 0x5a1   :  { %9982 = vmatprep.subr.bf16.mxu0 %v14108_v16  ;;  %v14160_v16 = vld [vmem:[#allocation10 + $0x4c0] ss:$24 sps:$4 sm:$0xff]  }
 0x5a3   :  { %9878 = vmatpush1.bf16.msra.mxu1 %v14103_v53  ;;  %9933 = vmatmul.mubr.bf16.vlgmr.msra.gmra.mrb[20].mxu0 %v15011_v41  ;;  %v14165_v53 = vld [vmem:[#allocation10 + $0xa4] ss:$24 sps:$4 sm:$0xff]  }
 0x5a4   :  { %9983 = vmatpush1.bf16.msra.mxu0 %v14106_v7  ;;  %10014 = vmatprep.mubr.bf16.mxu0 %v14970_v8  ;;  %v14132_v8 = vld [vmem:[#allocation10 + $0x3d4] ss:$24 sps:$4 sm:$0xff]  }
 0x5a5   :  { %9879 = vmatprep.subr.bf16.mxu1 %v14111_v55  ;;  %9984 = vmatprep.subr.bf16.mxu0 %v14114_v47  ;;  %v14168_v7 = vld [vmem:[#allocation10 + $0x4f4] ss:$24 sps:$4 sm:$0xff]   ;;  %v14163_v55 = vld [vmem:[#allocation10 + $0xa0] ss:$24 sps:$4 sm:$0xff]  }
 0x5a6   :  { %v14171_v47 = vld [vmem:[#allocation10 + $0xd4] ss:$24 sps:$4 sm:$0xff]  }
 0x5a7   :  { %9880 = vmatpush1.bf16.msra.mxu1 %v14109_v33  ;;  %v14174_v33 = vld [vmem:[#allocation10 + $0x524] ss:$24 sps:$4 sm:$0xff]  }
 0x5a8   :  { %9985 = vmatpush1.bf16.msra.mxu0 %v14112_v60  ;;  %9881 = vmatprep.subr.bf16.mxu1 %v14117_v36  ;;  %v14169_v60 = vld [vmem:[#allocation10 + $0xd0] ss:$24 sps:$4 sm:$0xff]   ;;  %v14172_v36 = vld [vmem:[#allocation10 + $0x520] ss:$24 sps:$4 sm:$0xff]  }
 0x5a9   :  { %9986 = vmatprep.subr.bf16.mxu0 %v14120_v59  ;;  %v14177_v59 = vld [vmem:[#allocation10 + $0x104] ss:$24 sps:$4 sm:$0xff]  }
 0x5ab   :  { %9882 = vmatpush1.bf16.msra.mxu1 %v14115_v61  ;;  %v14180_v61 = vld [vmem:[#allocation10 + $0x554] ss:$24 sps:$4 sm:$0xff]  }
 0x5ac   :  { %9987 = vmatpush1.bf16.msra.mxu0 %v14118_v56  ;;  %9883 = vmatprep.subr.bf16.mxu1 %v14123_v63  ;;  %v14175_v56 = vld [vmem:[#allocation10 + $0x100] ss:$24 sps:$4 sm:$0xff]   ;;  %v14178_v63 = vld [vmem:[#allocation10 + $0x550] ss:$24 sps:$4 sm:$0xff]  }
 0x5ad   :  { %9988 = vmatprep.subr.bf16.mxu0 %v14126_v21  ;;  %v14183_v21 = vld [vmem:[#allocation10 + $0x134] ss:$24 sps:$4 sm:$0xff]  }
 0x5af   :  { %9884 = vmatpush1.bf16.msra.mxu1 %v14121_v22  ;;  %v14186_v22 = vld [vmem:[#allocation10 + $0x584] ss:$24 sps:$4 sm:$0xff]  }
 0x5b0   :  { %9989 = vmatpush1.bf16.msra.mxu0 %v14124_v13  ;;  %9885 = vmatprep.subr.bf16.mxu1 %v14129_v1  ;;  %v14181_v13 = vld [vmem:[#allocation10 + $0x130] ss:$24 sps:$4 sm:$0xff]   ;;  %v14184_v1 = vld [vmem:[#allocation10 + $0x580] ss:$24 sps:$4 sm:$0xff]  }
 0x5b1   :  { %9990 = vmatprep.subr.bf16.mxu0 %v14132_v8  ;;  %v14189_v8 = vld [vmem:[#allocation10 + $0x164] ss:$24 sps:$4 sm:$0xff]  }
 0x5b3   :  { %9886 = vmatpush1.bf16.msra.mxu1 %v14127_v2  ;;  %v14192_v2 = vld [vmem:[#allocation10 + $0x5b4] ss:$24 sps:$4 sm:$0xff]  }
 0x5b4   :  { %9991 = vmatpush1.bf16.msra.mxu0 %v14130_v4  ;;  %9887 = vmatprep.subr.bf16.mxu1 %v14135_v12  ;;  %v14187_v4 = vld [vmem:[#allocation10 + $0x160] ss:$24 sps:$4 sm:$0xff]   ;;  %v14190_v12 = vld [vmem:[#allocation10 + $0x5b0] ss:$24 sps:$4 sm:$0xff]  }
 0x5b5   :  { %v8248_v25 = vpop.f32.mrb[8].mxu0  ;;  %9992 = vmatprep.subr.bf16.mxu0 %v14138_v14  ;;  %v14195_v14 = vld [vmem:[#allocation10 + $0x194] ss:$24 sps:$4 sm:$0xff]  }
 0x5b6   :  { %v9729_v44 = vpop.f32.mrb[36].mxu1  ;;  %v15020_v62 = vadd.f32 %v8248_v25, %v15004_v17  ;;  %v8250_v27 = vpop.f32.mrb[9].mxu0  ;;  %v14142_v17 = vld [vmem:[#allocation10 + $0x430] ss:$24 sps:$4 sm:$0xff]   ;;  %v14201_v25 = vld [vmem:[#allocation10 + $0x1c4] ss:$24 sps:$4 sm:$0xff]  }
 0x5b7   :  { %v15023_v26 = vadd.f32 %v9729_v44, %v14924_v9  ;;  %v9731_v45 = vpop.f32.mrb[37].mxu1  ;;  %v15026_v52 = vadd.f32 %v8250_v27, %v15007_v48  ;;  %9888 = vmatpush1.bf16.msra.mxu1 %v14133_v30  ;;  %v8252_v34 = vpop.f32.mrb[10].mxu0  ;;  %v14150_v9 = vld [vmem:[#allocation10 + $0x464] ss:$24 sps:$4 sm:$0xff]   ;;  %v14148_v48 = vld [vmem:[#allocation10 + $0x460] ss:$24 sps:$4 sm:$0xff]  }
 0x5b8   :  { %v15029_v15 = vadd.f32 %v9731_v45, %v14927_v37  ;;  %v9733_v28 = vpop.f32.mrb[38].mxu1  ;;  %9993 = vmatpush1.bf16.msra.mxu0 %v14136_v20  ;;  %9889 = vmatprep.subr.bf16.mxu1 %v14141_v23  ;;  %v8253_v57 = vpop.f32.mrb[11].mxu0  ;;  %v14156_v37 = vld [vmem:[#allocation10 + $0x494] ss:$24 sps:$4 sm:$0xff]   ;;  %v14198_v30 = vld [vmem:[#allocation10 + $0x5e4] ss:$24 sps:$4 sm:$0xff]  }
 0x5b9   :  { %v9734_v38 = vpop.f32.mrb[39].mxu1  ;;  %9994 = vmatprep.subr.bf16.mxu0 %v14144_v29  ;;  %v14193_v20 = vld [vmem:[#allocation10 + $0x190] ss:$24 sps:$4 sm:$0xff]   ;;  %v14196_v23 = vld [vmem:[#allocation10 + $0x5e0] ss:$24 sps:$4 sm:$0xff]  }
 0x5ba   :  { %v14268_v44 = vld [vmem:[#allocation14 + $0x40] sm:$0xff]   ;;  %v14199_v29 = vld [vmem:[#allocation10 + $0x1c0] ss:$24 sps:$4 sm:$0xff]   ;;  %v14270_v28 = vld [vmem:[#allocation14 + $0x48] sm:$0xff]  }
 0x5bb   :  { %9890 = vmatpush1.bf16.msra.mxu1 %v14139_v35  ;;  %v14204_v27 = vld [vmem:[#allocation10 + $0x1f4] ss:$24 sps:$4 sm:$0xff]   ;;  %v14202_v35 = vld [vmem:[#allocation10 + $0x1f0] ss:$24 sps:$4 sm:$0xff]   ;;  %v14207_v34 = vld [vmem:[#allocation10 + $0x224] ss:$24 sps:$4 sm:$0xff]  }
 0x5bc   :  { %9995 = vmatpush1.bf16.msra.mxu0 %v14142_v17  ;;  %9941 = vmatprep.subr.bf16.mxu1 %v14147_v11  ;;  %v14269_v45 = vld [vmem:[#allocation14] sm:$0xff]   ;;  %v14271_v38 = vld [vmem:[#allocation14 + $0x8] sm:$0xff]   ;;  %v14272_v17 = vld [vmem:[#allocation14 + $0x50] sm:$0xff]  }
 0x5bd   :  { %9996 = vmatprep.subr.bf16.mxu0 %v14150_v9  ;;  %v14205_v11 = vld [vmem:[#allocation10 + $0x220] ss:$24 sps:$4 sm:$0xff]   ;;  %v14210_v57 = vld [vmem:[#allocation10 + $0x254] ss:$24 sps:$4 sm:$0xff]  }
 0x5be   :  { %9892 = vmatmul.mubr.bf16.vlgmr.msra.gmra.mrb[44].mxu1 %v14986_v46  ;;  %v14273_v9 = vld [vmem:[#allocation14 + $0x10] sm:$0xff]  }
 0x5bf   :  { %9942 = vmatpush1.bf16.msra.mxu1 %v14145_v40  ;;  %9973 = vmatprep.mubr.bf16.mxu1 %v14946_v54  ;;  %v14166_v54 = vld [vmem:[#allocation10 + $0x4f0] ss:$24 sps:$4 sm:$0xff]   ;;  %v14274_v40 = vld [vmem:[#allocation14 + $0x58] sm:$0xff]  }
 0x5c0   :  { %9997 = vmatpush1.bf16.msra.mxu0 %v14148_v48  ;;  %9943 = vmatprep.subr.bf16.mxu1 %v14153_v10  ;;  %v14208_v48 = vld [vmem:[#allocation10 + $0x250] ss:$24 sps:$4 sm:$0xff]   ;;  %v14213_v10 = vld [vmem:[#allocation10 + $0x284] ss:$24 sps:$4 sm:$0xff]  }
 0x5c1   :  { %9998 = vmatprep.subr.bf16.mxu0 %v14156_v37  ;;  %v14276_v37 = vld [vmem:[#allocation14 + $0x60] sm:$0xff]  }
 0x5c3   :  { %9944 = vmatpush1.bf16.msra.mxu1 %v14151_v5  ;;  %v14211_v5 = vld [vmem:[#allocation10 + $0x280] ss:$24 sps:$4 sm:$0xff]  }
 0x5c4   :  { %9999 = vmatpush1.bf16.msra.mxu0 %v14154_v31  ;;  %9945 = vmatprep.subr.bf16.mxu1 %v14159_v18  ;;  %v14216_v31 = vld [vmem:[#allocation10 + $0x2b4] ss:$24 sps:$4 sm:$0xff]  }
 0x5c5   :  { %10000 = vmatprep.subr.bf16.mxu0 %v14162_v49  ;;  %v14277_v18 = vld [vmem:[#allocation14 + $0x20] sm:$0xff]   ;;  %v14278_v49 = vld [vmem:[#allocation14 + $0x68] sm:$0xff]  }
 0x5c7   :  { %9946 = vmatpush1.bf16.msra.mxu1 %v14157_v3  ;;  %v14214_v3 = vld [vmem:[#allocation10 + $0x2b0] ss:$24 sps:$4 sm:$0xff]  }
 0x5c8   :  { %10001 = vmatpush1.bf16.msra.mxu0 %v14160_v16  ;;  %9947 = vmatprep.subr.bf16.mxu1 %v14165_v53  ;;  %v14219_v16 = vld [vmem:[#allocation10 + $0x2e4] ss:$24 sps:$4 sm:$0xff]   ;;  %v14279_v53 = vld [vmem:[#allocation14 + $0x28] sm:$0xff]  }
 0x5c9   :  { %10002 = vmatprep.subr.bf16.mxu0 %v14168_v7 }
 0x5cb   :  { %9948 = vmatpush1.bf16.msra.mxu1 %v14163_v55  ;;  %v14280_v55 = vld [vmem:[#allocation14 + $0x70] sm:$0xff]  }
 0x5cc   :  { %10003 = vmatpush1.bf16.msra.mxu0 %v14166_v54  ;;  %9949 = vmatprep.subr.bf16.mxu1 %v14171_v47 }
 0x5cd   :  { %10004 = vmatprep.subr.bf16.mxu0 %v14174_v33 }
 0x5cf   :  { %9950 = vmatpush1.bf16.msra.mxu1 %v14169_v60 }
 0x5d0   :  { %10005 = vmatpush1.bf16.msra.mxu0 %v14172_v36  ;;  %9951 = vmatprep.subr.bf16.mxu1 %v14177_v59  ;;  %v14217_v36 = vld [vmem:[#allocation10 + $0x2e0] ss:$24 sps:$4 sm:$0xff]  }
 0x5d1   :  { %10006 = vmatprep.subr.bf16.mxu0 %v14180_v61  ;;  %v14222_v61 = vld [vmem:[#allocation10 + $0x614] ss:$24 sps:$4 sm:$0xff]  }
 0x5d3   :  { %9952 = vmatpush1.bf16.msra.mxu1 %v14175_v56  ;;  %v14281_v56 = vld [vmem:[#allocation14 + $0x30] sm:$0xff]  }
 0x5d4   :  { %10007 = vmatpush1.bf16.msra.mxu0 %v14178_v63  ;;  %9953 = vmatprep.subr.bf16.mxu1 %v14183_v21  ;;  %v14282_v63 = vld [vmem:[#allocation14 + $0x78] sm:$0xff]   ;;  %v14220_v21 = vld [vmem:[#allocation10 + $0x610] ss:$24 sps:$4 sm:$0xff]  }
 0x5d5   :  { %10008 = vmatprep.subr.bf16.mxu0 %v14186_v22  ;;  %v14225_v22 = vld [vmem:[#allocation10 + $0x644] ss:$24 sps:$4 sm:$0xff]  }
 0x5d7   :  { %9954 = vmatpush1.bf16.msra.mxu1 %v14181_v13  ;;  %v14228_v13 = vld [vmem:[#allocation10 + $0x674] ss:$24 sps:$4 sm:$0xff]  }
 0x5d8   :  { %10009 = vmatpush1.bf16.msra.mxu0 %v14184_v1  ;;  %9955 = vmatprep.subr.bf16.mxu1 %v14189_v8  ;;  %v14226_v1 = vld [vmem:[#allocation10 + $0x670] ss:$24 sps:$4 sm:$0xff]   ;;  %v14231_v8 = vld [vmem:[#allocation10 + $0x6a4] ss:$24 sps:$4 sm:$0xff]  }
 0x5d9   :  { %10010 = vmatprep.subr.bf16.mxu0 %v14192_v2  ;;  %v14229_v2 = vld [vmem:[#allocation10 + $0x6a0] ss:$24 sps:$4 sm:$0xff]  }
 0x5db   :  { %9956 = vmatpush1.bf16.msra.mxu1 %v14187_v4  ;;  %v14234_v4 = vld [vmem:[#allocation10 + $0x6d4] ss:$24 sps:$4 sm:$0xff]  }
 0x5dc   :  { %10011 = vmatpush1.bf16.msra.mxu0 %v14190_v12  ;;  %9957 = vmatprep.subr.bf16.mxu1 %v14195_v14  ;;  %v14232_v12 = vld [vmem:[#allocation10 + $0x6d0] ss:$24 sps:$4 sm:$0xff]   ;;  %v14237_v14 = vld [vmem:[#allocation10 + $0x704] ss:$24 sps:$4 sm:$0xff]  }
 0x5dd   :  { %10012 = vmatprep.subr.bf16.mxu0 %v14198_v30  ;;  %v14238_v30 = vld [vmem:[#allocation10 + $0x730] ss:$24 sps:$4 sm:$0xff]  }
 0x5df   :  { %9958 = vmatpush1.bf16.msra.mxu1 %v14193_v20  ;;  %v14243_v20 = vld [vmem:[#allocation10 + $0x764] ss:$24 sps:$4 sm:$0xff]  }
 0x5e0   :  { %10013 = vmatpush1.bf16.msra.mxu0 %v14196_v23  ;;  %9959 = vmatprep.subr.bf16.mxu1 %v14201_v25  ;;  %v14241_v23 = vld [vmem:[#allocation10 + $0x760] ss:$24 sps:$4 sm:$0xff]   ;;  %v14246_v25 = vld [vmem:[#allocation10 + $0x794] ss:$24 sps:$4 sm:$0xff]  }
 0x5e1   :  { %12060 = vmatprep.subr.bf16.mxu0 %v14268_v44  ;;  %v14244_v44 = vld [vmem:[#allocation10 + $0x790] ss:$24 sps:$4 sm:$0xff]  }
 0x5e3   :  { %9960 = vmatpush1.bf16.msra.mxu1 %v14199_v29  ;;  %10015 = vmatmul.mubr.bf16.vlgmr.msra.gmra.mrb[24].mxu0 %v14986_v46  ;;  %v14275_v46 = vld [vmem:[#allocation14 + $0x18] sm:$0xff]  }
 0x5e4   :  { %9961 = vmatprep.subr.bf16.mxu1 %v14204_v27  ;;  %12061 = vmatpush3.bf16.msra.mxu0 %v14269_v45  ;;  %v14249_v29 = vld [vmem:[#allocation10 + $0x7c4] ss:$24 sps:$4 sm:$0xff]   ;;  %v14247_v27 = vld [vmem:[#allocation10 + $0x7c0] ss:$24 sps:$4 sm:$0xff]   ;;  %v14252_v45 = vld [vmem:[#allocation10 + $0x7f4] ss:$24 sps:$4 sm:$0xff]  }
 0x5e5   :  { %12062 = vmatprep.subr.bf16.mxu0 %v14270_v28  ;;  %v14250_v28 = vld [vmem:[#allocation10 + $0x7f0] ss:$24 sps:$4 sm:$0xff]  }
 0x5e7   :  { %9962 = vmatpush1.bf16.msra.mxu1 %v14202_v35  ;;  %v14255_v35 = vld [vmem:[#allocation10 + $0x824] ss:$24 sps:$4 sm:$0xff]  }
 0x5e8   :  { %9963 = vmatprep.subr.bf16.mxu1 %v14207_v34  ;;  %12063 = vmatpush3.bf16.msra.mxu0 %v14271_v38  ;;  %v14253_v34 = vld [vmem:[#allocation10 + $0x820] ss:$24 sps:$4 sm:$0xff]   ;;  %v14258_v38 = vld [vmem:[#allocation10 + $0x854] ss:$24 sps:$4 sm:$0xff]  }
 0x5e9   :  { %12064 = vmatprep.subr.bf16.mxu0 %v14272_v17  ;;  %v14256_v17 = vld [vmem:[#allocation10 + $0x850] ss:$24 sps:$4 sm:$0xff]  }
 0x5eb   :  { %9964 = vmatpush1.bf16.msra.mxu1 %v14205_v11  ;;  %v14261_v11 = vld [vmem:[#allocation10 + $0x884] ss:$24 sps:$4 sm:$0xff]  }
 0x5ec   :  { %9965 = vmatprep.subr.bf16.mxu1 %v14210_v57  ;;  %12065 = vmatpush3.bf16.msra.mxu0 %v14273_v9  ;;  %v14259_v57 = vld [vmem:[#allocation10 + $0x880] ss:$24 sps:$4 sm:$0xff]   ;;  %v14264_v9 = vld [vmem:[#allocation10 + $0x8b4] ss:$24 sps:$4 sm:$0xff]  }
 0x5ed   :  { %12066 = vmatprep.subr.bf16.mxu0 %v14274_v40  ;;  %v14262_v40 = vld [vmem:[#allocation10 + $0x8b0] ss:$24 sps:$4 sm:$0xff]  }
 0x5ef   :  { %9966 = vmatpush1.bf16.msra.mxu1 %v14208_v48  ;;  %v14267_v48 = vld [vmem:[#allocation10 + $0x8e4] ss:$24 sps:$4 sm:$0xff]  }
 0x5f0   :  { %9967 = vmatprep.subr.bf16.mxu1 %v14213_v10  ;;  %12067 = vmatpush3.bf16.msra.mxu0 %v14275_v46 }
 0x5f1   :  { %12068 = vmatprep.subr.bf16.mxu0 %v14276_v37 }
 0x5f3   :  { %9968 = vmatpush1.bf16.msra.mxu1 %v14211_v5 }
 0x5f4   :  { %9969 = vmatprep.subr.bf16.mxu1 %v14216_v31  ;;  %12069 = vmatpush3.bf16.msra.mxu0 %v14277_v18  ;;  %v14265_v18 = vld [vmem:[#allocation10 + $0x8e0] ss:$24 sps:$4 sm:$0xff]  }
 0x5f5   :  { %v9770_v7 = vpop.f32.mrb[12].mxu0  ;;  %12070 = vmatprep.subr.bf16.mxu0 %v14278_v49 }
 0x5f6   :  { %v15035_v54 = vadd.f32 %v9770_v7, %v15023_v26  ;;  %v9772_v47 = vpop.f32.mrb[13].mxu0  ;;  %v14283_v26 = vld [vmem:[#allocation14 + $0x38] sm:$0xff]   ;;  %v14287_v7 = vld [vmem:[#allocation14 + $0x88] sm:$0xff]  }
 0x5f7   :  { %v15038_v33 = vadd.f32 %v9772_v47, %v15029_v15  ;;  %9970 = vmatpush1.bf16.msra.mxu1 %v14214_v3  ;;  %v9774_v60 = vpop.f32.mrb[14].mxu0  ;;  %v14223_v15 = vld [vmem:[#allocation10 + $0x640] ss:$24 sps:$4 sm:$0xff]   ;;  %v14284_v3 = vld [vmem:[#allocation14 + $0xc0] sm:$0xff]  }
 0x5f8   :  { %v9775_v59 = vpop.f32.mrb[15].mxu0  ;;  %9971 = vmatprep.subr.bf16.mxu1 %v14219_v16  ;;  %12071 = vmatpush3.bf16.msra.mxu0 %v14279_v53  ;;  %v14285_v16 = vld [vmem:[#allocation14 + $0x80] sm:$0xff]   ;;  %v14286_v53 = vld [vmem:[#allocation14 + $0xc8] sm:$0xff]   ;;  %v14291_v47 = vld [vmem:[#allocation14 + $0x98] sm:$0xff]  }
 0x5f9   :  { %12072 = vmatprep.subr.bf16.mxu0 %v14280_v55  ;;  %v14289_v55 = vld [vmem:[#allocation14 + $0x90] sm:$0xff]   ;;  %v14292_v60 = vld [vmem:[#allocation14 + $0xe0] sm:$0xff]   ;;  %v14294_v59 = vld [vmem:[#allocation14 + $0xe8] sm:$0xff]  }
 0x5fb   :  { %9972 = vmatpush1.bf16.msra.mxu1 %v14217_v36  ;;  %v14293_v36 = vld [vmem:[#allocation14 + $0xa0] sm:$0xff]  }
 0x5fc   :  { %10023 = vmatprep.subr.bf16.mxu1 %v14222_v61  ;;  %12073 = vmatpush3.bf16.msra.mxu0 %v14281_v56  ;;  %v15049_v61 = vld [vmem:[#allocation13] sm:$0x3f] }
 0x5fd   :  { %12074 = vmatprep.subr.bf16.mxu0 %v14282_v63  ;;  %v10069_v56 = vrot.slane %v15049_v61, %v926_v51  ;;  %v14296_v63 = vld [vmem:[#allocation14 + $0xf0] sm:$0xff]   ;;  %v14300_v51 = vld [vmem:[#allocation14 + $0x140] sm:$0xff]  }
 0x5fe   :  { %9974 = vmatmul.mubr.bf16.vlgmr.msra.gmra.mrb[48].mxu1 %v14968_v6  ;;  %v14235_v6 = vld [vmem:[#allocation10 + $0x700] ss:$24 sps:$4 sm:$0xff]  }
 0x5ff   :  { %10024 = vmatpush1.bf16.msra.mxu1 %v14220_v21  ;;  %10055 = vmatprep.mubr.bf16.mxu1 %v15009_v24  ;;  %v14240_v24 = vld [vmem:[#allocation10 + $0x734] ss:$24 sps:$4 sm:$0xff]  }
 0x600   :  { %10025 = vmatprep.subr.bf16.mxu1 %v14225_v22  ;;  %12075 = vmatpush3.bf16.msra.mxu0 %v14283_v26  ;;  %v10073_v22 = vrot.slane %v15049_v61, %v930_v32 }
 0x601   :  { %12104 = vmatprep.subr.bf16.mxu0 %v14300_v51 }
 0x603   :  { %10026 = vmatpush1.bf16.msra.mxu1 %v14223_v15 }
 0x604   :  { %10027 = vmatprep.subr.bf16.mxu1 %v14228_v13 }
 0x607   :  { %10028 = vmatpush1.bf16.msra.mxu1 %v14226_v1 }
 0x608   :  { %10029 = vmatprep.subr.bf16.mxu1 %v14231_v8  ;;  %v14297_v8 = vld [vmem:[#allocation14 + $0xb0] sm:$0xff]  }
 0x60b   :  { %10030 = vmatpush1.bf16.msra.mxu1 %v14229_v2 }
 0x60c   :  { %10031 = vmatprep.subr.bf16.mxu1 %v14234_v4 }
 0x60f   :  { %10032 = vmatpush1.bf16.msra.mxu1 %v14232_v12  ;;  %v14298_v12 = vld [vmem:[#allocation14 + $0xf8] sm:$0xff]  }
 0x610   :  { %10033 = vmatprep.subr.bf16.mxu1 %v14237_v14 }
 0x613   :  { %10034 = vmatpush1.bf16.msra.mxu1 %v14235_v6 }
 0x614   :  { %10035 = vmatprep.subr.bf16.mxu1 %v14240_v24 }
 0x617   :  { %10036 = vmatpush1.bf16.msra.mxu1 %v14238_v30  ;;  %v14299_v30 = vld [vmem:[#allocation14 + $0xb8] sm:$0xff]  }
 0x618   :  { %10037 = vmatprep.subr.bf16.mxu1 %v14243_v20 }
 0x61b   :  { %10038 = vmatpush1.bf16.msra.mxu1 %v14241_v23  ;;  %v14302_v23 = vld [vmem:[#allocation14 + $0x148] sm:$0xff]  }
 0x61c   :  { %10039 = vmatprep.subr.bf16.mxu1 %v14246_v25  ;;  %v14304_v25 = vld [vmem:[#allocation14 + $0x150] sm:$0xff]  }
 0x61f   :  { %10040 = vmatpush1.bf16.msra.mxu1 %v14244_v44  ;;  %v14305_v44 = vld [vmem:[#allocation14 + $0x110] sm:$0xff]  }
 0x620   :  { %10041 = vmatprep.subr.bf16.mxu1 %v14249_v29  ;;  %v14306_v29 = vld [vmem:[#allocation14 + $0x158] sm:$0xff]  }
 0x623   :  { %10042 = vmatpush1.bf16.msra.mxu1 %v14247_v27  ;;  %v14307_v27 = vld [vmem:[#allocation14 + $0x118] sm:$0xff]  }
 0x624   :  { %10043 = vmatprep.subr.bf16.mxu1 %v14252_v45  ;;  %v14308_v45 = vld [vmem:[#allocation14 + $0x160] sm:$0xff]  }
 0x627   :  { %10044 = vmatpush1.bf16.msra.mxu1 %v14250_v28  ;;  %v14309_v28 = vld [vmem:[#allocation14 + $0x120] sm:$0xff]  }
 0x628   :  { %10045 = vmatprep.subr.bf16.mxu1 %v14255_v35  ;;  %v14310_v35 = vld [vmem:[#allocation14 + $0x168] sm:$0xff]  }
 0x62b   :  { %10046 = vmatpush1.bf16.msra.mxu1 %v14253_v34 }
 0x62c   :  { %10047 = vmatprep.subr.bf16.mxu1 %v14258_v38 }
 0x62f   :  { %10048 = vmatpush1.bf16.msra.mxu1 %v14256_v17 }
 0x630   :  { %10049 = vmatprep.subr.bf16.mxu1 %v14261_v11 }
 0x633   :  { %10050 = vmatpush1.bf16.msra.mxu1 %v14259_v57  ;;  %v14311_v57 = vld [vmem:[#allocation14 + $0x128] sm:$0xff]  }
 0x634   :  { %10051 = vmatprep.subr.bf16.mxu1 %v14264_v9 }
 0x635   :  { %v9852_v10 = vpop.f32.mrb[16].mxu0 }
 0x636   :  { %v15043_v46 = vadd.f32 %v9852_v10, %v14976_v0  ;;  %v9854_v37 = vpop.f32.mrb[17].mxu0  ;;  %v14288_v0 = vld [vmem:[#allocation14 + $0xd0] sm:$0xff]  }
 0x637   :  { %v15046_v5 = vadd.f32 %v9854_v37, %v14979_v50  ;;  %10052 = vmatpush1.bf16.msra.mxu1 %v14262_v40  ;;  %v9856_v31 = vpop.f32.mrb[18].mxu0  ;;  %v14290_v50 = vld [vmem:[#allocation14 + $0xd8] sm:$0xff]   ;;  %v14312_v37 = vld [vmem:[#allocation14 + $0x170] sm:$0xff]  }
 0x638   :  { %v9857_v49 = vpop.f32.mrb[19].mxu0  ;;  %10053 = vmatprep.subr.bf16.mxu1 %v14267_v48  ;;  %v10077_v48 = vrot.slane %v15049_v61, %v934_v58 }
 0x63b   :  { %10054 = vmatpush1.bf16.msra.mxu1 %v14265_v18  ;;  %v10081_v18 = vrot.slane %v15049_v61, %v938_v19 }
 0x63c   :  { %12082 = vmatprep.subr.bf16.mxu1 %v14284_v3  ;;  %v14313_v3 = vld [vmem:[#allocation14 + $0x130] sm:$0xff]  }
 0x63e   :  { %10056 = vmatmul.mubr.bf16.vlgmr.msra.gmra.mrb[52].mxu1 %v15011_v41  ;;  %v14295_v41 = vld [vmem:[#allocation14 + $0xa8] sm:$0xff]  }
 0x63f   :  { %12083 = vmatpush3.bf16.msra.mxu1 %v14285_v16 }
 0x640   :  { %12084 = vmatprep.subr.bf16.mxu1 %v14286_v53 }
 0x643   :  { %12085 = vmatpush3.bf16.msra.mxu1 %v14287_v7 }
 0x644   :  { %12086 = vmatprep.subr.bf16.mxu1 %v14288_v0  ;;  %v14314_v0 = vld [vmem:[#allocation14 + $0x178] sm:$0xff]  }
 0x647   :  { %12087 = vmatpush3.bf16.msra.mxu1 %v14289_v55 }
 0x648   :  { %12088 = vmatprep.subr.bf16.mxu1 %v14290_v50  ;;  %v14315_v50 = vld [vmem:[#allocation14 + $0x138] sm:$0xff]  }
 0x64b   :  { %12089 = vmatpush3.bf16.msra.mxu1 %v14291_v47 }
 0x64c   :  { %12090 = vmatprep.subr.bf16.mxu1 %v14292_v60 }
 0x64f   :  { %12091 = vmatpush3.bf16.msra.mxu1 %v14293_v36 }
 0x650   :  { %12092 = vmatprep.subr.bf16.mxu1 %v14294_v59 }
 0x651   :  { %v9811_v21 = vpop.f32.mrb[40].mxu1 }
 0x652   :  { %v9812_v26 = vadd.f32 %v9811_v21, %v15035_v54  ;;  %v9813_v15 = vpop.f32.mrb[41].mxu1  ;;  %v14301_v54 = vld [vmem:[#allocation14 + $0x100] sm:$0xff]  }
 0x653   :  { %v9814_v13 = vadd.f32 %v9813_v15, %v15038_v33  ;;  %v9815_v1 = vpop.f32.mrb[42].mxu1  ;;  %12093 = vmatpush3.bf16.msra.mxu1 %v14295_v41  ;;  %v14303_v33 = vld [vmem:[#allocation14 + $0x108] sm:$0xff]  }
 0x654   :  { %v10096_v2 = vadd.f32 %v10069_v56, %v9812_v26  ;;  %v9816_v4 = vpop.f32.mrb[43].mxu1  ;;  %12094 = vmatprep.subr.bf16.mxu1 %v14296_v63 }
 0x655   :  { %v10097_v14 = vadd.f32 %v10073_v22, %v9814_v13  ;;  %v10089_v4 = vrot.slane %v15049_v61, %v946_v39 }
 0x656   :  { %v10102_v6 = vmax.f32 %v10096_v2, 0.0 }
 0x657   :  { %v10103_v24 = vmax.f32 %v10097_v14, 0.0  ;;  %12095 = vmatpush3.bf16.msra.mxu1 %v14297_v8  ;;  %v10085_v8 = vrot.slane %v15049_v61, %v942_v42 }
 0x658   :  { %12096 = vmatprep.subr.bf16.mxu1 %v14298_v12  ;;  %v10108_v20 = vpack.c.bf16 %v10102_v6, %v10102_v6 }
 0x659   :  { %v10109_v32 = vpack.c.bf16 %v10103_v24, %v10103_v24 }
 0x65b   :  { %10537 = vmatprep.mubr.bf16.mxu0 %v10109_v32  ;;  %12097 = vmatpush3.bf16.msra.mxu1 %v14299_v30 }
 0x65c   :  { %10538 = vmatmul.mubr.bf16.vlgmr.msra.gmra.mrb[28].mxu0 %v10108_v20 }
 0x65d   :  { %12105 = vmatpush3.bf16.msra.mxu0 %v14301_v54 }
 0x65e   :  { %12106 = vmatprep.subr.bf16.mxu0 %v14302_v23 }
 0x661   :  { %12107 = vmatpush3.bf16.msra.mxu0 %v14303_v33 }
 0x662   :  { %12108 = vmatprep.subr.bf16.mxu0 %v14304_v25 }
 0x665   :  { %12109 = vmatpush3.bf16.msra.mxu0 %v14305_v44  ;;  %v12011_v44 = vld [vmem:[#allocation16] ss:$0 sm:$0xff] }
 0x666   :  { %12110 = vmatprep.subr.bf16.mxu0 %v14306_v29 }
 0x669   :  { %12111 = vmatpush3.bf16.msra.mxu0 %v14307_v27 }
 0x66a   :  { %12112 = vmatprep.subr.bf16.mxu0 %v14308_v45 }
 0x66d   :  { %12113 = vmatpush3.bf16.msra.mxu0 %v14309_v28 }
 0x66e   :  { %12114 = vmatprep.subr.bf16.mxu0 %v14310_v35 }
 0x671   :  { %12115 = vmatpush3.bf16.msra.mxu0 %v14311_v57 }
 0x672   :  { %12116 = vmatprep.subr.bf16.mxu0 %v14312_v37 }
 0x675   :  { %12117 = vmatpush3.bf16.msra.mxu0 %v14313_v3 }
 0x676   :  { %v9934_v34 = vpop.f32.mrb[20].mxu0  ;;  %12118 = vmatprep.subr.bf16.mxu0 %v14314_v0 }
 0x677   :  { %v9936_v38 = vpop.f32.mrb[21].mxu0 }
 0x678   :  { %v9938_v17 = vpop.f32.mrb[22].mxu0 }
 0x679   :  { %v9939_v11 = vpop.f32.mrb[23].mxu0  ;;  %12119 = vmatpush3.bf16.msra.mxu0 %v14315_v50 }
 0x691   :  { %v9893_v9 = vpop.f32.mrb[44].mxu1 }
 0x692   :  { %v9894_v40 = vadd.f32 %v9893_v9, %v15043_v46  ;;  %v9895_v10 = vpop.f32.mrb[45].mxu1 }
 0x693   :  { %v9896_v31 = vadd.f32 %v9895_v10, %v15046_v5  ;;  %v9897_v49 = vpop.f32.mrb[46].mxu1 }
 0x694   :  { %v9935_v16 = vadd.f32 %v9934_v34, %v9894_v40  ;;  %v9898_v53 = vpop.f32.mrb[47].mxu1 }
 0x695   :  { %v9937_v7 = vadd.f32 %v9936_v38, %v9896_v31 }
 0x696   :  { %v10098_v46 = vadd.f32 %v10077_v48, %v9935_v16 }
 0x697   :  { %v10099_v55 = vadd.f32 %v10081_v18, %v9937_v7 }
 0x698   :  { %v10104_v58 = vmax.f32 %v10098_v46, 0.0 }
 0x699   :  { %v10105_v47 = vmax.f32 %v10099_v55, 0.0 }
 0x69a   :  { %v10110_v60 = vpack.c.bf16 %v10104_v58, %v10104_v58 }
 0x69b   :  { %v10111_v5 = vpack.c.bf16 %v10105_v47, %v10105_v47 }
 0x69d   :  { %10577 = vmatprep.mubr.bf16.mxu1 %v10111_v5 }
 0x69e   :  { %10578 = vmatmul.mubr.bf16.vlgmr.msra.gmra.mrb[56].mxu1 %v10110_v60 }
 0x6b6   :  { %v10016_v19 = vpop.f32.mrb[24].mxu0 }
 0x6b7   :  { %v10018_v36 = vpop.f32.mrb[25].mxu0 }
 0x6b8   :  { %v10020_v59 = vpop.f32.mrb[26].mxu0 }
 0x6b9   :  { %v10021_v41 = vpop.f32.mrb[27].mxu0 }
 0x6d1   :  { %v9975_v56 = vpop.f32.mrb[48].mxu1 }
 0x6d2   :  { %v9976_v63 = vadd.f32 %v9975_v56, %v15020_v62  ;;  %v9977_v21 = vpop.f32.mrb[49].mxu1 }
 0x6d3   :  { %v9978_v22 = vadd.f32 %v9977_v21, %v15026_v52  ;;  %v9979_v26 = vpop.f32.mrb[50].mxu1 }
 0x6d4   :  { %v9980_v15 = vpop.f32.mrb[51].mxu1  ;;  %v10017_v13 = vadd.f32 %v10016_v19, %v9976_v63 }
 0x6d5   :  { %v10019_v1 = vadd.f32 %v10018_v36, %v9978_v22 }
 0x711   :  { %v10057_v2 = vpop.f32.mrb[52].mxu1 }
 0x712   :  { %v10058_v12 = vadd.f32 %v10057_v2, %v10017_v13  ;;  %v10059_v51 = vpop.f32.mrb[53].mxu1 }
 0x713   :  { %v10060_v14 = vadd.f32 %v10059_v51, %v10019_v1  ;;  %v10061_v62 = vpop.f32.mrb[54].mxu1 }
 0x714   :  { %v10100_v6 = vadd.f32 %v10085_v8, %v10058_v12  ;;  %v10062_v24 = vpop.f32.mrb[55].mxu1 }
 0x715   :  { %v10101_v52 = vadd.f32 %v10089_v4, %v10060_v14 }
 0x716   :  { %v10106_v30 = vmax.f32 %v10100_v6, 0.0 }
 0x717   :  { %v10107_v32 = vmax.f32 %v10101_v52, 0.0 }
 0x718   :  { %v10112_v20 = vpack.c.bf16 %v10106_v30, %v10106_v30 }
 0x719   :  { %v10113_v54 = vpack.c.bf16 %v10107_v32, %v10107_v32 }
 0x71b   :  { %10617 = vmatprep.mubr.bf16.mxu0 %v10113_v54 }
 0x71c   :  { %10618 = vmatmul.mubr.bf16.vlgmr.msra.gmra.mrb[32].mxu0 %v10112_v20 }
 0x72f   :  { %v12076_v23 = vpop.f32.mrb[28].mxu0 }
 0x730   :  { %v12077_v42 = vpop.f32.mrb[29].mxu0 }
 0x731   :  { %v12078_v33 = vadd.f32 %v12077_v42, %v12076_v23  ;;  %v12079_v25 = vpop.f32.mrb[30].mxu0 }
 0x732   :  { %v12080_v43 = vpop.f32.mrb[31].mxu0 }
 0x733   :  { %v10540_v29 = vadd.f32 %v12078_v33, %v12011_v44 }
 0x771   :  { %v12098_v39 = vpop.f32.mrb[56].mxu1 }
 0x772   :  { %v12099_v61 = vpop.f32.mrb[57].mxu1 }
 0x773   :  { %v12100_v27 = vadd.f32 %v12099_v61, %v12098_v39  ;;  %v12101_v45 = vpop.f32.mrb[58].mxu1 }
 0x774   :  { %v12102_v28 = vpop.f32.mrb[59].mxu1 }
 0x775   :  { %v10580_v35 = vadd.f32 %v12100_v27, %v10540_v29 }
 0x7ef   :  { %v12120_v34 = vpop.f32.mrb[32].mxu0 }
 0x7f0   :  { %v12121_v38 = vpop.f32.mrb[33].mxu0 }
 0x7f1   :  { %v12122_v17 = vadd.f32 %v12121_v38, %v12120_v34  ;;  %v12123_v11 = vpop.f32.mrb[34].mxu0 }
 0x7f2   :  { %v12124_v57 = vpop.f32.mrb[35].mxu0 }
 0x7f3   :  { %v10620_v9 = vadd.f32 %v12122_v17, %v10580_v35 }
 0x7f5   :  { %10625 = vst [vmem:[#allocation17] sm:$0xff] %v10620_v9 }
 0x7f6   :  { %14525 = shalt.err (!%p14522_p6)
}
 0x7f7   :  { %s14526_s20 = scalar_lea.hbm %s15096_s9, 128 }
 0x7f8   :  { %p14527_p7 = scmp.ne.s32.totalorder %s15096_s9, %s14526_s20  ;;  %p14530_p8 = scmp.lt.u32.totalorder %s14526_s20, %s15096_s9 }
 0x7fa   :  { %p14532_p9 = pnand %p14530_p8, %p14527_p7 }
 0x7fc   :  { %14535 = shalt.err (!%p14532_p9)
}
 0x7fd   :  { %10635 = dma.vmem_to_hbm [thread:$0]  %s10633_s26, 128, %s15096_s9, [#allocation4]  }
 0x7fe   :  { %14546 = dma.done.wait [#allocation4], 128  }
 0x7ff   :  { %14547 = vsyncadd [#allocation4], 4294967168 }
 0x800   :  { %10639 = vsyncpa [#allocation3], 1 }
 0x801   :  { %10640 = vsyncpa [#allocation6], 1 }
 0x802   :  { %10641 = vsyncpa [#allocation9], 1 }
 0x803   :  { %10642 = vsyncpa [#allocation12], 1 }
 0x804   :  { %10643 = vsyncpa [#allocation15], 1 }
 0x805   :  { %10644 = vsyncpa [#allocation4], 1 }

</bundles_post_ra>
